<compile_context>
chip_gen: v6e
topology: v6e:2x2x1
jax: 0.10.0
libtpu: 0.0.40
codegen_flags: <defaults>
</compile_context>

<pallas_src>
import functools
import math

import jax
import jax.numpy as jnp
from jax.experimental import pallas as pl
from jax.experimental.pallas import tpu as pltpu


# ----------------------------------------------------------------------------
# Config (a tiny synthetic BERT)
# ----------------------------------------------------------------------------
class Config:
    hidden_size = 32
    num_layers = 2
    num_heads = 4
    intermediate_size = 64
    vocab_size = 50
    type_vocab_size = 2
    max_position = 32
    hidden_dropout_prob = 0.1   # dropout is identity at inference (eval mode)
    layer_norm_eps = 1e-12
    n_domain = 5
    n_op = 4
    update_id = 1


_W_NAMES = ("wqkv", "bqkv", "wo", "bo", "ln1_g", "ln1_b",
            "w1", "b1", "w2", "b2", "ln2_g", "ln2_b")

_LANE = 128   # TPU lane width; padded hidden / intermediate size


# ----------------------------------------------------------------------------
# Fused encoder kernel: all layers, whole batch, one grid-less invocation
# ----------------------------------------------------------------------------
def _encoder_kernel(x_ref, mask_ref,
                    wqkv_ref, bqkv_ref, wo_ref, bo_ref, ln1g_ref, ln1b_ref,
                    w1_ref, b1_ref, w2_ref, b2_ref, ln2g_ref, ln2b_ref,
                    o_ref, *, num_layers, num_heads, head_dim, real_h,
                    batch, seq, eps):
    """Activations are (B*L, Hp) f32 with Hp = 128 lanes.  Lanes >= real_h are
    exactly zero throughout (weights / biases / LN params are zero-padded)."""
    hp = x_ref.shape[-1]
    inv_h = 1.0 / real_h
    scale = 1.0 / math.sqrt(head_dim)

    x = x_ref[...]                       # (B*L, Hp) f32 residual stream
    add_mask = mask_ref[...]             # (B, L, L) f32, hoisted (read once)

    def layernorm(y, g, b):
        # Padded lanes of y are zero, so plain sums over Hp equal sums over the
        # real H; divide by the real H for correct statistics.
        mean = jnp.sum(y, axis=-1, keepdims=True) * inv_h
        msq = jnp.sum(y * y, axis=-1, keepdims=True) * inv_h
        var = msq - mean * mean
        # g/b are zero in padded lanes -> padded lanes stay exactly zero.
        return (y - mean) * jax.lax.rsqrt(var + eps) * g + b

    for l in range(num_layers):          # static unroll; weights VMEM-resident
        xb = x.astype(jnp.bfloat16)

        # ---- fused QKV projection: one (BL,Hp)@(Hp,3Hp) MXU matmul ----
        qkv = jnp.dot(xb, wqkv_ref[l],
                      preferred_element_type=jnp.float32) + bqkv_ref[l]
        q = (qkv[:, 0 * hp:1 * hp] * scale).reshape(batch, seq, hp)
        k = qkv[:, 1 * hp:2 * hp].reshape(batch, seq, hp)
        v = qkv[:, 2 * hp:3 * hp].reshape(batch, seq, hp)
        qb = q.astype(jnp.bfloat16)
        kb = k.astype(jnp.bfloat16)
        vb = v.astype(jnp.bfloat16)

        # ---- attention: each head is one batched contraction over B ----
        ctx_parts = []
        for h in range(num_heads):       # static 4-iteration loop
            cs = slice(h * head_dim, (h + 1) * head_dim)
            s = jnp.einsum('bqd,bkd->bqk', qb[:, :, cs], kb[:, :, cs],
                           preferred_element_type=jnp.float32) + add_mask
            s = s - jnp.max(s, axis=-1, keepdims=True)
            p = jnp.exp(s)
            # approx reciprocal (EUP slot); few-ULP delta vs exact divide.
            p = p * pl.reciprocal(jnp.sum(p, axis=-1, keepdims=True),
                                  approx=True)
            ctx_parts.append(
                jnp.einsum('bqk,bkd->bqd', p.astype(jnp.bfloat16),
                           vb[:, :, cs],
                           preferred_element_type=jnp.float32))
        ctx = jnp.concatenate(ctx_parts, axis=-1)              # (B, L, H_real)
        ctx = ctx.reshape(batch * seq, num_heads * head_dim)   # (BL, H_real)

        # ---- single output projection: (BL, H) @ (H, Hp), lane-dense N ----
        attn = jnp.dot(ctx.astype(jnp.bfloat16), wo_ref[l],
                       preferred_element_type=jnp.float32) + bo_ref[l]
        x = layernorm(x + attn, ln1g_ref[l], ln1b_ref[l])

        # ---- feed-forward ----
        ff = jnp.dot(x.astype(jnp.bfloat16), w1_ref[l],
                     preferred_element_type=jnp.float32) + b1_ref[l]
        # tanh-approx GELU (EUP friendly); HF/torch BERT uses erf-GELU
        # (small numeric delta, documented).
        ff = jax.nn.gelu(ff, approximate=True)
        ff = jnp.dot(ff.astype(jnp.bfloat16), w2_ref[l],
                     preferred_element_type=jnp.float32) + b2_ref[l]
        x = layernorm(x + ff, ln2g_ref[l], ln2b_ref[l])

    o_ref[...] = x                       # 128-lane-dense writeback


def pad_layer_params(layers, hp=_LANE, ip=_LANE):
    """Zero-pad stacked per-layer weights to 128-lane-dense shapes.  Matmul
    operands are cast to bf16; biases / LayerNorm params stay f32."""
    def pad(a, rows, cols):
        return jnp.pad(a, ((0, 0), (0, rows - a.shape[1]),
                           (0, cols - a.shape[2])))

    wq, wk, wv = jnp.split(layers["wqkv"], 3, axis=2)   # each (nl, H, H)
    bq, bk, bv = jnp.split(layers["bqkv"], 3, axis=2)   # each (nl, 1, H)
    H = wq.shape[1]
    return {
        # Q | K | V blocks laid out at lane offsets 0 / Hp / 2*Hp.
        "wqkv": jnp.concatenate([pad(wq, hp, hp), pad(wk, hp, hp),
                                 pad(wv, hp, hp)], axis=2).astype(jnp.bfloat16),
        "bqkv": jnp.concatenate([pad(bq, 1, hp), pad(bk, 1, hp),
                                 pad(bv, 1, hp)], axis=2),
        "wo": pad(layers["wo"], H, hp).astype(jnp.bfloat16),   # (nl, H, Hp)
        "bo": pad(layers["bo"], 1, hp),
        "ln1_g": pad(layers["ln1_g"], 1, hp),
        "ln1_b": pad(layers["ln1_b"], 1, hp),
        "w1": pad(layers["w1"], hp, ip).astype(jnp.bfloat16),
        "b1": pad(layers["b1"], 1, ip),
        "w2": pad(layers["w2"], ip, hp).astype(jnp.bfloat16),
        "b2": pad(layers["b2"], 1, hp),
        "ln2_g": pad(layers["ln2_g"], 1, hp),
        "ln2_b": pad(layers["ln2_b"], 1, hp),
    }


def bert_layers_fused(x_emb_ln, attention_mask, layers, cfg):
    """x_emb_ln: (B*L, H) post-embedding-LayerNorm activations (f32).
    attention_mask: (B, L) in {0,1}.  Returns final hidden states (B*L, H)."""
    BL, H = x_emb_ln.shape
    B, L = attention_mask.shape
    hp = _LANE

    x_pad = jnp.pad(x_emb_ln, ((0, 0), (0, hp - H)))         # lane-dense input
    add_mask = jnp.broadcast_to(
        (1.0 - attention_mask.astype(jnp.float32))[:, None, :] * -1e9,
        (B, L, L))                                            # hoisted to XLA
    padded = pad_layer_params(layers)

    kernel = functools.partial(
        _encoder_kernel,
        num_layers=cfg.num_layers,
        num_heads=cfg.num_heads,
        head_dim=H // cfg.num_heads,
        real_h=float(H),
        batch=B, seq=L,
        eps=cfg.layer_norm_eps)

    out = pl.pallas_call(
        kernel,
        out_shape=jax.ShapeDtypeStruct((BL, hp), jnp.float32),
        # Single grid-less invocation: whole batch + all layer weights resident
        # in VMEM (~0.5 MB bf16 total), no per-step pipeline overhead.
        compiler_params=pltpu.CompilerParams(vmem_limit_bytes=32 * 1024 * 1024),
    )(x_pad, add_mask, *[padded[n] for n in _W_NAMES])
    return out[:, :H]


# ----------------------------------------------------------------------------
# Parameter init (deterministic, synthetic); layer weights pre-stacked
# ----------------------------------------------------------------------------
def init_params(key, cfg):
    H, I, nl = cfg.hidden_size, cfg.intermediate_size, cfg.num_layers
    keys = iter(jax.random.split(key, 32))

    def nrm(shape):
        return 0.02 * jax.random.normal(next(keys), shape, jnp.float32)

    layers = {
        "wqkv": nrm((nl, H, 3 * H)),                     # fused Q|K|V weights
        "bqkv": jnp.zeros((nl, 1, 3 * H), jnp.float32),
        "wo": nrm((nl, H, H)),
        "bo": jnp.zeros((nl, 1, H), jnp.float32),
        "ln1_g": jnp.ones((nl, 1, H), jnp.float32),
        "ln1_b": jnp.zeros((nl, 1, H), jnp.float32),
        "w1": nrm((nl, H, I)),
        "b1": jnp.zeros((nl, 1, I), jnp.float32),
        "w2": nrm((nl, I, H)),
        "b2": jnp.zeros((nl, 1, H), jnp.float32),
        "ln2_g": jnp.ones((nl, 1, H), jnp.float32),
        "ln2_b": jnp.zeros((nl, 1, H), jnp.float32),
    }
    return {
        "word_emb": nrm((cfg.vocab_size, H)),
        "pos_emb": nrm((cfg.max_position, H)),
        "type_emb": nrm((cfg.type_vocab_size, H)),
        "emb_ln_g": jnp.ones((1, H), jnp.float32),
        "emb_ln_b": jnp.zeros((1, H), jnp.float32),
        "pooler_w": nrm((H, H)),
        "pooler_b": jnp.zeros((H,), jnp.float32),
        "dom_w": nrm((H, cfg.n_domain)),
        "dom_b": jnp.zeros((cfg.n_domain,), jnp.float32),
        "op_w": nrm((H, cfg.n_op)),
        "op_b": jnp.zeros((cfg.n_op,), jnp.float32),
        "layers": layers,
    }


# ----------------------------------------------------------------------------
# BERT forward + SOM-DST heads (semantics of BertEncoder.forward)
# ----------------------------------------------------------------------------
def bert_forward(params, cfg, input_ids, token_type_ids, attention_mask):
    B, L = input_ids.shape
    H = cfg.hidden_size
    we = params["word_emb"][input_ids]                     # (B, L, H)
    pe = params["pos_emb"][jnp.arange(L)][None]            # (1, L, H)
    te = params["type_emb"][token_type_ids]                # (B, L, H)
    x = (we + pe + te).reshape(B * L, H)

    # Embedding LayerNorm in plain XLA (one tiny op); embedding dropout is
    # identity at inference.
    mean = jnp.mean(x, axis=-1, keepdims=True)
    var = jnp.mean(jnp.square(x - mean), axis=-1, keepdims=True)
    x = ((x - mean) * jax.lax.rsqrt(var + cfg.layer_norm_eps)
         * params["emb_ln_g"] + params["emb_ln_b"])

    seq = bert_layers_fused(x, attention_mask, params["layers"], cfg)
    seq = seq.reshape(B, L, H)

    # Pooler head (H -> H, tanh): tiny lane width -> plain XLA.
    pooled = jnp.tanh(seq[:, 0, :] @ params["pooler_w"] + params["pooler_b"])
    return seq, pooled


def bert_encoder_forward(params, cfg, input_ids, token_type_ids, state_positions,
                         attention_mask, op_ids=None, max_update=None):
    B, L = input_ids.shape
    J = state_positions.shape[1]

    sequence_output, pooled_output = bert_forward(
        params, cfg, input_ids, token_type_ids, attention_mask)

    # Dropout is identity at inference (eval mode).
    # Classifier heads (N=5 / N=4): plain XLA, not worth a pallas_call.
    domain_scores = pooled_output @ params["dom_w"] + params["dom_b"]   # (B, n_domain)

    # torch.gather(sequence_output, 1, state_pos)
    state_output = jnp.take_along_axis(
        sequence_output, state_positions[:, :, None], axis=1)           # (B, J, H)
    state_scores = state_output @ params["op_w"] + params["op_b"]       # (B, J, n_op)

    if op_ids is None:
        op_ids = jnp.argmax(state_scores.reshape(-1, cfg.n_op), axis=-1).reshape(B, J)

    upd_mask = op_ids == cfg.update_id                                  # (B, J) bool
    counts = jnp.sum(upd_mask, axis=-1)                                 # (B,)
    if max_update is None:
        # Matches torch's `.item()` (device->host sync, not jittable).
        # TODO(synk): prefer passing a static max_update bound (as the demo does).
        max_update = int(jnp.max(counts))

    # Order-preserving masked_select + zero padding (matches the torch loop).
    order = jnp.argsort(~upd_mask, axis=-1, stable=True)                # True rows first
    sel = jnp.take_along_axis(state_output, order[:, :, None], axis=1)  # (B, J, H)
    sel = sel[:, :max_update, :]                                        # (B, max_update, H)
    valid = (jnp.arange(max_update)[None, :] < counts[:, None]).astype(sel.dtype)
    decoder_inputs = sel * valid[:, :, None]

    return (domain_scores, state_scores, decoder_inputs,
            sequence_output, pooled_output[None])                       # (1, B, H)


# ----------------------------------------------------------------------------
# Demo
# ----------------------------------------------------------------------------
if __name__ == "__main__":
    cfg = Config()
    B, L, J = 2, 16, 4

    key = jax.random.PRNGKey(0)
    k_par, k_ids = jax.random.split(key, 2)
    params = init_params(k_par, cfg)

    input_ids = jax.random.randint(k_ids, (B, L), 0, cfg.vocab_size, dtype=jnp.int32)
    token_type_ids = jnp.concatenate(
        [jnp.zeros((B, L // 2), jnp.int32), jnp.ones((B, L // 2), jnp.int32)], axis=1)
    attention_mask = jnp.ones((B, L), jnp.int32).at[1, L - 3:].set(0)
    state_positions = jnp.array([[2, 5, 8, 11], [3, 6, 9, 12]], dtype=jnp.int32)

    # Static max_update (= J) keeps the whole forward on-device and jittable;
    # padded slots are zeroed exactly like the torch reference.
    fwd = jax.jit(functools.partial(bert_encoder_forward, params, cfg, max_update=J))
    outs = fwd(input_ids, token_type_ids, state_positions, attention_mask)
    for o in outs:
        jax.block_until_ready(o)

    domain_scores, state_scores, decoder_inputs, sequence_output, pooled = outs
    assert domain_scores.shape == (B, cfg.n_domain)
    assert state_scores.shape == (B, J, cfg.n_op)
    assert decoder_inputs.shape == (B, J, cfg.hidden_size)
    assert sequence_output.shape == (B, L, cfg.hidden_size)
    assert pooled.shape == (1, B, cfg.hidden_size)
    assert all(bool(jnp.all(jnp.isfinite(o))) for o in
               (domain_scores, state_scores, decoder_inputs, sequence_output, pooled))

    print("KERNEL_OK")
</pallas_src>

<mosaic_0001>
module attributes {stable_mosaic.version = 11 : i64} {
  func.func @_encoder_kernel(%arg0: memref<32x128xf32, #tpu.memory_space<vmem>>, %arg1: memref<2x16x16xf32, #tpu.memory_space<vmem>>, %arg2: memref<2x128x384xbf16, #tpu.memory_space<vmem>>, %arg3: memref<2x1x384xf32, #tpu.memory_space<vmem>>, %arg4: memref<2x32x128xbf16, #tpu.memory_space<vmem>>, %arg5: memref<2x1x128xf32, #tpu.memory_space<vmem>>, %arg6: memref<2x1x128xf32, #tpu.memory_space<vmem>>, %arg7: memref<2x1x128xf32, #tpu.memory_space<vmem>>, %arg8: memref<2x128x128xbf16, #tpu.memory_space<vmem>>, %arg9: memref<2x1x128xf32, #tpu.memory_space<vmem>>, %arg10: memref<2x128x128xbf16, #tpu.memory_space<vmem>>, %arg11: memref<2x1x128xf32, #tpu.memory_space<vmem>>, %arg12: memref<2x1x128xf32, #tpu.memory_space<vmem>>, %arg13: memref<2x1x128xf32, #tpu.memory_space<vmem>>, %arg14: memref<32x128xf32, #tpu.memory_space<vmem>>) attributes {dimension_semantics = [], scalar_prefetch = 0 : i64, scratch_operands = 0 : i64, tpu.core_type = #tpu.core_type<tc>} {
    %c0 = arith.constant 0 : index
    %c0_0 = arith.constant 0 : index
    %0 = vector.load %arg0[%c0, %c0_0] : memref<32x128xf32, #tpu.memory_space<vmem>>, vector<32x128xf32>
    %c0_1 = arith.constant 0 : index
    %c0_2 = arith.constant 0 : index
    %c0_3 = arith.constant 0 : index
    %1 = vector.load %arg1[%c0_1, %c0_2, %c0_3] : memref<2x16x16xf32, #tpu.memory_space<vmem>>, vector<2x16x16xf32>
    %2 = arith.truncf %0 : vector<32x128xf32> to vector<32x128xbf16>
    %c0_4 = arith.constant 0 : index
    %c0_5 = arith.constant 0 : index
    %c0_6 = arith.constant 0 : index
    %3 = vector.load %arg2[%c0_4, %c0_5, %c0_6] : memref<2x128x384xbf16, #tpu.memory_space<vmem>>, vector<1x128x384xbf16>
    %4 = vector.shape_cast %3 : vector<1x128x384xbf16> to vector<128x384xbf16>
    %cst = arith.constant dense<0.000000e+00> : vector<32x384xf32>
    %5 = tpu.matmul %2, %4, %cst {dimension_numbers = #tpu.dot_dimension_numbers<[1], [0], [0], [1], [0, 0, 1, 1], [], []>} : vector<32x128xbf16>, vector<128x384xbf16>, vector<32x384xf32> -> vector<32x384xf32>
    %c0_7 = arith.constant 0 : index
    %c0_8 = arith.constant 0 : index
    %c0_9 = arith.constant 0 : index
    %6 = vector.load %arg3[%c0_7, %c0_8, %c0_9] : memref<2x1x384xf32, #tpu.memory_space<vmem>>, vector<1x1x384xf32>
    %7 = vector.shape_cast %6 : vector<1x1x384xf32> to vector<1x384xf32>
    %8 = vector.broadcast %7 : vector<1x384xf32> to vector<32x384xf32>
    %9 = arith.addf %5, %8 : vector<32x384xf32>
    %10 = vector.extract_strided_slice %9 {offsets = [0, 0], sizes = [32, 128], strides = [1, 1]} : vector<32x384xf32> to vector<32x128xf32>
    %cst_10 = arith.constant 0.353553385 : f32
    %11 = vector.broadcast %cst_10 : f32 to vector<32x128xf32>
    %12 = arith.mulf %10, %11 : vector<32x128xf32>
    %13 = vector.shape_cast %12 : vector<32x128xf32> to vector<2x16x128xf32>
    %14 = vector.extract_strided_slice %9 {offsets = [0, 128], sizes = [32, 128], strides = [1, 1]} : vector<32x384xf32> to vector<32x128xf32>
    %15 = vector.shape_cast %14 : vector<32x128xf32> to vector<2x16x128xf32>
    %16 = vector.extract_strided_slice %9 {offsets = [0, 256], sizes = [32, 128], strides = [1, 1]} : vector<32x384xf32> to vector<32x128xf32>
    %17 = vector.shape_cast %16 : vector<32x128xf32> to vector<2x16x128xf32>
    %18 = arith.truncf %13 : vector<2x16x128xf32> to vector<2x16x128xbf16>
    %19 = arith.truncf %15 : vector<2x16x128xf32> to vector<2x16x128xbf16>
    %20 = arith.truncf %17 : vector<2x16x128xf32> to vector<2x16x128xbf16>
    %21 = vector.extract_strided_slice %18 {offsets = [0, 0, 0], sizes = [2, 16, 8], strides = [1, 1, 1]} : vector<2x16x128xbf16> to vector<2x16x8xbf16>
    %22 = vector.extract_strided_slice %19 {offsets = [0, 0, 0], sizes = [2, 16, 8], strides = [1, 1, 1]} : vector<2x16x128xbf16> to vector<2x16x8xbf16>
    "tpu.trace_start"() <{level = 10 : i32, message = "bqd,bkd->bqk"}> : () -> ()
    %cst_11 = arith.constant dense<0.000000e+00> : vector<2x16x16xf32>
    %23 = tpu.matmul %21, %22, %cst_11 {dimension_numbers = #tpu.dot_dimension_numbers<[2], [2], [1], [1], [0, 0, 0, 1, 1, 1], [0], [0]>} : vector<2x16x8xbf16>, vector<2x16x8xbf16>, vector<2x16x16xf32> -> vector<2x16x16xf32>
    "tpu.trace_stop"() : () -> ()
    %24 = arith.addf %23, %1 : vector<2x16x16xf32>
    %cst_12 = arith.constant dense<0xFF800000> : vector<2x16xf32>
    %25 = vector.multi_reduction <maximumf>, %24, %cst_12 [2] : vector<2x16x16xf32> to vector<2x16xf32>
    %26 = vector.shape_cast %25 : vector<2x16xf32> to vector<2x16x1xf32>
    %27 = vector.broadcast %26 : vector<2x16x1xf32> to vector<2x16x16xf32>
    %28 = arith.subf %24, %27 : vector<2x16x16xf32>
    %29 = math.exp %28 : vector<2x16x16xf32>
    %cst_13 = arith.constant dense<0.000000e+00> : vector<2x16xf32>
    %30 = vector.multi_reduction <add>, %29, %cst_13 [2] : vector<2x16x16xf32> to vector<2x16xf32>
    %31 = vector.shape_cast %30 : vector<2x16xf32> to vector<2x16x1xf32>
    %32 = tpu.reciprocal %31 {approx = true} : vector<2x16x1xf32> -> vector<2x16x1xf32>
    %33 = vector.broadcast %32 : vector<2x16x1xf32> to vector<2x16x16xf32>
    %34 = arith.mulf %29, %33 : vector<2x16x16xf32>
    %35 = arith.truncf %34 : vector<2x16x16xf32> to vector<2x16x16xbf16>
    %36 = vector.extract_strided_slice %20 {offsets = [0, 0, 0], sizes = [2, 16, 8], strides = [1, 1, 1]} : vector<2x16x128xbf16> to vector<2x16x8xbf16>
    "tpu.trace_start"() <{level = 10 : i32, message = "bqk,bkd->bqd"}> : () -> ()
    %cst_14 = arith.constant dense<0.000000e+00> : vector<2x16x8xf32>
    %37 = tpu.matmul %35, %36, %cst_14 {dimension_numbers = #tpu.dot_dimension_numbers<[2], [1], [1], [2], [0, 0, 0, 1, 1, 2], [0], [0]>} : vector<2x16x16xbf16>, vector<2x16x8xbf16>, vector<2x16x8xf32> -> vector<2x16x8xf32>
    "tpu.trace_stop"() : () -> ()
    %38 = vector.extract_strided_slice %18 {offsets = [0, 0, 8], sizes = [2, 16, 8], strides = [1, 1, 1]} : vector<2x16x128xbf16> to vector<2x16x8xbf16>
    %39 = vector.extract_strided_slice %19 {offsets = [0, 0, 8], sizes = [2, 16, 8], strides = [1, 1, 1]} : vector<2x16x128xbf16> to vector<2x16x8xbf16>
    "tpu.trace_start"() <{level = 10 : i32, message = "bqd,bkd->bqk"}> : () -> ()
    %cst_15 = arith.constant dense<0.000000e+00> : vector<2x16x16xf32>
    %40 = tpu.matmul %38, %39, %cst_15 {dimension_numbers = #tpu.dot_dimension_numbers<[2], [2], [1], [1], [0, 0, 0, 1, 1, 1], [0], [0]>} : vector<2x16x8xbf16>, vector<2x16x8xbf16>, vector<2x16x16xf32> -> vector<2x16x16xf32>
    "tpu.trace_stop"() : () -> ()
    %41 = arith.addf %40, %1 : vector<2x16x16xf32>
    %cst_16 = arith.constant dense<0xFF800000> : vector<2x16xf32>
    %42 = vector.multi_reduction <maximumf>, %41, %cst_16 [2] : vector<2x16x16xf32> to vector<2x16xf32>
    %43 = vector.shape_cast %42 : vector<2x16xf32> to vector<2x16x1xf32>
    %44 = vector.broadcast %43 : vector<2x16x1xf32> to vector<2x16x16xf32>
    %45 = arith.subf %41, %44 : vector<2x16x16xf32>
    %46 = math.exp %45 : vector<2x16x16xf32>
    %cst_17 = arith.constant dense<0.000000e+00> : vector<2x16xf32>
    %47 = vector.multi_reduction <add>, %46, %cst_17 [2] : vector<2x16x16xf32> to vector<2x16xf32>
    %48 = vector.shape_cast %47 : vector<2x16xf32> to vector<2x16x1xf32>
    %49 = tpu.reciprocal %48 {approx = true} : vector<2x16x1xf32> -> vector<2x16x1xf32>
    %50 = vector.broadcast %49 : vector<2x16x1xf32> to vector<2x16x16xf32>
    %51 = arith.mulf %46, %50 : vector<2x16x16xf32>
    %52 = arith.truncf %51 : vector<2x16x16xf32> to vector<2x16x16xbf16>
    %53 = vector.extract_strided_slice %20 {offsets = [0, 0, 8], sizes = [2, 16, 8], strides = [1, 1, 1]} : vector<2x16x128xbf16> to vector<2x16x8xbf16>
    "tpu.trace_start"() <{level = 10 : i32, message = "bqk,bkd->bqd"}> : () -> ()
    %cst_18 = arith.constant dense<0.000000e+00> : vector<2x16x8xf32>
    %54 = tpu.matmul %52, %53, %cst_18 {dimension_numbers = #tpu.dot_dimension_numbers<[2], [1], [1], [2], [0, 0, 0, 1, 1, 2], [0], [0]>} : vector<2x16x16xbf16>, vector<2x16x8xbf16>, vector<2x16x8xf32> -> vector<2x16x8xf32>
    "tpu.trace_stop"() : () -> ()
    %55 = vector.extract_strided_slice %18 {offsets = [0, 0, 16], sizes = [2, 16, 8], strides = [1, 1, 1]} : vector<2x16x128xbf16> to vector<2x16x8xbf16>
    %56 = vector.extract_strided_slice %19 {offsets = [0, 0, 16], sizes = [2, 16, 8], strides = [1, 1, 1]} : vector<2x16x128xbf16> to vector<2x16x8xbf16>
    "tpu.trace_start"() <{level = 10 : i32, message = "bqd,bkd->bqk"}> : () -> ()
    %cst_19 = arith.constant dense<0.000000e+00> : vector<2x16x16xf32>
    %57 = tpu.matmul %55, %56, %cst_19 {dimension_numbers = #tpu.dot_dimension_numbers<[2], [2], [1], [1], [0, 0, 0, 1, 1, 1], [0], [0]>} : vector<2x16x8xbf16>, vector<2x16x8xbf16>, vector<2x16x16xf32> -> vector<2x16x16xf32>
    "tpu.trace_stop"() : () -> ()
    %58 = arith.addf %57, %1 : vector<2x16x16xf32>
    %cst_20 = arith.constant dense<0xFF800000> : vector<2x16xf32>
    %59 = vector.multi_reduction <maximumf>, %58, %cst_20 [2] : vector<2x16x16xf32> to vector<2x16xf32>
    %60 = vector.shape_cast %59 : vector<2x16xf32> to vector<2x16x1xf32>
    %61 = vector.broadcast %60 : vector<2x16x1xf32> to vector<2x16x16xf32>
    %62 = arith.subf %58, %61 : vector<2x16x16xf32>
    %63 = math.exp %62 : vector<2x16x16xf32>
    %cst_21 = arith.constant dense<0.000000e+00> : vector<2x16xf32>
    %64 = vector.multi_reduction <add>, %63, %cst_21 [2] : vector<2x16x16xf32> to vector<2x16xf32>
    %65 = vector.shape_cast %64 : vector<2x16xf32> to vector<2x16x1xf32>
    %66 = tpu.reciprocal %65 {approx = true} : vector<2x16x1xf32> -> vector<2x16x1xf32>
    %67 = vector.broadcast %66 : vector<2x16x1xf32> to vector<2x16x16xf32>
    %68 = arith.mulf %63, %67 : vector<2x16x16xf32>
    %69 = arith.truncf %68 : vector<2x16x16xf32> to vector<2x16x16xbf16>
    %70 = vector.extract_strided_slice %20 {offsets = [0, 0, 16], sizes = [2, 16, 8], strides = [1, 1, 1]} : vector<2x16x128xbf16> to vector<2x16x8xbf16>
    "tpu.trace_start"() <{level = 10 : i32, message = "bqk,bkd->bqd"}> : () -> ()
    %cst_22 = arith.constant dense<0.000000e+00> : vector<2x16x8xf32>
    %71 = tpu.matmul %69, %70, %cst_22 {dimension_numbers = #tpu.dot_dimension_numbers<[2], [1], [1], [2], [0, 0, 0, 1, 1, 2], [0], [0]>} : vector<2x16x16xbf16>, vector<2x16x8xbf16>, vector<2x16x8xf32> -> vector<2x16x8xf32>
    "tpu.trace_stop"() : () -> ()
    %72 = vector.extract_strided_slice %18 {offsets = [0, 0, 24], sizes = [2, 16, 8], strides = [1, 1, 1]} : vector<2x16x128xbf16> to vector<2x16x8xbf16>
    %73 = vector.extract_strided_slice %19 {offsets = [0, 0, 24], sizes = [2, 16, 8], strides = [1, 1, 1]} : vector<2x16x128xbf16> to vector<2x16x8xbf16>
    "tpu.trace_start"() <{level = 10 : i32, message = "bqd,bkd->bqk"}> : () -> ()
    %cst_23 = arith.constant dense<0.000000e+00> : vector<2x16x16xf32>
    %74 = tpu.matmul %72, %73, %cst_23 {dimension_numbers = #tpu.dot_dimension_numbers<[2], [2], [1], [1], [0, 0, 0, 1, 1, 1], [0], [0]>} : vector<2x16x8xbf16>, vector<2x16x8xbf16>, vector<2x16x16xf32> -> vector<2x16x16xf32>
    "tpu.trace_stop"() : () -> ()
    %75 = arith.addf %74, %1 : vector<2x16x16xf32>
    %cst_24 = arith.constant dense<0xFF800000> : vector<2x16xf32>
    %76 = vector.multi_reduction <maximumf>, %75, %cst_24 [2] : vector<2x16x16xf32> to vector<2x16xf32>
    %77 = vector.shape_cast %76 : vector<2x16xf32> to vector<2x16x1xf32>
    %78 = vector.broadcast %77 : vector<2x16x1xf32> to vector<2x16x16xf32>
    %79 = arith.subf %75, %78 : vector<2x16x16xf32>
    %80 = math.exp %79 : vector<2x16x16xf32>
    %cst_25 = arith.constant dense<0.000000e+00> : vector<2x16xf32>
    %81 = vector.multi_reduction <add>, %80, %cst_25 [2] : vector<2x16x16xf32> to vector<2x16xf32>
    %82 = vector.shape_cast %81 : vector<2x16xf32> to vector<2x16x1xf32>
    %83 = tpu.reciprocal %82 {approx = true} : vector<2x16x1xf32> -> vector<2x16x1xf32>
    %84 = vector.broadcast %83 : vector<2x16x1xf32> to vector<2x16x16xf32>
    %85 = arith.mulf %80, %84 : vector<2x16x16xf32>
    %86 = arith.truncf %85 : vector<2x16x16xf32> to vector<2x16x16xbf16>
    %87 = vector.extract_strided_slice %20 {offsets = [0, 0, 24], sizes = [2, 16, 8], strides = [1, 1, 1]} : vector<2x16x128xbf16> to vector<2x16x8xbf16>
    "tpu.trace_start"() <{level = 10 : i32, message = "bqk,bkd->bqd"}> : () -> ()
    %cst_26 = arith.constant dense<0.000000e+00> : vector<2x16x8xf32>
    %88 = tpu.matmul %86, %87, %cst_26 {dimension_numbers = #tpu.dot_dimension_numbers<[2], [1], [1], [2], [0, 0, 0, 1, 1, 2], [0], [0]>} : vector<2x16x16xbf16>, vector<2x16x8xbf16>, vector<2x16x8xf32> -> vector<2x16x8xf32>
    "tpu.trace_stop"() : () -> ()
    %89 = tpu.concatenate %37, %54, %71, %88 in 2 : vector<2x16x8xf32>, vector<2x16x8xf32>, vector<2x16x8xf32>, vector<2x16x8xf32> -> vector<2x16x32xf32>
    %90 = vector.shape_cast %89 : vector<2x16x32xf32> to vector<32x32xf32>
    %91 = arith.truncf %90 : vector<32x32xf32> to vector<32x32xbf16>
    %c0_27 = arith.constant 0 : index
    %c0_28 = arith.constant 0 : index
    %c0_29 = arith.constant 0 : index
    %92 = vector.load %arg4[%c0_27, %c0_28, %c0_29] : memref<2x32x128xbf16, #tpu.memory_space<vmem>>, vector<1x32x128xbf16>
    %93 = vector.shape_cast %92 : vector<1x32x128xbf16> to vector<32x128xbf16>
    %cst_30 = arith.constant dense<0.000000e+00> : vector<32x128xf32>
    %94 = tpu.matmul %91, %93, %cst_30 {dimension_numbers = #tpu.dot_dimension_numbers<[1], [0], [0], [1], [0, 0, 1, 1], [], []>} : vector<32x32xbf16>, vector<32x128xbf16>, vector<32x128xf32> -> vector<32x128xf32>
    %c0_31 = arith.constant 0 : index
    %c0_32 = arith.constant 0 : index
    %c0_33 = arith.constant 0 : index
    %95 = vector.load %arg5[%c0_31, %c0_32, %c0_33] : memref<2x1x128xf32, #tpu.memory_space<vmem>>, vector<1x1x128xf32>
    %96 = vector.shape_cast %95 : vector<1x1x128xf32> to vector<1x128xf32>
    %97 = vector.broadcast %96 : vector<1x128xf32> to vector<32x128xf32>
    %98 = arith.addf %94, %97 : vector<32x128xf32>
    %99 = arith.addf %0, %98 : vector<32x128xf32>
    %c0_34 = arith.constant 0 : index
    %c0_35 = arith.constant 0 : index
    %c0_36 = arith.constant 0 : index
    %100 = vector.load %arg6[%c0_34, %c0_35, %c0_36] : memref<2x1x128xf32, #tpu.memory_space<vmem>>, vector<1x1x128xf32>
    %101 = vector.shape_cast %100 : vector<1x1x128xf32> to vector<1x128xf32>
    %c0_37 = arith.constant 0 : index
    %c0_38 = arith.constant 0 : index
    %c0_39 = arith.constant 0 : index
    %102 = vector.load %arg7[%c0_37, %c0_38, %c0_39] : memref<2x1x128xf32, #tpu.memory_space<vmem>>, vector<1x1x128xf32>
    %103 = vector.shape_cast %102 : vector<1x1x128xf32> to vector<1x128xf32>
    %cst_40 = arith.constant dense<0.000000e+00> : vector<32xf32>
    %104 = vector.multi_reduction <add>, %99, %cst_40 [1] : vector<32x128xf32> to vector<32xf32>
    %105 = vector.shape_cast %104 : vector<32xf32> to vector<32x1xf32>
    %cst_41 = arith.constant 3.125000e-02 : f32
    %106 = vector.broadcast %cst_41 : f32 to vector<32x1xf32>
    %107 = arith.mulf %105, %106 : vector<32x1xf32>
    %108 = arith.mulf %99, %99 : vector<32x128xf32>
    %cst_42 = arith.constant dense<0.000000e+00> : vector<32xf32>
    %109 = vector.multi_reduction <add>, %108, %cst_42 [1] : vector<32x128xf32> to vector<32xf32>
    %110 = vector.shape_cast %109 : vector<32xf32> to vector<32x1xf32>
    %cst_43 = arith.constant 3.125000e-02 : f32
    %111 = vector.broadcast %cst_43 : f32 to vector<32x1xf32>
    %112 = arith.mulf %110, %111 : vector<32x1xf32>
    %113 = arith.mulf %107, %107 : vector<32x1xf32>
    %114 = arith.subf %112, %113 : vector<32x1xf32>
    %115 = vector.broadcast %107 : vector<32x1xf32> to vector<32x128xf32>
    %116 = arith.subf %99, %115 : vector<32x128xf32>
    %cst_44 = arith.constant 9.99999996E-13 : f32
    %117 = vector.broadcast %cst_44 : f32 to vector<32x1xf32>
    %118 = arith.addf %114, %117 : vector<32x1xf32>
    %119 = math.rsqrt %118 : vector<32x1xf32>
    %120 = vector.broadcast %119 : vector<32x1xf32> to vector<32x128xf32>
    %121 = arith.mulf %116, %120 : vector<32x128xf32>
    %122 = vector.broadcast %101 : vector<1x128xf32> to vector<32x128xf32>
    %123 = arith.mulf %121, %122 : vector<32x128xf32>
    %124 = vector.broadcast %103 : vector<1x128xf32> to vector<32x128xf32>
    %125 = arith.addf %123, %124 : vector<32x128xf32>
    %126 = arith.truncf %125 : vector<32x128xf32> to vector<32x128xbf16>
    %c0_45 = arith.constant 0 : index
    %c0_46 = arith.constant 0 : index
    %c0_47 = arith.constant 0 : index
    %127 = vector.load %arg8[%c0_45, %c0_46, %c0_47] : memref<2x128x128xbf16, #tpu.memory_space<vmem>>, vector<1x128x128xbf16>
    %128 = vector.shape_cast %127 : vector<1x128x128xbf16> to vector<128x128xbf16>
    %cst_48 = arith.constant dense<0.000000e+00> : vector<32x128xf32>
    %129 = tpu.matmul %126, %128, %cst_48 {dimension_numbers = #tpu.dot_dimension_numbers<[1], [0], [0], [1], [0, 0, 1, 1], [], []>} : vector<32x128xbf16>, vector<128x128xbf16>, vector<32x128xf32> -> vector<32x128xf32>
    %c0_49 = arith.constant 0 : index
    %c0_50 = arith.constant 0 : index
    %c0_51 = arith.constant 0 : index
    %130 = vector.load %arg9[%c0_49, %c0_50, %c0_51] : memref<2x1x128xf32, #tpu.memory_space<vmem>>, vector<1x1x128xf32>
    %131 = vector.shape_cast %130 : vector<1x1x128xf32> to vector<1x128xf32>
    %132 = vector.broadcast %131 : vector<1x128xf32> to vector<32x128xf32>
    %133 = arith.addf %129, %132 : vector<32x128xf32>
    %134 = arith.mulf %133, %133 : vector<32x128xf32>
    %135 = arith.mulf %133, %134 : vector<32x128xf32>
    %cst_52 = arith.constant 4.471500e-02 : f32
    %136 = vector.broadcast %cst_52 : f32 to vector<32x128xf32>
    %137 = arith.mulf %136, %135 : vector<32x128xf32>
    %138 = arith.addf %133, %137 : vector<32x128xf32>
    %cst_53 = arith.constant 0.797884583 : f32
    %139 = vector.broadcast %cst_53 : f32 to vector<32x128xf32>
    %140 = arith.mulf %139, %138 : vector<32x128xf32>
    %141 = math.tanh %140 : vector<32x128xf32>
    %cst_54 = arith.constant 1.000000e+00 : f32
    %142 = vector.broadcast %cst_54 : f32 to vector<32x128xf32>
    %143 = arith.addf %142, %141 : vector<32x128xf32>
    %cst_55 = arith.constant 5.000000e-01 : f32
    %144 = vector.broadcast %cst_55 : f32 to vector<32x128xf32>
    %145 = arith.mulf %144, %143 : vector<32x128xf32>
    %146 = arith.mulf %133, %145 : vector<32x128xf32>
    %147 = arith.truncf %146 : vector<32x128xf32> to vector<32x128xbf16>
    %c0_56 = arith.constant 0 : index
    %c0_57 = arith.constant 0 : index
    %c0_58 = arith.constant 0 : index
    %148 = vector.load %arg10[%c0_56, %c0_57, %c0_58] : memref<2x128x128xbf16, #tpu.memory_space<vmem>>, vector<1x128x128xbf16>
    %149 = vector.shape_cast %148 : vector<1x128x128xbf16> to vector<128x128xbf16>
    %cst_59 = arith.constant dense<0.000000e+00> : vector<32x128xf32>
    %150 = tpu.matmul %147, %149, %cst_59 {dimension_numbers = #tpu.dot_dimension_numbers<[1], [0], [0], [1], [0, 0, 1, 1], [], []>} : vector<32x128xbf16>, vector<128x128xbf16>, vector<32x128xf32> -> vector<32x128xf32>
    %c0_60 = arith.constant 0 : index
    %c0_61 = arith.constant 0 : index
    %c0_62 = arith.constant 0 : index
    %151 = vector.load %arg11[%c0_60, %c0_61, %c0_62] : memref<2x1x128xf32, #tpu.memory_space<vmem>>, vector<1x1x128xf32>
    %152 = vector.shape_cast %151 : vector<1x1x128xf32> to vector<1x128xf32>
    %153 = vector.broadcast %152 : vector<1x128xf32> to vector<32x128xf32>
    %154 = arith.addf %150, %153 : vector<32x128xf32>
    %155 = arith.addf %125, %154 : vector<32x128xf32>
    %c0_63 = arith.constant 0 : index
    %c0_64 = arith.constant 0 : index
    %c0_65 = arith.constant 0 : index
    %156 = vector.load %arg12[%c0_63, %c0_64, %c0_65] : memref<2x1x128xf32, #tpu.memory_space<vmem>>, vector<1x1x128xf32>
    %157 = vector.shape_cast %156 : vector<1x1x128xf32> to vector<1x128xf32>
    %c0_66 = arith.constant 0 : index
    %c0_67 = arith.constant 0 : index
    %c0_68 = arith.constant 0 : index
    %158 = vector.load %arg13[%c0_66, %c0_67, %c0_68] : memref<2x1x128xf32, #tpu.memory_space<vmem>>, vector<1x1x128xf32>
    %159 = vector.shape_cast %158 : vector<1x1x128xf32> to vector<1x128xf32>
    %cst_69 = arith.constant dense<0.000000e+00> : vector<32xf32>
    %160 = vector.multi_reduction <add>, %155, %cst_69 [1] : vector<32x128xf32> to vector<32xf32>
    %161 = vector.shape_cast %160 : vector<32xf32> to vector<32x1xf32>
    %cst_70 = arith.constant 3.125000e-02 : f32
    %162 = vector.broadcast %cst_70 : f32 to vector<32x1xf32>
    %163 = arith.mulf %161, %162 : vector<32x1xf32>
    %164 = arith.mulf %155, %155 : vector<32x128xf32>
    %cst_71 = arith.constant dense<0.000000e+00> : vector<32xf32>
    %165 = vector.multi_reduction <add>, %164, %cst_71 [1] : vector<32x128xf32> to vector<32xf32>
    %166 = vector.shape_cast %165 : vector<32xf32> to vector<32x1xf32>
    %cst_72 = arith.constant 3.125000e-02 : f32
    %167 = vector.broadcast %cst_72 : f32 to vector<32x1xf32>
    %168 = arith.mulf %166, %167 : vector<32x1xf32>
    %169 = arith.mulf %163, %163 : vector<32x1xf32>
    %170 = arith.subf %168, %169 : vector<32x1xf32>
    %171 = vector.broadcast %163 : vector<32x1xf32> to vector<32x128xf32>
    %172 = arith.subf %155, %171 : vector<32x128xf32>
    %cst_73 = arith.constant 9.99999996E-13 : f32
    %173 = vector.broadcast %cst_73 : f32 to vector<32x1xf32>
    %174 = arith.addf %170, %173 : vector<32x1xf32>
    %175 = math.rsqrt %174 : vector<32x1xf32>
    %176 = vector.broadcast %175 : vector<32x1xf32> to vector<32x128xf32>
    %177 = arith.mulf %172, %176 : vector<32x128xf32>
    %178 = vector.broadcast %157 : vector<1x128xf32> to vector<32x128xf32>
    %179 = arith.mulf %177, %178 : vector<32x128xf32>
    %180 = vector.broadcast %159 : vector<1x128xf32> to vector<32x128xf32>
    %181 = arith.addf %179, %180 : vector<32x128xf32>
    %182 = arith.truncf %181 : vector<32x128xf32> to vector<32x128xbf16>
    %c1 = arith.constant 1 : index
    %c0_74 = arith.constant 0 : index
    %c0_75 = arith.constant 0 : index
    %183 = vector.load %arg2[%c1, %c0_74, %c0_75] : memref<2x128x384xbf16, #tpu.memory_space<vmem>>, vector<1x128x384xbf16>
    %184 = vector.shape_cast %183 : vector<1x128x384xbf16> to vector<128x384xbf16>
    %cst_76 = arith.constant dense<0.000000e+00> : vector<32x384xf32>
    %185 = tpu.matmul %182, %184, %cst_76 {dimension_numbers = #tpu.dot_dimension_numbers<[1], [0], [0], [1], [0, 0, 1, 1], [], []>} : vector<32x128xbf16>, vector<128x384xbf16>, vector<32x384xf32> -> vector<32x384xf32>
    %c1_77 = arith.constant 1 : index
    %c0_78 = arith.constant 0 : index
    %c0_79 = arith.constant 0 : index
    %186 = vector.load %arg3[%c1_77, %c0_78, %c0_79] : memref<2x1x384xf32, #tpu.memory_space<vmem>>, vector<1x1x384xf32>
    %187 = vector.shape_cast %186 : vector<1x1x384xf32> to vector<1x384xf32>
    %188 = vector.broadcast %187 : vector<1x384xf32> to vector<32x384xf32>
    %189 = arith.addf %185, %188 : vector<32x384xf32>
    %190 = vector.extract_strided_slice %189 {offsets = [0, 0], sizes = [32, 128], strides = [1, 1]} : vector<32x384xf32> to vector<32x128xf32>
    %cst_80 = arith.constant 0.353553385 : f32
    %191 = vector.broadcast %cst_80 : f32 to vector<32x128xf32>
    %192 = arith.mulf %190, %191 : vector<32x128xf32>
    %193 = vector.shape_cast %192 : vector<32x128xf32> to vector<2x16x128xf32>
    %194 = vector.extract_strided_slice %189 {offsets = [0, 128], sizes = [32, 128], strides = [1, 1]} : vector<32x384xf32> to vector<32x128xf32>
    %195 = vector.shape_cast %194 : vector<32x128xf32> to vector<2x16x128xf32>
    %196 = vector.extract_strided_slice %189 {offsets = [0, 256], sizes = [32, 128], strides = [1, 1]} : vector<32x384xf32> to vector<32x128xf32>
    %197 = vector.shape_cast %196 : vector<32x128xf32> to vector<2x16x128xf32>
    %198 = arith.truncf %193 : vector<2x16x128xf32> to vector<2x16x128xbf16>
    %199 = arith.truncf %195 : vector<2x16x128xf32> to vector<2x16x128xbf16>
    %200 = arith.truncf %197 : vector<2x16x128xf32> to vector<2x16x128xbf16>
    %201 = vector.extract_strided_slice %198 {offsets = [0, 0, 0], sizes = [2, 16, 8], strides = [1, 1, 1]} : vector<2x16x128xbf16> to vector<2x16x8xbf16>
    %202 = vector.extract_strided_slice %199 {offsets = [0, 0, 0], sizes = [2, 16, 8], strides = [1, 1, 1]} : vector<2x16x128xbf16> to vector<2x16x8xbf16>
    "tpu.trace_start"() <{level = 10 : i32, message = "bqd,bkd->bqk"}> : () -> ()
    %cst_81 = arith.constant dense<0.000000e+00> : vector<2x16x16xf32>
    %203 = tpu.matmul %201, %202, %cst_81 {dimension_numbers = #tpu.dot_dimension_numbers<[2], [2], [1], [1], [0, 0, 0, 1, 1, 1], [0], [0]>} : vector<2x16x8xbf16>, vector<2x16x8xbf16>, vector<2x16x16xf32> -> vector<2x16x16xf32>
    "tpu.trace_stop"() : () -> ()
    %204 = arith.addf %203, %1 : vector<2x16x16xf32>
    %cst_82 = arith.constant dense<0xFF800000> : vector<2x16xf32>
    %205 = vector.multi_reduction <maximumf>, %204, %cst_82 [2] : vector<2x16x16xf32> to vector<2x16xf32>
    %206 = vector.shape_cast %205 : vector<2x16xf32> to vector<2x16x1xf32>
    %207 = vector.broadcast %206 : vector<2x16x1xf32> to vector<2x16x16xf32>
    %208 = arith.subf %204, %207 : vector<2x16x16xf32>
    %209 = math.exp %208 : vector<2x16x16xf32>
    %cst_83 = arith.constant dense<0.000000e+00> : vector<2x16xf32>
    %210 = vector.multi_reduction <add>, %209, %cst_83 [2] : vector<2x16x16xf32> to vector<2x16xf32>
    %211 = vector.shape_cast %210 : vector<2x16xf32> to vector<2x16x1xf32>
    %212 = tpu.reciprocal %211 {approx = true} : vector<2x16x1xf32> -> vector<2x16x1xf32>
    %213 = vector.broadcast %212 : vector<2x16x1xf32> to vector<2x16x16xf32>
    %214 = arith.mulf %209, %213 : vector<2x16x16xf32>
    %215 = arith.truncf %214 : vector<2x16x16xf32> to vector<2x16x16xbf16>
    %216 = vector.extract_strided_slice %200 {offsets = [0, 0, 0], sizes = [2, 16, 8], strides = [1, 1, 1]} : vector<2x16x128xbf16> to vector<2x16x8xbf16>
    "tpu.trace_start"() <{level = 10 : i32, message = "bqk,bkd->bqd"}> : () -> ()
    %cst_84 = arith.constant dense<0.000000e+00> : vector<2x16x8xf32>
    %217 = tpu.matmul %215, %216, %cst_84 {dimension_numbers = #tpu.dot_dimension_numbers<[2], [1], [1], [2], [0, 0, 0, 1, 1, 2], [0], [0]>} : vector<2x16x16xbf16>, vector<2x16x8xbf16>, vector<2x16x8xf32> -> vector<2x16x8xf32>
    "tpu.trace_stop"() : () -> ()
    %218 = vector.extract_strided_slice %198 {offsets = [0, 0, 8], sizes = [2, 16, 8], strides = [1, 1, 1]} : vector<2x16x128xbf16> to vector<2x16x8xbf16>
    %219 = vector.extract_strided_slice %199 {offsets = [0, 0, 8], sizes = [2, 16, 8], strides = [1, 1, 1]} : vector<2x16x128xbf16> to vector<2x16x8xbf16>
    "tpu.trace_start"() <{level = 10 : i32, message = "bqd,bkd->bqk"}> : () -> ()
    %cst_85 = arith.constant dense<0.000000e+00> : vector<2x16x16xf32>
    %220 = tpu.matmul %218, %219, %cst_85 {dimension_numbers = #tpu.dot_dimension_numbers<[2], [2], [1], [1], [0, 0, 0, 1, 1, 1], [0], [0]>} : vector<2x16x8xbf16>, vector<2x16x8xbf16>, vector<2x16x16xf32> -> vector<2x16x16xf32>
    "tpu.trace_stop"() : () -> ()
    %221 = arith.addf %220, %1 : vector<2x16x16xf32>
    %cst_86 = arith.constant dense<0xFF800000> : vector<2x16xf32>
    %222 = vector.multi_reduction <maximumf>, %221, %cst_86 [2] : vector<2x16x16xf32> to vector<2x16xf32>
    %223 = vector.shape_cast %222 : vector<2x16xf32> to vector<2x16x1xf32>
    %224 = vector.broadcast %223 : vector<2x16x1xf32> to vector<2x16x16xf32>
    %225 = arith.subf %221, %224 : vector<2x16x16xf32>
    %226 = math.exp %225 : vector<2x16x16xf32>
    %cst_87 = arith.constant dense<0.000000e+00> : vector<2x16xf32>
    %227 = vector.multi_reduction <add>, %226, %cst_87 [2] : vector<2x16x16xf32> to vector<2x16xf32>
    %228 = vector.shape_cast %227 : vector<2x16xf32> to vector<2x16x1xf32>
    %229 = tpu.reciprocal %228 {approx = true} : vector<2x16x1xf32> -> vector<2x16x1xf32>
    %230 = vector.broadcast %229 : vector<2x16x1xf32> to vector<2x16x16xf32>
    %231 = arith.mulf %226, %230 : vector<2x16x16xf32>
    %232 = arith.truncf %231 : vector<2x16x16xf32> to vector<2x16x16xbf16>
    %233 = vector.extract_strided_slice %200 {offsets = [0, 0, 8], sizes = [2, 16, 8], strides = [1, 1, 1]} : vector<2x16x128xbf16> to vector<2x16x8xbf16>
    "tpu.trace_start"() <{level = 10 : i32, message = "bqk,bkd->bqd"}> : () -> ()
    %cst_88 = arith.constant dense<0.000000e+00> : vector<2x16x8xf32>
    %234 = tpu.matmul %232, %233, %cst_88 {dimension_numbers = #tpu.dot_dimension_numbers<[2], [1], [1], [2], [0, 0, 0, 1, 1, 2], [0], [0]>} : vector<2x16x16xbf16>, vector<2x16x8xbf16>, vector<2x16x8xf32> -> vector<2x16x8xf32>
    "tpu.trace_stop"() : () -> ()
    %235 = vector.extract_strided_slice %198 {offsets = [0, 0, 16], sizes = [2, 16, 8], strides = [1, 1, 1]} : vector<2x16x128xbf16> to vector<2x16x8xbf16>
    %236 = vector.extract_strided_slice %199 {offsets = [0, 0, 16], sizes = [2, 16, 8], strides = [1, 1, 1]} : vector<2x16x128xbf16> to vector<2x16x8xbf16>
    "tpu.trace_start"() <{level = 10 : i32, message = "bqd,bkd->bqk"}> : () -> ()
    %cst_89 = arith.constant dense<0.000000e+00> : vector<2x16x16xf32>
    %237 = tpu.matmul %235, %236, %cst_89 {dimension_numbers = #tpu.dot_dimension_numbers<[2], [2], [1], [1], [0, 0, 0, 1, 1, 1], [0], [0]>} : vector<2x16x8xbf16>, vector<2x16x8xbf16>, vector<2x16x16xf32> -> vector<2x16x16xf32>
    "tpu.trace_stop"() : () -> ()
    %238 = arith.addf %237, %1 : vector<2x16x16xf32>
    %cst_90 = arith.constant dense<0xFF800000> : vector<2x16xf32>
    %239 = vector.multi_reduction <maximumf>, %238, %cst_90 [2] : vector<2x16x16xf32> to vector<2x16xf32>
    %240 = vector.shape_cast %239 : vector<2x16xf32> to vector<2x16x1xf32>
    %241 = vector.broadcast %240 : vector<2x16x1xf32> to vector<2x16x16xf32>
    %242 = arith.subf %238, %241 : vector<2x16x16xf32>
    %243 = math.exp %242 : vector<2x16x16xf32>
    %cst_91 = arith.constant dense<0.000000e+00> : vector<2x16xf32>
    %244 = vector.multi_reduction <add>, %243, %cst_91 [2] : vector<2x16x16xf32> to vector<2x16xf32>
    %245 = vector.shape_cast %244 : vector<2x16xf32> to vector<2x16x1xf32>
    %246 = tpu.reciprocal %245 {approx = true} : vector<2x16x1xf32> -> vector<2x16x1xf32>
    %247 = vector.broadcast %246 : vector<2x16x1xf32> to vector<2x16x16xf32>
    %248 = arith.mulf %243, %247 : vector<2x16x16xf32>
    %249 = arith.truncf %248 : vector<2x16x16xf32> to vector<2x16x16xbf16>
    %250 = vector.extract_strided_slice %200 {offsets = [0, 0, 16], sizes = [2, 16, 8], strides = [1, 1, 1]} : vector<2x16x128xbf16> to vector<2x16x8xbf16>
    "tpu.trace_start"() <{level = 10 : i32, message = "bqk,bkd->bqd"}> : () -> ()
    %cst_92 = arith.constant dense<0.000000e+00> : vector<2x16x8xf32>
    %251 = tpu.matmul %249, %250, %cst_92 {dimension_numbers = #tpu.dot_dimension_numbers<[2], [1], [1], [2], [0, 0, 0, 1, 1, 2], [0], [0]>} : vector<2x16x16xbf16>, vector<2x16x8xbf16>, vector<2x16x8xf32> -> vector<2x16x8xf32>
    "tpu.trace_stop"() : () -> ()
    %252 = vector.extract_strided_slice %198 {offsets = [0, 0, 24], sizes = [2, 16, 8], strides = [1, 1, 1]} : vector<2x16x128xbf16> to vector<2x16x8xbf16>
    %253 = vector.extract_strided_slice %199 {offsets = [0, 0, 24], sizes = [2, 16, 8], strides = [1, 1, 1]} : vector<2x16x128xbf16> to vector<2x16x8xbf16>
    "tpu.trace_start"() <{level = 10 : i32, message = "bqd,bkd->bqk"}> : () -> ()
    %cst_93 = arith.constant dense<0.000000e+00> : vector<2x16x16xf32>
    %254 = tpu.matmul %252, %253, %cst_93 {dimension_numbers = #tpu.dot_dimension_numbers<[2], [2], [1], [1], [0, 0, 0, 1, 1, 1], [0], [0]>} : vector<2x16x8xbf16>, vector<2x16x8xbf16>, vector<2x16x16xf32> -> vector<2x16x16xf32>
    "tpu.trace_stop"() : () -> ()
    %255 = arith.addf %254, %1 : vector<2x16x16xf32>
    %cst_94 = arith.constant dense<0xFF800000> : vector<2x16xf32>
    %256 = vector.multi_reduction <maximumf>, %255, %cst_94 [2] : vector<2x16x16xf32> to vector<2x16xf32>
    %257 = vector.shape_cast %256 : vector<2x16xf32> to vector<2x16x1xf32>
    %258 = vector.broadcast %257 : vector<2x16x1xf32> to vector<2x16x16xf32>
    %259 = arith.subf %255, %258 : vector<2x16x16xf32>
    %260 = math.exp %259 : vector<2x16x16xf32>
    %cst_95 = arith.constant dense<0.000000e+00> : vector<2x16xf32>
    %261 = vector.multi_reduction <add>, %260, %cst_95 [2] : vector<2x16x16xf32> to vector<2x16xf32>
    %262 = vector.shape_cast %261 : vector<2x16xf32> to vector<2x16x1xf32>
    %263 = tpu.reciprocal %262 {approx = true} : vector<2x16x1xf32> -> vector<2x16x1xf32>
    %264 = vector.broadcast %263 : vector<2x16x1xf32> to vector<2x16x16xf32>
    %265 = arith.mulf %260, %264 : vector<2x16x16xf32>
    %266 = arith.truncf %265 : vector<2x16x16xf32> to vector<2x16x16xbf16>
    %267 = vector.extract_strided_slice %200 {offsets = [0, 0, 24], sizes = [2, 16, 8], strides = [1, 1, 1]} : vector<2x16x128xbf16> to vector<2x16x8xbf16>
    "tpu.trace_start"() <{level = 10 : i32, message = "bqk,bkd->bqd"}> : () -> ()
    %cst_96 = arith.constant dense<0.000000e+00> : vector<2x16x8xf32>
    %268 = tpu.matmul %266, %267, %cst_96 {dimension_numbers = #tpu.dot_dimension_numbers<[2], [1], [1], [2], [0, 0, 0, 1, 1, 2], [0], [0]>} : vector<2x16x16xbf16>, vector<2x16x8xbf16>, vector<2x16x8xf32> -> vector<2x16x8xf32>
    "tpu.trace_stop"() : () -> ()
    %269 = tpu.concatenate %217, %234, %251, %268 in 2 : vector<2x16x8xf32>, vector<2x16x8xf32>, vector<2x16x8xf32>, vector<2x16x8xf32> -> vector<2x16x32xf32>
    %270 = vector.shape_cast %269 : vector<2x16x32xf32> to vector<32x32xf32>
    %271 = arith.truncf %270 : vector<32x32xf32> to vector<32x32xbf16>
    %c1_97 = arith.constant 1 : index
    %c0_98 = arith.constant 0 : index
    %c0_99 = arith.constant 0 : index
    %272 = vector.load %arg4[%c1_97, %c0_98, %c0_99] : memref<2x32x128xbf16, #tpu.memory_space<vmem>>, vector<1x32x128xbf16>
    %273 = vector.shape_cast %272 : vector<1x32x128xbf16> to vector<32x128xbf16>
    %cst_100 = arith.constant dense<0.000000e+00> : vector<32x128xf32>
    %274 = tpu.matmul %271, %273, %cst_100 {dimension_numbers = #tpu.dot_dimension_numbers<[1], [0], [0], [1], [0, 0, 1, 1], [], []>} : vector<32x32xbf16>, vector<32x128xbf16>, vector<32x128xf32> -> vector<32x128xf32>
    %c1_101 = arith.constant 1 : index
    %c0_102 = arith.constant 0 : index
    %c0_103 = arith.constant 0 : index
    %275 = vector.load %arg5[%c1_101, %c0_102, %c0_103] : memref<2x1x128xf32, #tpu.memory_space<vmem>>, vector<1x1x128xf32>
    %276 = vector.shape_cast %275 : vector<1x1x128xf32> to vector<1x128xf32>
    %277 = vector.broadcast %276 : vector<1x128xf32> to vector<32x128xf32>
    %278 = arith.addf %274, %277 : vector<32x128xf32>
    %279 = arith.addf %181, %278 : vector<32x128xf32>
    %c1_104 = arith.constant 1 : index
    %c0_105 = arith.constant 0 : index
    %c0_106 = arith.constant 0 : index
    %280 = vector.load %arg6[%c1_104, %c0_105, %c0_106] : memref<2x1x128xf32, #tpu.memory_space<vmem>>, vector<1x1x128xf32>
    %281 = vector.shape_cast %280 : vector<1x1x128xf32> to vector<1x128xf32>
    %c1_107 = arith.constant 1 : index
    %c0_108 = arith.constant 0 : index
    %c0_109 = arith.constant 0 : index
    %282 = vector.load %arg7[%c1_107, %c0_108, %c0_109] : memref<2x1x128xf32, #tpu.memory_space<vmem>>, vector<1x1x128xf32>
    %283 = vector.shape_cast %282 : vector<1x1x128xf32> to vector<1x128xf32>
    %cst_110 = arith.constant dense<0.000000e+00> : vector<32xf32>
    %284 = vector.multi_reduction <add>, %279, %cst_110 [1] : vector<32x128xf32> to vector<32xf32>
    %285 = vector.shape_cast %284 : vector<32xf32> to vector<32x1xf32>
    %cst_111 = arith.constant 3.125000e-02 : f32
    %286 = vector.broadcast %cst_111 : f32 to vector<32x1xf32>
    %287 = arith.mulf %285, %286 : vector<32x1xf32>
    %288 = arith.mulf %279, %279 : vector<32x128xf32>
    %cst_112 = arith.constant dense<0.000000e+00> : vector<32xf32>
    %289 = vector.multi_reduction <add>, %288, %cst_112 [1] : vector<32x128xf32> to vector<32xf32>
    %290 = vector.shape_cast %289 : vector<32xf32> to vector<32x1xf32>
    %cst_113 = arith.constant 3.125000e-02 : f32
    %291 = vector.broadcast %cst_113 : f32 to vector<32x1xf32>
    %292 = arith.mulf %290, %291 : vector<32x1xf32>
    %293 = arith.mulf %287, %287 : vector<32x1xf32>
    %294 = arith.subf %292, %293 : vector<32x1xf32>
    %295 = vector.broadcast %287 : vector<32x1xf32> to vector<32x128xf32>
    %296 = arith.subf %279, %295 : vector<32x128xf32>
    %cst_114 = arith.constant 9.99999996E-13 : f32
    %297 = vector.broadcast %cst_114 : f32 to vector<32x1xf32>
    %298 = arith.addf %294, %297 : vector<32x1xf32>
    %299 = math.rsqrt %298 : vector<32x1xf32>
    %300 = vector.broadcast %299 : vector<32x1xf32> to vector<32x128xf32>
    %301 = arith.mulf %296, %300 : vector<32x128xf32>
    %302 = vector.broadcast %281 : vector<1x128xf32> to vector<32x128xf32>
    %303 = arith.mulf %301, %302 : vector<32x128xf32>
    %304 = vector.broadcast %283 : vector<1x128xf32> to vector<32x128xf32>
    %305 = arith.addf %303, %304 : vector<32x128xf32>
    %306 = arith.truncf %305 : vector<32x128xf32> to vector<32x128xbf16>
    %c1_115 = arith.constant 1 : index
    %c0_116 = arith.constant 0 : index
    %c0_117 = arith.constant 0 : index
    %307 = vector.load %arg8[%c1_115, %c0_116, %c0_117] : memref<2x128x128xbf16, #tpu.memory_space<vmem>>, vector<1x128x128xbf16>
    %308 = vector.shape_cast %307 : vector<1x128x128xbf16> to vector<128x128xbf16>
    %cst_118 = arith.constant dense<0.000000e+00> : vector<32x128xf32>
    %309 = tpu.matmul %306, %308, %cst_118 {dimension_numbers = #tpu.dot_dimension_numbers<[1], [0], [0], [1], [0, 0, 1, 1], [], []>} : vector<32x128xbf16>, vector<128x128xbf16>, vector<32x128xf32> -> vector<32x128xf32>
    %c1_119 = arith.constant 1 : index
    %c0_120 = arith.constant 0 : index
    %c0_121 = arith.constant 0 : index
    %310 = vector.load %arg9[%c1_119, %c0_120, %c0_121] : memref<2x1x128xf32, #tpu.memory_space<vmem>>, vector<1x1x128xf32>
    %311 = vector.shape_cast %310 : vector<1x1x128xf32> to vector<1x128xf32>
    %312 = vector.broadcast %311 : vector<1x128xf32> to vector<32x128xf32>
    %313 = arith.addf %309, %312 : vector<32x128xf32>
    %314 = arith.mulf %313, %313 : vector<32x128xf32>
    %315 = arith.mulf %313, %314 : vector<32x128xf32>
    %cst_122 = arith.constant 4.471500e-02 : f32
    %316 = vector.broadcast %cst_122 : f32 to vector<32x128xf32>
    %317 = arith.mulf %316, %315 : vector<32x128xf32>
    %318 = arith.addf %313, %317 : vector<32x128xf32>
    %cst_123 = arith.constant 0.797884583 : f32
    %319 = vector.broadcast %cst_123 : f32 to vector<32x128xf32>
    %320 = arith.mulf %319, %318 : vector<32x128xf32>
    %321 = math.tanh %320 : vector<32x128xf32>
    %cst_124 = arith.constant 1.000000e+00 : f32
    %322 = vector.broadcast %cst_124 : f32 to vector<32x128xf32>
    %323 = arith.addf %322, %321 : vector<32x128xf32>
    %cst_125 = arith.constant 5.000000e-01 : f32
    %324 = vector.broadcast %cst_125 : f32 to vector<32x128xf32>
    %325 = arith.mulf %324, %323 : vector<32x128xf32>
    %326 = arith.mulf %313, %325 : vector<32x128xf32>
    %327 = arith.truncf %326 : vector<32x128xf32> to vector<32x128xbf16>
    %c1_126 = arith.constant 1 : index
    %c0_127 = arith.constant 0 : index
    %c0_128 = arith.constant 0 : index
    %328 = vector.load %arg10[%c1_126, %c0_127, %c0_128] : memref<2x128x128xbf16, #tpu.memory_space<vmem>>, vector<1x128x128xbf16>
    %329 = vector.shape_cast %328 : vector<1x128x128xbf16> to vector<128x128xbf16>
    %cst_129 = arith.constant dense<0.000000e+00> : vector<32x128xf32>
    %330 = tpu.matmul %327, %329, %cst_129 {dimension_numbers = #tpu.dot_dimension_numbers<[1], [0], [0], [1], [0, 0, 1, 1], [], []>} : vector<32x128xbf16>, vector<128x128xbf16>, vector<32x128xf32> -> vector<32x128xf32>
    %c1_130 = arith.constant 1 : index
    %c0_131 = arith.constant 0 : index
    %c0_132 = arith.constant 0 : index
    %331 = vector.load %arg11[%c1_130, %c0_131, %c0_132] : memref<2x1x128xf32, #tpu.memory_space<vmem>>, vector<1x1x128xf32>
    %332 = vector.shape_cast %331 : vector<1x1x128xf32> to vector<1x128xf32>
    %333 = vector.broadcast %332 : vector<1x128xf32> to vector<32x128xf32>
    %334 = arith.addf %330, %333 : vector<32x128xf32>
    %335 = arith.addf %305, %334 : vector<32x128xf32>
    %c1_133 = arith.constant 1 : index
    %c0_134 = arith.constant 0 : index
    %c0_135 = arith.constant 0 : index
    %336 = vector.load %arg12[%c1_133, %c0_134, %c0_135] : memref<2x1x128xf32, #tpu.memory_space<vmem>>, vector<1x1x128xf32>
    %337 = vector.shape_cast %336 : vector<1x1x128xf32> to vector<1x128xf32>
    %c1_136 = arith.constant 1 : index
    %c0_137 = arith.constant 0 : index
    %c0_138 = arith.constant 0 : index
    %338 = vector.load %arg13[%c1_136, %c0_137, %c0_138] : memref<2x1x128xf32, #tpu.memory_space<vmem>>, vector<1x1x128xf32>
    %339 = vector.shape_cast %338 : vector<1x1x128xf32> to vector<1x128xf32>
    %cst_139 = arith.constant dense<0.000000e+00> : vector<32xf32>
    %340 = vector.multi_reduction <add>, %335, %cst_139 [1] : vector<32x128xf32> to vector<32xf32>
    %341 = vector.shape_cast %340 : vector<32xf32> to vector<32x1xf32>
    %cst_140 = arith.constant 3.125000e-02 : f32
    %342 = vector.broadcast %cst_140 : f32 to vector<32x1xf32>
    %343 = arith.mulf %341, %342 : vector<32x1xf32>
    %344 = arith.mulf %335, %335 : vector<32x128xf32>
    %cst_141 = arith.constant dense<0.000000e+00> : vector<32xf32>
    %345 = vector.multi_reduction <add>, %344, %cst_141 [1] : vector<32x128xf32> to vector<32xf32>
    %346 = vector.shape_cast %345 : vector<32xf32> to vector<32x1xf32>
    %cst_142 = arith.constant 3.125000e-02 : f32
    %347 = vector.broadcast %cst_142 : f32 to vector<32x1xf32>
    %348 = arith.mulf %346, %347 : vector<32x1xf32>
    %349 = arith.mulf %343, %343 : vector<32x1xf32>
    %350 = arith.subf %348, %349 : vector<32x1xf32>
    %351 = vector.broadcast %343 : vector<32x1xf32> to vector<32x128xf32>
    %352 = arith.subf %335, %351 : vector<32x128xf32>
    %cst_143 = arith.constant 9.99999996E-13 : f32
    %353 = vector.broadcast %cst_143 : f32 to vector<32x1xf32>
    %354 = arith.addf %350, %353 : vector<32x1xf32>
    %355 = math.rsqrt %354 : vector<32x1xf32>
    %356 = vector.broadcast %355 : vector<32x1xf32> to vector<32x128xf32>
    %357 = arith.mulf %352, %356 : vector<32x128xf32>
    %358 = vector.broadcast %337 : vector<1x128xf32> to vector<32x128xf32>
    %359 = arith.mulf %357, %358 : vector<32x128xf32>
    %360 = vector.broadcast %339 : vector<1x128xf32> to vector<32x128xf32>
    %361 = arith.addf %359, %360 : vector<32x128xf32>
    %c0_144 = arith.constant 0 : index
    %c0_145 = arith.constant 0 : index
    %362 = vector.load %arg14[%c0_144, %c0_145] : memref<32x128xf32, #tpu.memory_space<vmem>>, vector<32x128xf32>
    tpu.vector_store %arg14[%c0_144, %c0_145], %361 {strides = array<i32>} : memref<32x128xf32, #tpu.memory_space<vmem>>, vector<32x128xf32>,
    return
  }
}

</mosaic_0001>

<bundles_post_ra>
// kernel: bert_encoder_forward.1
= control target key start
LH: loop header
LB: loop body
LE: loop exit
PB: predicated region body
PF: predicated region fallthrough
CT: control target
= control target key end

     0   :  { %v4757_v1 = vmov 0   ;;  %v4758_v31 = vmov 0.0   ;;  %vm4759_vm0 = vmmov 0   ;;  %v92_v32 = vlaneseq  ;;  %s4760_s15 = smov 120   ;;  %s4761_s16 = smov 112   ;;  %s5821_s2 = inlined_call_operand.vmem [shape: bf16[2,128,384], index: 2, kind: input, shape index: {}]   ;;  %s5822_s0 = inlined_call_operand.vmem [shape: f32[32,128], index: 0, kind: input, shape index: {}]   ;;  %s5823_s3 = inlined_call_operand.vmem [shape: f32[2,1,384], index: 3, kind: input, shape index: {}]   ;;  %s5824_s1 = inlined_call_operand.vmem [shape: f32[2,16,16], index: 1, kind: input, shape index: {}]   ;;  %s5825_s4 = inlined_call_operand.vmem [shape: bf16[2,32,128], index: 4, kind: input, shape index: {}]   ;;  %s5826_s5 = inlined_call_operand.vmem [shape: f32[2,1,128], index: 5, kind: input, shape index: {}, may-alias: {5,7,11,13}]   ;;  %s5827_s8 = inlined_call_operand.vmem [shape: bf16[2,128,128], index: 8, kind: input, shape index: {}]   ;;  %s5828_s6 = inlined_call_operand.vmem [shape: f32[2,1,128], index: 6, kind: input, shape index: {}, may-alias: {6,12}]   ;;  %s5829_s7 = inlined_call_operand.vmem [shape: f32[2,1,128], index: 7, kind: input, shape index: {}, may-alias: {5,7,11,13}]   ;;  %s5830_s10 = inlined_call_operand.vmem [shape: bf16[2,128,128], index: 10, kind: input, shape index: {}]   ;;  %s5831_s9 = inlined_call_operand.vmem [shape: f32[2,1,128], index: 9, kind: input, shape index: {}]   ;;  %s5832_s11 = inlined_call_operand.vmem [shape: f32[2,1,128], index: 11, kind: input, shape index: {}, may-alias: {5,7,11,13}]   ;;  %s5833_s12 = inlined_call_operand.vmem [shape: f32[2,1,128], index: 12, kind: input, shape index: {}, may-alias: {6,12}]   ;;  %s5834_s13 = inlined_call_operand.vmem [shape: f32[2,1,128], index: 13, kind: input, shape index: {}, may-alias: {5,7,11,13}]   ;;  %s5835_s14 = inlined_call_operand.vmem [shape: f32[32,128], index: 14, kind: output, shape index: {}]  }
   0x1   :  { %v4473_v0 = vld [vmem:[%s5821_s2 + $0xac] ss:$12 sps:$4 sm:$0xff]   ;;  %267 = vmatprep.mubr.bf16.mxu0 %v4757_v1  ;;  %v4475_v2 = vld [vmem:[%s5821_s2 + $0xa8] ss:$12 sps:$4 sm:$0xff]   ;;  %v4478_v4 = vld [vmem:[%s5821_s2 + $0x90] ss:$12 sps:$4 sm:$0xff]  }
   0x2   :  { %235 = vmatprep.subr.bf16.mxu0 %v4473_v0  ;;  %v4476_v3 = vld [vmem:[%s5821_s2 + $0x94] ss:$12 sps:$4 sm:$0xff]   ;;  %v4479_v5 = vld [vmem:[%s5821_s2 + $0x7c] ss:$12 sps:$4 sm:$0xff]   ;;  %v4481_v6 = vld [vmem:[%s5821_s2 + $0x78] ss:$12 sps:$4 sm:$0xff]  }
   0x3   :  { %236 = vmatpush1.bf16.msra.mxu0 %v4475_v2  ;;  %v4482_v7 = vld [vmem:[%s5821_s2 + $0x64] ss:$12 sps:$4 sm:$0xff]   ;;  %v4484_v9 = vld [vmem:[%s5821_s2 + $0x60] ss:$12 sps:$4 sm:$0xff]   ;;  %v4487_v15 = vld [vmem:[%s5821_s2 + $0x48] ss:$12 sps:$4 sm:$0xff]  }
   0x4   :  { %237 = vmatprep.subr.bf16.mxu0 %v4476_v3  ;;  %v48_v8 = vld [vmem:[%s5822_s0] sm:$0xff]  ;;  %v4485_v10 = vld [vmem:[%s5821_s2 + $0x4c] ss:$12 sps:$4 sm:$0xff]   ;;  %v4497_v13 = vld [vmem:[%s5821_s2 + $0xb0] ss:$12 sps:$4 sm:$0xff]   ;;  %v4933_v33 = vshrl.u32 %v92_v32, 7 }
   0x5   :  { %v49_v11 = vld [vmem:[%s5822_s0 + $0x8] sm:$0xff]  ;;  %v4498_v14 = vld [vmem:[%s5821_s2 + $0x98] ss:$12 sps:$4 sm:$0xff]   ;;  %4076 = vmatprep.subr.bf16.mxu1 %v4497_v13  ;;  %v4488_v16 = vld [vmem:[%s5821_s2 + $0x34] ss:$12 sps:$4 sm:$0xff]   ;;  %vm347_vm1 = vcmask 64512  }
   0x6   :  { %v56_v12 = vpack.c.bf16 %v49_v11, %v48_v8  ;;  %4077 = vmatpush3.bf16.msra.mxu1 %v4497_v13  ;;  %v4499_v17 = vld [vmem:[%s5821_s2 + $0x80] ss:$12 sps:$4 sm:$0xff]   ;;  %v4490_v18 = vld [vmem:[%s5821_s2 + $0x30] ss:$12 sps:$4 sm:$0xff]   ;;  %v4500_v20 = vld [vmem:[%s5821_s2 + $0x68] ss:$12 sps:$4 sm:$0xff]  }
   0x7   :  { %238 = vmatpush1.bf16.msra.mxu0 %v4478_v4  ;;  %4078 = vmatprep.subr.bf16.mxu1 %v4498_v14  ;;  %v4491_v19 = vld [vmem:[%s5821_s2 + $0x1c] ss:$12 sps:$4 sm:$0xff]   ;;  %v4493_v21 = vld [vmem:[%s5821_s2 + $0x18] ss:$12 sps:$4 sm:$0xff]   ;;  %v4496_v24 = vld [vmem:[%s5821_s2] ss:$12 sps:$4 sm:$0xff]  }
   0x8   :  { %239 = vmatprep.subr.bf16.mxu0 %v4479_v5  ;;  %4092 = vmatprep.mubr.bf16.mxu1 %v56_v12  ;;  %v4494_v22 = vld [vmem:[%s5821_s2 + $0x4] ss:$12 sps:$4 sm:$0xff]   ;;  %v4503_v26 = vld [vmem:[%s5821_s2 + $0x20] ss:$12 sps:$4 sm:$0xff]   ;;  %v51_v28 = vld [vmem:[%s5822_s0 + $0x18] sm:$0xff]  ;;  %v98_v34 = vsub.s32 1, %v4933_v33 }
   0x9   :  { %v4501_v23 = vld [vmem:[%s5821_s2 + $0x50] ss:$12 sps:$4 sm:$0xff]   ;;  %v4502_v25 = vld [vmem:[%s5821_s2 + $0x38] ss:$12 sps:$4 sm:$0xff]   ;;  %v4504_v30 = vld [vmem:[%s5821_s2 + $0x8] ss:$12 sps:$4 sm:$0xff]  }
   0xa   :  { %4079 = vmatpush3.bf16.msra.mxu1 %v4498_v14  ;;  %v50_v27 = vld [vmem:[%s5822_s0 + $0x10] sm:$0xff]  ;;  %v90_v36 = vld [vmem:[%s5823_s3] sm:$0x7]  ;;  %v94_v38 = vsub.s32 0, %v4933_v33  ;;  %v102_v2 = vsub.s32 2, %v4933_v33  ;;  %vm442_vm2 = vcmask 130048  }
   0xb   :  { %240 = vmatpush1.bf16.msra.mxu0 %v4481_v6  ;;  %4080 = vmatprep.subr.bf16.mxu1 %v4499_v17  ;;  %v57_v29 = vpack.c.bf16 %v51_v28, %v50_v27  ;;  %v99_v39 = vrot.slane %v90_v36, %v98_v34  ;;  %v4980_v14 = vld [vmem:[%s5824_s1] sm:$0xff]  ;;  %v5000_v28 = vld [vmem:[%s5824_s1 + $0x18] sm:$0xff]  ;;  %s4762_s17 = smov 104   ;;  %s4763_s18 = smov 8   ;;  %vm1365_vm3 = vcmask 195584   ;;  %vm1395_vm4 = vcmask 261120  }
   0xc   :  { %241 = vmatprep.subr.bf16.mxu0 %v4482_v7  ;;  %v95_v42 = vrot.slane %v90_v36, %v94_v38  ;;  %v103_v3 = vrot.slane %v90_v36, %v102_v2  ;;  %s4764_s19 = smov 16   ;;  %s4765_s22 = smov 24  }
   0xe   :  { %4081 = vmatpush3.bf16.msra.mxu1 %v4499_v17 }
   0xf   :  { %242 = vmatpush1.bf16.msra.mxu0 %v4484_v9  ;;  %4082 = vmatprep.subr.bf16.mxu1 %v4500_v20 }
  0x10   :  { %243 = vmatprep.subr.bf16.mxu0 %v4485_v10 }
  0x12   :  { %4083 = vmatpush3.bf16.msra.mxu1 %v4500_v20 }
  0x13   :  { %244 = vmatpush1.bf16.msra.mxu0 %v4487_v15  ;;  %4084 = vmatprep.subr.bf16.mxu1 %v4501_v23 }
  0x14   :  { %245 = vmatprep.subr.bf16.mxu0 %v4488_v16 }
  0x16   :  { %4085 = vmatpush3.bf16.msra.mxu1 %v4501_v23  ;;  %v4993_v23 = vld [vmem:[%s5824_s1 + $0x10] sm:$0xff] }
  0x17   :  { %246 = vmatpush1.bf16.msra.mxu0 %v4490_v18  ;;  %4086 = vmatprep.subr.bf16.mxu1 %v4502_v25  ;;  %v4986_v18 = vld [vmem:[%s5824_s1 + $0x8] sm:$0xff] }
  0x18   :  { %247 = vmatprep.subr.bf16.mxu0 %v4491_v19 }
  0x1a   :  { %4087 = vmatpush3.bf16.msra.mxu1 %v4502_v25 }
  0x1b   :  { %248 = vmatpush1.bf16.msra.mxu0 %v4493_v21  ;;  %4088 = vmatprep.subr.bf16.mxu1 %v4503_v26 }
  0x1c   :  { %249 = vmatprep.subr.bf16.mxu0 %v4494_v22 }
  0x1e   :  { %4089 = vmatpush3.bf16.msra.mxu1 %v4503_v26 }
  0x1f   :  { %250 = vmatpush1.bf16.msra.mxu0 %v4496_v24  ;;  %4090 = vmatprep.subr.bf16.mxu1 %v4504_v30 }
  0x20   :  { %4102 = vmatprep.subr.bf16.mxu0 %v4758_v31 }
  0x22   :  { %268 = vmatmul.mubr.bf16.vlgmr.msra.gmra.mxu0 %v56_v12  ;;  %4091 = vmatpush3.bf16.msra.mxu1 %v4504_v30 }
  0x23   :  { %277 = vmatprep.mubr.bf16.mxu0 %v4757_v1  ;;  %4096 = vmatprep.subr.bf16.mxu1 %v4758_v31 }
  0x25   :  { %4093 = vmatmul.mubr.bf16.vlgmr.msra.gmra.mxu1 %v57_v29 }
  0x26   :  { %4098 = vmatprep.mubr.msk.bf16.mxu1 %vm4759_vm0, %v4758_v31 }
  0x2a   :  { %278 = vmatmul.mubr.bf16.gmra.mxu0 %v57_v29 }
  0x2b   :  { %4104 = vmatprep.mubr.msk.bf16.mxu0 %vm4759_vm0, %v4758_v31 }
  0xe2   :  { %v269_v35 = vpop.f32.mrf.mxu0 }
  0xe3   :  { %v270_v49 = vadd.f32 %v269_v35, %v95_v42 }
  0xe4   :  { %v271_v37 = vpop.f32.mrf.mxu0 }
  0xe5   :  { %v272_v43 = vadd.f32 %v271_v37, %v99_v39  ;;  %v337_v55 = vmul.f32 0.35355338, %v270_v49  ;;  %v4094_v4 = vpop.f32.mrf.mxu1 }
  0xe6   :  { %v273_v40 = vpop.f32.mrf.mxu0  ;;  %v331_v6 = vadd.f32 %v4094_v4, %v103_v3 }
  0xe7   :  { %v274_v46 = vadd.f32 %v273_v40, %v95_v42  ;;  %v322_v5 = vpop.f32.mrf.mxu1 }
  0xe8   :  { %v275_v41 = vpop.f32.mrf.mxu0  ;;  %v323_v8 = vadd.f32 %v322_v5, %v103_v3 }
  0xe9   :  { %v276_v44 = vadd.f32 %v275_v41, %v99_v39  ;;  %v338_v52 = vmul.f32 0.35355338, %v274_v46  ;;  %v4095_v7 = vpop.f32.mrf.mxu1 }
  0xea   :  { %v279_v45 = vpop.f32.mrf.mxu0  ;;  %v334_v9 = vadd.f32 %v4095_v7, %v103_v3 }
  0xeb   :  { %v4944_v47 = vpack.c.bf16 %v276_v44, %v272_v43  ;;  %v280_v56 = vadd.f32 %v279_v45, %v95_v42  ;;  %v4949_v59 = vpack.c.bf16 %v338_v52, %v337_v55  ;;  %v325_v10 = vpop.f32.mrf.mxu1 }
  0xec   :  { %v281_v48 = vpop.f32.mrf.mxu0  ;;  %v4969_v11 = vpack.c.bf16 %v334_v9, %v331_v6  ;;  %v326_v12 = vadd.f32 %v325_v10, %v103_v3 }
  0xed   :  { %v352_v50 = vsel %vm347_vm1, %v4944_v47, 0  ;;  %v282_v53 = vadd.f32 %v281_v48, %v99_v39  ;;  %v339_v61 = vmul.f32 0.35355338, %v280_v56 }
  0xee   :  { %v283_v51 = vpop.f32.mrf.mxu0  ;;  %4097 = vmatpush3.bf16.xpose.msra.mxu1 %v352_v50  ;;  %v4971_v13 = vpack.c.bf16 %v326_v12, %v323_v8 }
  0xef   :  { %4108 = vmatprep.subr.bf16.mxu1 %v4758_v31  ;;  %v284_v57 = vadd.f32 %v283_v51, %v95_v42 }
  0xf0   :  { %v285_v54 = vpop.f32.mrf.mxu0 }
  0xf1   :  { %v286_v58 = vadd.f32 %v285_v54, %v99_v39  ;;  %v340_v62 = vmul.f32 0.35355338, %v284_v57 }
  0xf3   :  { %v4951_v60 = vpack.c.bf16 %v286_v58, %v282_v53  ;;  %v4960_v0 = vpack.c.bf16 %v340_v62, %v339_v61 }
  0xf5   :  { %4099 = vmatmul.mubr.msk.bf16.vlgmr.msra.gmra.mxu1 %vm347_vm1, %v4949_v59  ;;  %v399_v63 = vsel %vm347_vm1, %v4951_v60, 0 }
  0xf6   :  { %4103 = vmatpush3.bf16.xpose.msra.mxu0 %v399_v63  ;;  %4110 = vmatprep.mubr.msk.bf16.mxu1 %vm4759_vm0, %v4758_v31 }
  0xf7   :  { %4114 = vmatprep.subr.bf16.mxu0 %v4758_v31  ;;  %4109 = vmatpush3.bf16.msra.mxu1 %v4971_v13 }
  0xf8   :  { %4120 = vmatprep.subr.bf16.mxu1 %v4758_v31 }
  0xfd   :  { %4105 = vmatmul.mubr.msk.bf16.vlgmr.msra.gmra.mxu0 %vm347_vm1, %v4960_v0 }
  0xfe   :  { %4116 = vmatprep.mubr.msk.bf16.mxu0 %vm4759_vm0, %v4758_v31  ;;  %4115 = vmatpush3.bf16.msra.mxu0 %v4969_v11 }
  0xff   :  { %4126 = vmatprep.subr.bf16.mxu0 %v4758_v31 }
 0x1b5   :  { %v388_v15 = vpop.f32.mrf.mxu1 }
 0x1b6   :  { %v389_v16 = vadd.f32 %v388_v15, %v4980_v14 }
 0x1b7   :  { %v4100_v17 = vpop.f32.mrf.mxu1 }
 0x1b8   :  { %v443_v19 = vsel %vm442_vm2, %v389_v16, -inf }
 0x1b9   :  { %444 = vmax.xlane.f32.xlu0 %v443_v19  ;;  %v391_v20 = vpop.f32.mrf.mxu1 }
 0x1ba   :  { %v392_v21 = vadd.f32 %v391_v20, %v4986_v18 }
 0x1bb   :  { %v4101_v22 = vpop.f32.mrf.mxu1 }
 0x1bc   :  { %v446_v24 = vsel %vm442_vm2, %v392_v21, -inf }
 0x1bd   :  { %v435_v25 = vpop.f32.mrf.mxu0  ;;  %447 = vmax.xlane.f32.xlu0 %v446_v24 }
 0x1be   :  { %v436_v26 = vadd.f32 %v435_v25, %v4993_v23 }
 0x1bf   :  { %v4106_v27 = vpop.f32.mrf.mxu0 }
 0x1c0   :  { %v449_v29 = vsel %vm442_vm2, %v436_v26, -inf }
 0x1c1   :  { %450 = vmax.xlane.f32.xlu1 %v449_v29  ;;  %v438_v30 = vpop.f32.mrf.mxu0 }
 0x1c2   :  { %v439_v32 = vadd.f32 %v438_v30, %v5000_v28 }
 0x1c3   :  { %v4107_v35 = vpop.f32.mrf.mxu0 }
 0x1c4   :  { %v452_v36 = vsel %vm442_vm2, %v439_v32, -inf }
 0x1c5   :  { %453 = vmax.xlane.f32.xlu1 %v452_v36 }
 0x242   :  { %v445_v37 = vpop.xlane.xlu0 %444 }
 0x243   :  { %v455_v39 = vsub.f32 %v389_v16, %v445_v37 }
 0x245   :  { %v459_v40 = vmul.f32 1.442695, %v455_v39 }
 0x246   :  { %v448_v41 = vpop.xlane.xlu0 %447 }
 0x247   :  { %4573 = vpow2.f32 %v459_v40  ;;  %v456_v42 = vsub.f32 %v392_v21, %v448_v41 }
 0x249   :  { %v461_v43 = vmul.f32 1.442695, %v456_v42 }
 0x24a   :  { %v451_v44 = vpop.xlane.xlu1 %450 }
 0x24b   :  { %4575 = vpow2.f32 %v461_v43  ;;  %v457_v45 = vsub.f32 %v436_v26, %v451_v44 }
 0x24d   :  { %v463_v46 = vmul.f32 1.442695, %v457_v45 }
 0x24e   :  { %v454_v54 = vpop.xlane.xlu1 %453 }
 0x24f   :  { %4577 = vpow2.f32 %v463_v46  ;;  %v458_v55 = vsub.f32 %v439_v32, %v454_v54 }
 0x251   :  { %v465_v56 = vmul.f32 1.442695, %v458_v55 }
 0x253   :  { %4579 = vpow2.f32 %v465_v56 }
 0x254   :  { %v4574_v48 = vpop.eup %4573 }
 0x255   :  { %v467_v49 = vsel %vm442_vm2, %v4574_v48, 0.0 }
 0x256   :  { %468 = vadd.xlane.f32.xlu0 %v467_v49 }
 0x258   :  { %v4576_v50 = vpop.eup %4575 }
 0x259   :  { %v470_v51 = vsel %vm442_vm2, %v4576_v50, 0.0 }
 0x25a   :  { %471 = vadd.xlane.f32.xlu1 %v470_v51 }
 0x25c   :  { %v4578_v52 = vpop.eup %4577 }
 0x25d   :  { %v473_v53 = vsel %vm442_vm2, %v4578_v52, 0.0 }
 0x25e   :  { %474 = vadd.xlane.f32.xlu0 %v473_v53 }
 0x260   :  { %v4580_v57 = vpop.eup %4579 }
 0x261   :  { %v476_v58 = vsel %vm442_vm2, %v4580_v57, 0.0 }
 0x26b   :  { %634 = vrot.lane.b32.xlu1 %v4951_v60, %s4760_s15 }
 0x274   :  { %581 = vrot.lane.b32.xlu0 %v4944_v47, %s4760_s15 }
 0x28f   :  { %477 = vadd.xlane.f32.xlu1 %v476_v58 }
 0x2a0   :  { %578 = vrot.lane.b32.xlu1 %v4949_v59, %s4760_s15 }
 0x2a4   :  { %631 = vrot.lane.b32.xlu1 %v4960_v0, %s4760_s15 }
 0x2df   :  { %v469_v61 = vpop.xlane.xlu0 %468 }
 0x2e0   :  { %4581 = vrcp.f32 %v469_v61 }
 0x2e3   :  { %v472_v62 = vpop.xlane.xlu1 %471 }
 0x2e4   :  { %4583 = vrcp.f32 %v472_v62 }
 0x2e7   :  { %v475_v63 = vpop.xlane.xlu0 %474  ;;  %v635_v10 = vpop.permute.xlu1 %634 }
 0x2e8   :  { %4585 = vrcp.f32 %v475_v63  ;;  %v640_v22 = vsel %vm347_vm1, %v635_v10, 0 }
 0x2eb   :  { %v582_v7 = vpop.permute.xlu0 %581 }
 0x2ec   :  { %v587_v9 = vsel %vm347_vm1, %v582_v7, 0 }
 0x2ed   :  { %v4582_v3 = vpop.eup %4581 }
 0x2ee   :  { %v483_v5 = vmul.f32 %v4582_v3, %v4574_v48 }
 0x2f1   :  { %v4584_v4 = vpop.eup %4583 }
 0x2f2   :  { %v484_v6 = vmul.f32 %v4584_v4, %v4576_v50 }
 0x2f4   :  { %v487_v8 = vpack.c.bf16 %v484_v6, %v483_v5 }
 0x2f5   :  { %v4586_v16 = vpop.eup %4585 }
 0x2f6   :  { %4111 = vmatmul.mubr.msk.bf16.vlgmr.msra.gmra.mxu1 %vm442_vm2, %v487_v8  ;;  %v485_v19 = vmul.f32 %v4586_v16, %v4578_v52 }
 0x2f7   :  { %4121 = vmatpush3.bf16.xpose.msra.mxu1 %v587_v9  ;;  %4122 = vmatprep.mubr.msk.bf16.mxu1 %vm4759_vm0, %v4758_v31 }
 0x2f8   :  { %4132 = vmatprep.subr.bf16.mxu1 %v4758_v31 }
 0x318   :  { %v478_v12 = vpop.xlane.xlu1 %477 }
 0x319   :  { %4587 = vrcp.f32 %v478_v12 }
 0x31c   :  { %v579_v15 = vpop.permute.xlu1 %578 }
 0x31d   :  { %4123 = vmatmul.mubr.msk.bf16.vlgmr.msra.gmra.mxu1 %vm347_vm1, %v579_v15 }
 0x31e   :  { %4134 = vmatprep.mubr.msk.bf16.mxu1 %vm4759_vm0, %v4758_v31 }
 0x320   :  { %v632_v24 = vpop.permute.xlu1 %631 }
 0x326   :  { %v4588_v17 = vpop.eup %4587 }
 0x327   :  { %v486_v20 = vmul.f32 %v4588_v17, %v4580_v57 }
 0x329   :  { %v488_v21 = vpack.c.bf16 %v486_v20, %v485_v19 }
 0x32b   :  { %4117 = vmatmul.mubr.msk.bf16.vlgmr.msra.gmra.mxu0 %vm442_vm2, %v488_v21 }
 0x32c   :  { %4127 = vmatpush3.bf16.xpose.msra.mxu0 %v640_v22  ;;  %4128 = vmatprep.mubr.msk.bf16.mxu0 %vm4759_vm0, %v4758_v31 }
 0x32d   :  { %4138 = vmatprep.subr.bf16.mxu0 %v4758_v31 }
 0x333   :  { %4129 = vmatmul.mubr.msk.bf16.vlgmr.msra.gmra.mxu0 %vm347_vm1, %v632_v24 }
 0x334   :  { %4140 = vmatprep.mubr.msk.bf16.mxu0 %vm4759_vm0, %v4758_v31 }
 0x3b6   :  { %v5033_v25 = vpop.f32.mrf.mxu1 }
 0x3b8   :  { %v4112_v26 = vpop.f32.mrf.mxu1 }
 0x3ba   :  { %v5035_v27 = vpop.f32.mrf.mxu1 }
 0x3bc   :  { %v4113_v29 = vpop.f32.mrf.mxu1 }
 0x3dd   :  { %v623_v30 = vpop.f32.mrf.mxu1 }
 0x3de   :  { %v624_v32 = vadd.f32 %v623_v30, %v4980_v14 }
 0x3df   :  { %v4124_v35 = vpop.f32.mrf.mxu1 }
 0x3e0   :  { %v683_v36 = vsel %vm442_vm2, %v624_v32, -inf }
 0x3e1   :  { %684 = vmax.xlane.f32.xlu0 %v683_v36  ;;  %v626_v37 = vpop.f32.mrf.mxu1 }
 0x3e2   :  { %v627_v39 = vadd.f32 %v626_v37, %v4986_v18 }
 0x3e3   :  { %v4125_v40 = vpop.f32.mrf.mxu1 }
 0x3e4   :  { %v686_v41 = vsel %vm442_vm2, %v627_v39, -inf }
 0x3e5   :  { %687 = vmax.xlane.f32.xlu1 %v686_v41 }
 0x3eb   :  { %v5041_v42 = vpop.f32.mrf.mxu0 }
 0x3ed   :  { %v4118_v43 = vpop.f32.mrf.mxu0 }
 0x3ef   :  { %v5043_v44 = vpop.f32.mrf.mxu0 }
 0x3f1   :  { %v4119_v45 = vpop.f32.mrf.mxu0 }
 0x3f3   :  { %v676_v46 = vpop.f32.mrf.mxu0 }
 0x3f4   :  { %v677_v48 = vadd.f32 %v676_v46, %v4993_v23 }
 0x3f5   :  { %v4130_v49 = vpop.f32.mrf.mxu0 }
 0x3f6   :  { %v689_v50 = vsel %vm442_vm2, %v677_v48, -inf }
 0x3f7   :  { %v679_v51 = vpop.f32.mrf.mxu0  ;;  %690 = vmax.xlane.f32.xlu0 %v689_v50 }
 0x3f8   :  { %v680_v52 = vadd.f32 %v679_v51, %v5000_v28 }
 0x3f9   :  { %v4131_v53 = vpop.f32.mrf.mxu0 }
 0x3fa   :  { %v692_v54 = vsel %vm442_vm2, %v680_v52, -inf }
 0x3fb   :  { %693 = vmax.xlane.f32.xlu0 %v692_v54 }
 0x46a   :  { %v685_v55 = vpop.xlane.xlu0 %684 }
 0x46b   :  { %v695_v56 = vsub.f32 %v624_v32, %v685_v55 }
 0x46d   :  { %v699_v57 = vmul.f32 1.442695, %v695_v56 }
 0x46e   :  { %v688_v58 = vpop.xlane.xlu1 %687 }
 0x46f   :  { %4589 = vpow2.f32 %v699_v57  ;;  %v696_v61 = vsub.f32 %v627_v39, %v688_v58 }
 0x471   :  { %v701_v62 = vmul.f32 1.442695, %v696_v61 }
 0x473   :  { %4591 = vpow2.f32 %v701_v62 }
 0x47c   :  { %v4590_v63 = vpop.eup %4589 }
 0x47d   :  { %v707_v3 = vsel %vm442_vm2, %v4590_v63, 0.0 }
 0x47e   :  { %708 = vadd.xlane.f32.xlu0 %v707_v3 }
 0x480   :  { %v4592_v4 = vpop.eup %4591  ;;  %v691_v5 = vpop.xlane.xlu0 %690 }
 0x481   :  { %v697_v6 = vsub.f32 %v677_v48, %v691_v5  ;;  %v710_v7 = vsel %vm442_vm2, %v4592_v4, 0.0 }
 0x482   :  { %711 = vadd.xlane.f32.xlu1 %v710_v7 }
 0x483   :  { %v703_v8 = vmul.f32 1.442695, %v697_v6 }
 0x484   :  { %v694_v12 = vpop.xlane.xlu0 %693 }
 0x485   :  { %4593 = vpow2.f32 %v703_v8  ;;  %v698_v15 = vsub.f32 %v680_v52, %v694_v12 }
 0x487   :  { %v705_v16 = vmul.f32 1.442695, %v698_v15 }
 0x489   :  { %4595 = vpow2.f32 %v705_v16 }
 0x492   :  { %v4594_v9 = vpop.eup %4593 }
 0x493   :  { %778 = vrot.lane.b32.xlu1 %v4969_v11, %s4760_s15  ;;  %v713_v10 = vsel %vm442_vm2, %v4594_v9, 0.0 }
 0x494   :  { %714 = vadd.xlane.f32.xlu0 %v713_v10 }
 0x496   :  { %v4596_v17 = vpop.eup %4595 }
 0x497   :  { %827 = vrot.lane.b32.xlu1 %v4944_v47, %s4761_s16  ;;  %v716_v19 = vsel %vm442_vm2, %v4596_v17, 0.0 }
 0x4aa   :  { %730 = vrot.lane.b32.xlu0 %v4971_v13, %s4760_s15 }
 0x4ae   :  { %825 = vrot.lane.b32.xlu0 %v4949_v59, %s4761_s16 }
 0x4bb   :  { %717 = vadd.xlane.f32.xlu1 %v716_v19 }
 0x4cc   :  { %878 = vrot.lane.b32.xlu1 %v4951_v60, %s4761_s16 }
 0x4d0   :  { %876 = vrot.lane.b32.xlu1 %v4960_v0, %s4761_s16 }
 0x507   :  { %v709_v21 = vpop.xlane.xlu0 %708 }
 0x50b   :  { %v712_v20 = vpop.xlane.xlu1 %711 }
 0x50c   :  { %4597 = vrcp.f32 %v712_v20 }
 0x50d   :  { %4599 = vrcp.f32 %v709_v21 }
 0x50f   :  { %v779_v22 = vpop.permute.xlu1 %778 }
 0x510   :  { %4139 = vmatpush3.bf16.msra.mxu0 %v779_v22 }
 0x511   :  { %4150 = vmatprep.subr.bf16.mxu0 %v4758_v31 }
 0x513   :  { %v828_v36 = vpop.permute.xlu1 %827 }
 0x514   :  { %v833_v39 = vsel %vm347_vm1, %v828_v36, 0 }
 0x519   :  { %v4598_v24 = vpop.eup %4597 }
 0x51a   :  { %v4600_v29 = vpop.eup %4599  ;;  %v724_v30 = vmul.f32 %v4598_v24, %v4592_v4 }
 0x51b   :  { %v723_v35 = vmul.f32 %v4600_v29, %v4590_v63 }
 0x51d   :  { %v715_v26 = vpop.xlane.xlu0 %714  ;;  %v727_v37 = vpack.c.bf16 %v724_v30, %v723_v35 }
 0x51e   :  { %4601 = vrcp.f32 %v715_v26 }
 0x521   :  { %v731_v32 = vpop.permute.xlu0 %730 }
 0x522   :  { %4133 = vmatpush3.bf16.msra.mxu1 %v731_v32 }
 0x523   :  { %4144 = vmatprep.subr.bf16.mxu1 %v4758_v31 }
 0x525   :  { %4135 = vmatmul.mubr.msk.bf16.vlgmr.msra.gmra.mxu1 %vm442_vm2, %v727_v37  ;;  %v826_v40 = vpop.permute.xlu0 %825 }
 0x526   :  { %4145 = vmatpush3.bf16.xpose.msra.mxu1 %v833_v39  ;;  %4146 = vmatprep.mubr.msk.bf16.mxu1 %vm4759_vm0, %v4758_v31 }
 0x527   :  { %4156 = vmatprep.subr.bf16.mxu1 %v4758_v31 }
 0x52b   :  { %v4602_v43 = vpop.eup %4601 }
 0x52c   :  { %v725_v46 = vmul.f32 %v4602_v43, %v4594_v9 }
 0x52d   :  { %4147 = vmatmul.mubr.msk.bf16.vlgmr.msra.gmra.mxu1 %vm347_vm1, %v826_v40 }
 0x52e   :  { %4158 = vmatprep.mubr.msk.bf16.mxu1 %vm4759_vm0, %v4758_v31 }
 0x544   :  { %v718_v41 = vpop.xlane.xlu1 %717 }
 0x545   :  { %4603 = vrcp.f32 %v718_v41 }
 0x548   :  { %v879_v49 = vpop.permute.xlu1 %878 }
 0x549   :  { %v884_v51 = vsel %vm347_vm1, %v879_v49, 0 }
 0x54c   :  { %v877_v52 = vpop.permute.xlu1 %876 }
 0x552   :  { %v4604_v45 = vpop.eup %4603 }
 0x553   :  { %v726_v48 = vmul.f32 %v4604_v45, %v4596_v17 }
 0x555   :  { %v728_v50 = vpack.c.bf16 %v726_v48, %v725_v46 }
 0x557   :  { %4141 = vmatmul.mubr.msk.bf16.vlgmr.msra.gmra.mxu0 %vm442_vm2, %v728_v50 }
 0x558   :  { %4151 = vmatpush3.bf16.xpose.msra.mxu0 %v884_v51  ;;  %4152 = vmatprep.mubr.msk.bf16.mxu0 %vm4759_vm0, %v4758_v31 }
 0x559   :  { %4162 = vmatprep.subr.bf16.mxu0 %v4758_v31 }
 0x55f   :  { %4153 = vmatmul.mubr.msk.bf16.vlgmr.msra.gmra.mxu0 %vm347_vm1, %v877_v52 }
 0x560   :  { %4164 = vmatprep.mubr.msk.bf16.mxu0 %vm4759_vm0, %v4758_v31 }
 0x5e5   :  { %v5083_v53 = vpop.f32.mrf.mxu1 }
 0x5e7   :  { %v4136_v54 = vpop.f32.mrf.mxu1 }
 0x5e9   :  { %v5085_v55 = vpop.f32.mrf.mxu1 }
 0x5ea   :  { %v4413_v56 = vpack.i.bf16 %v5085_v55, %v5083_v53 }
 0x5eb   :  { %v4137_v57 = vpop.f32.mrf.mxu1 }
 0x5ed   :  { %v869_v58 = vpop.f32.mrf.mxu1 }
 0x5ee   :  { %v870_v61 = vadd.f32 %v869_v58, %v4980_v14 }
 0x5ef   :  { %v4148_v62 = vpop.f32.mrf.mxu1 }
 0x5f0   :  { %v927_v63 = vsel %vm442_vm2, %v870_v61, -inf }
 0x5f1   :  { %928 = vmax.xlane.f32.xlu0 %v927_v63  ;;  %v872_v3 = vpop.f32.mrf.mxu1 }
 0x5f2   :  { %v873_v4 = vadd.f32 %v872_v3, %v4986_v18 }
 0x5f3   :  { %v4149_v5 = vpop.f32.mrf.mxu1 }
 0x5f4   :  { %v930_v6 = vsel %vm442_vm2, %v873_v4, -inf }
 0x5f5   :  { %931 = vmax.xlane.f32.xlu1 %v930_v6 }
 0x617   :  { %v5093_v7 = vpop.f32.mrf.mxu0 }
 0x619   :  { %v4142_v8 = vpop.f32.mrf.mxu0 }
 0x61b   :  { %v5095_v9 = vpop.f32.mrf.mxu0 }
 0x61c   :  { %v4418_v10 = vpack.i.bf16 %v5095_v9, %v5093_v7 }
 0x61d   :  { %v4143_v12 = vpop.f32.mrf.mxu0 }
 0x61f   :  { %v920_v15 = vpop.f32.mrf.mxu0 }
 0x620   :  { %v921_v16 = vadd.f32 %v920_v15, %v4993_v23 }
 0x621   :  { %v4154_v17 = vpop.f32.mrf.mxu0 }
 0x622   :  { %v933_v19 = vsel %vm442_vm2, %v921_v16, -inf }
 0x623   :  { %v923_v20 = vpop.f32.mrf.mxu0  ;;  %934 = vmax.xlane.f32.xlu0 %v933_v19 }
 0x624   :  { %v924_v21 = vadd.f32 %v923_v20, %v5000_v28 }
 0x625   :  { %v4155_v22 = vpop.f32.mrf.mxu0 }
 0x626   :  { %v936_v24 = vsel %vm442_vm2, %v924_v21, -inf }
 0x627   :  { %937 = vmax.xlane.f32.xlu0 %v936_v24 }
 0x67a   :  { %v929_v26 = vpop.xlane.xlu0 %928 }
 0x67b   :  { %v939_v29 = vsub.f32 %v870_v61, %v929_v26 }
 0x67d   :  { %v943_v30 = vmul.f32 1.442695, %v939_v29 }
 0x67e   :  { %v932_v32 = vpop.xlane.xlu1 %931 }
 0x67f   :  { %4605 = vpow2.f32 %v943_v30  ;;  %v940_v35 = vsub.f32 %v873_v4, %v932_v32 }
 0x681   :  { %v945_v36 = vmul.f32 1.442695, %v940_v35 }
 0x683   :  { %4607 = vpow2.f32 %v945_v36 }
 0x68c   :  { %v4606_v37 = vpop.eup %4605 }
 0x68d   :  { %v951_v39 = vsel %vm442_vm2, %v4606_v37, 0.0 }
 0x68e   :  { %952 = vadd.xlane.f32.xlu0 %v951_v39 }
 0x690   :  { %v4608_v40 = vpop.eup %4607 }
 0x691   :  { %v954_v41 = vsel %vm442_vm2, %v4608_v40, 0.0 }
 0x692   :  { %955 = vadd.xlane.f32.xlu1 %v954_v41 }
 0x6a3   :  { %1020 = vrot.lane.b32.xlu1 %v4969_v11, %s4761_s16 }
 0x6a7   :  { %1069 = vrot.lane.b32.xlu1 %v4944_v47, %s4762_s17 }
 0x6ac   :  { %v935_v43 = vpop.xlane.xlu0 %934 }
 0x6ad   :  { %v941_v45 = vsub.f32 %v921_v16, %v935_v43 }
 0x6af   :  { %v947_v46 = vmul.f32 1.442695, %v941_v45 }
 0x6b0   :  { %v938_v48 = vpop.xlane.xlu0 %937 }
 0x6b1   :  { %4609 = vpow2.f32 %v947_v46  ;;  %v942_v49 = vsub.f32 %v924_v21, %v938_v48 }
 0x6b3   :  { %v949_v50 = vmul.f32 1.442695, %v942_v49 }
 0x6b5   :  { %4611 = vpow2.f32 %v949_v50 }
 0x6be   :  { %v4610_v51 = vpop.eup %4609 }
 0x6bf   :  { %v957_v52 = vsel %vm442_vm2, %v4610_v51, 0.0 }
 0x6c0   :  { %958 = vadd.xlane.f32.xlu0 %v957_v52 }
 0x6c2   :  { %v4612_v54 = vpop.eup %4611 }
 0x6c3   :  { %v960_v57 = vsel %vm442_vm2, %v4612_v54, 0.0 }
 0x6cb   :  { %961 = vadd.xlane.f32.xlu1 %v960_v57 }
 0x6d6   :  { %973 = vrot.lane.b32.xlu0 %v4971_v13, %s4761_s16 }
 0x6da   :  { %1067 = vrot.lane.b32.xlu0 %v4949_v59, %s4762_s17 }
 0x6dc   :  { %1120 = vrot.lane.b32.xlu1 %v4951_v60, %s4762_s17 }
 0x6e0   :  { %1118 = vrot.lane.b32.xlu1 %v4960_v0, %s4762_s17 }
 0x717   :  { %v953_v61 = vpop.xlane.xlu0 %952 }
 0x71b   :  { %v956_v47 = vpop.xlane.xlu1 %955 }
 0x71c   :  { %4613 = vrcp.f32 %v956_v47 }
 0x71d   :  { %4615 = vrcp.f32 %v953_v61 }
 0x71f   :  { %v1021_v58 = vpop.permute.xlu1 %1020 }
 0x720   :  { %4163 = vmatpush3.bf16.msra.mxu0 %v1021_v58 }
 0x721   :  { %4174 = vmatprep.subr.bf16.mxu0 %v4758_v31 }
 0x723   :  { %v1070_v6 = vpop.permute.xlu1 %1069 }
 0x724   :  { %v1075_v0 = vsel %vm347_vm1, %v1070_v6, 0 }
 0x729   :  { %v4614_v62 = vpop.eup %4613 }
 0x72a   :  { %v4616_v3 = vpop.eup %4615  ;;  %v968_v4 = vmul.f32 %v4614_v62, %v4608_v40 }
 0x72b   :  { %v967_v59 = vmul.f32 %v4616_v3, %v4606_v37 }
 0x72d   :  { %v971_v60 = vpack.c.bf16 %v968_v4, %v967_v59 }
 0x749   :  { %v959_v63 = vpop.xlane.xlu0 %958 }
 0x74a   :  { %4617 = vrcp.f32 %v959_v63 }
 0x74d   :  { %v974_v5 = vpop.permute.xlu0 %973 }
 0x74e   :  { %4157 = vmatpush3.bf16.msra.mxu1 %v974_v5 }
 0x74f   :  { %4168 = vmatprep.subr.bf16.mxu1 %v4758_v31 }
 0x751   :  { %4159 = vmatmul.mubr.msk.bf16.vlgmr.msra.gmra.mxu1 %vm442_vm2, %v971_v60  ;;  %v1068_v12 = vpop.permute.xlu0 %1067 }
 0x752   :  { %4169 = vmatpush3.bf16.xpose.msra.mxu1 %v1075_v0  ;;  %4170 = vmatprep.mubr.msk.bf16.mxu1 %vm4759_vm0, %v4758_v31 }
 0x753   :  { %4180 = vmatprep.subr.bf16.mxu1 %v4758_v31 }
 0x754   :  { %v962_v8 = vpop.xlane.xlu1 %961 }
 0x755   :  { %4619 = vrcp.f32 %v962_v8 }
 0x757   :  { %v4618_v15 = vpop.eup %4617 }
 0x758   :  { %v969_v17 = vmul.f32 %v4618_v15, %v4610_v51  ;;  %v1121_v20 = vpop.permute.xlu1 %1120 }
 0x759   :  { %4171 = vmatmul.mubr.msk.bf16.vlgmr.msra.gmra.mxu1 %vm347_vm1, %v1068_v12  ;;  %v1126_v22 = vsel %vm347_vm1, %v1121_v20, 0 }
 0x75a   :  { %4182 = vmatprep.mubr.msk.bf16.mxu1 %vm4759_vm0, %v4758_v31 }
 0x75c   :  { %v1119_v24 = vpop.permute.xlu1 %1118 }
 0x762   :  { %v4620_v16 = vpop.eup %4619 }
 0x763   :  { %v970_v19 = vmul.f32 %v4620_v16, %v4612_v54 }
 0x765   :  { %v972_v21 = vpack.c.bf16 %v970_v19, %v969_v17 }
 0x767   :  { %4165 = vmatmul.mubr.msk.bf16.vlgmr.msra.gmra.mxu0 %vm442_vm2, %v972_v21 }
 0x768   :  { %4175 = vmatpush3.bf16.xpose.msra.mxu0 %v1126_v22  ;;  %4176 = vmatprep.mubr.msk.bf16.mxu0 %vm4759_vm0, %v4758_v31 }
 0x769   :  { %4186 = vmatprep.subr.bf16.mxu0 %v4758_v31 }
 0x76f   :  { %4177 = vmatmul.mubr.msk.bf16.vlgmr.msra.gmra.mxu0 %vm347_vm1, %v1119_v24 }
 0x770   :  { %4188 = vmatprep.mubr.msk.bf16.mxu0 %vm4759_vm0, %v4758_v31 }
 0x811   :  { %v5137_v26 = vpop.f32.mrf.mxu1 }
 0x813   :  { %v4160_v29 = vpop.f32.mrf.mxu1 }
 0x815   :  { %v1016_v30 = vpop.f32.mrf.mxu1 }
 0x816   :  { %v4423_v32 = vpack.i.bf16 %v1016_v30, %v5137_v26 }
 0x817   :  { %v4161_v35 = vpop.f32.mrf.mxu1 }
 0x819   :  { %v1111_v36 = vpop.f32.mrf.mxu1 }
 0x81a   :  { %v1112_v37 = vadd.f32 %v1111_v36, %v4980_v14 }
 0x81b   :  { %v4172_v39 = vpop.f32.mrf.mxu1 }
 0x81c   :  { %v1169_v40 = vsel %vm442_vm2, %v1112_v37, -inf }
 0x81d   :  { %1170 = vmax.xlane.f32.xlu0 %v1169_v40  ;;  %v1114_v41 = vpop.f32.mrf.mxu1 }
 0x81e   :  { %v1115_v43 = vadd.f32 %v1114_v41, %v4986_v18  ;;  %v4505_v41 = vld [vmem:[%s5825_s4 + $0x8] sm:$0xff]  }
 0x81f   :  { %v4173_v45 = vpop.f32.mrf.mxu1 }
 0x820   :  { %v1172_v46 = vsel %vm442_vm2, %v1115_v43, -inf }
 0x821   :  { %1173 = vmax.xlane.f32.xlu1 %v1172_v46 }
 0x827   :  { %v1060_v48 = vpop.f32.mrf.mxu0 }
 0x829   :  { %v4166_v49 = vpop.f32.mrf.mxu0 }
 0x82a   :  { %v4506_v49 = vld [vmem:[%s5825_s4] sm:$0xff]  }
 0x82b   :  { %v1063_v50 = vpop.f32.mrf.mxu0 }
 0x82c   :  { %v4428_v51 = vpack.i.bf16 %v1063_v50, %v1060_v48 }
 0x82d   :  { %v4167_v52 = vpop.f32.mrf.mxu0 }
 0x82f   :  { %v1162_v54 = vpop.f32.mrf.mxu0 }
 0x830   :  { %v1163_v57 = vadd.f32 %v1162_v54, %v4993_v23 }
 0x831   :  { %v4178_v14 = vpop.f32.mrf.mxu0 }
 0x832   :  { %v1175_v47 = vsel %vm442_vm2, %v1163_v57, -inf }
 0x833   :  { %v1165_v58 = vpop.f32.mrf.mxu0  ;;  %1176 = vmax.xlane.f32.xlu0 %v1175_v47 }
 0x834   :  { %v1166_v61 = vadd.f32 %v1165_v58, %v5000_v28 }
 0x835   :  { %v4179_v18 = vpop.f32.mrf.mxu0 }
 0x836   :  { %v1178_v62 = vsel %vm442_vm2, %v1166_v61, -inf }
 0x837   :  { %1179 = vmax.xlane.f32.xlu0 %v1178_v62 }
 0x8a6   :  { %v1171_v63 = vpop.xlane.xlu0 %1170 }
 0x8a7   :  { %v1181_v3 = vsub.f32 %v1112_v37, %v1171_v63 }
 0x8a9   :  { %v1185_v4 = vmul.f32 1.442695, %v1181_v3 }
 0x8aa   :  { %v1174_v5 = vpop.xlane.xlu1 %1173 }
 0x8ab   :  { %4621 = vpow2.f32 %v1185_v4  ;;  %v1182_v59 = vsub.f32 %v1115_v43, %v1174_v5 }
 0x8ad   :  { %v1187_v6 = vmul.f32 1.442695, %v1182_v59 }
 0x8af   :  { %4623 = vpow2.f32 %v1187_v6 }
 0x8b8   :  { %v4622_v23 = vpop.eup %4621 }
 0x8b9   :  { %v1193_v60 = vsel %vm442_vm2, %v4622_v23, 0.0 }
 0x8ba   :  { %1194 = vadd.xlane.f32.xlu0 %v1193_v60 }
 0x8bc   :  { %v4624_v0 = vpop.eup %4623  ;;  %v1177_v8 = vpop.xlane.xlu0 %1176 }
 0x8bd   :  { %v1183_v12 = vsub.f32 %v1163_v57, %v1177_v8  ;;  %v1196_v28 = vsel %vm442_vm2, %v4624_v0, 0.0 }
 0x8be   :  { %1197 = vadd.xlane.f32.xlu1 %v1196_v28 }
 0x8bf   :  { %v1189_v15 = vmul.f32 1.442695, %v1183_v12 }
 0x8c0   :  { %v1180_v16 = vpop.xlane.xlu0 %1179 }
 0x8c1   :  { %4625 = vpow2.f32 %v1189_v15  ;;  %v1184_v17 = vsub.f32 %v1166_v61, %v1180_v16 }
 0x8c3   :  { %v1191_v19 = vmul.f32 1.442695, %v1184_v17 }
 0x8c5   :  { %4627 = vpow2.f32 %v1191_v19 }
 0x8ce   :  { %v4626_v20 = vpop.eup %4625 }
 0x8cf   :  { %v1199_v21 = vsel %vm442_vm2, %v4626_v20, 0.0 }
 0x8d0   :  { %1200 = vadd.xlane.f32.xlu0 %v1199_v21 }
 0x8d2   :  { %v4628_v22 = vpop.eup %4627 }
 0x8d3   :  { %v1202_v24 = vsel %vm442_vm2, %v4628_v22, 0.0 }
 0x8d4   :  { %1203 = vadd.xlane.f32.xlu1 %v1202_v24 }
 0x8e5   :  { %1262 = vrot.lane.b32.xlu1 %v4969_v11, %s4762_s17 }
 0x8e6   :  { %1215 = vrot.lane.b32.xlu0 %v4971_v13, %s4762_s17 }
 0x8e9   :  { %4414 = vrot.lane.b32.xlu1 %v4413_v56, %s4763_s18 }
 0x8ea   :  { %4424 = vrot.lane.b32.xlu0 %v4423_v32, %s4764_s19 }
 0x8ed   :  { %4419 = vrot.lane.b32.xlu1 %v4418_v10, %s4763_s18 }
 0x8f1   :  { %4429 = vrot.lane.b32.xlu1 %v4428_v51, %s4764_s19 }
 0x943   :  { %v1195_v26 = vpop.xlane.xlu0 %1194 }
 0x947   :  { %v1198_v11 = vpop.xlane.xlu1 %1197 }
 0x948   :  { %4629 = vrcp.f32 %v1198_v11 }
 0x949   :  { %4631 = vrcp.f32 %v1195_v26 }
 0x955   :  { %v4630_v13 = vpop.eup %4629 }
 0x956   :  { %v4632_v30 = vpop.eup %4631  ;;  %v1210_v35 = vmul.f32 %v4630_v13, %v4624_v0 }
 0x957   :  { %v1209_v56 = vmul.f32 %v4632_v30, %v4622_v23 }
 0x959   :  { %v1201_v29 = vpop.xlane.xlu0 %1200  ;;  %v1213_v32 = vpack.c.bf16 %v1210_v35, %v1209_v56 }
 0x95a   :  { %4633 = vrcp.f32 %v1201_v29 }
 0x95d   :  { %v1216_v53 = vpop.permute.xlu0 %1215  ;;  %v1204_v55 = vpop.xlane.xlu1 %1203 }
 0x95e   :  { %4635 = vrcp.f32 %v1204_v55  ;;  %4181 = vmatpush3.bf16.msra.mxu1 %v1216_v53  ;;  %v4749_v53 = vld [vmem:[%s5822_s0 + $0x10] sm:$0xff] }
 0x95f   :  { %4192 = vmatprep.subr.bf16.mxu1 %v4505_v41 }
 0x961   :  { %4183 = vmatmul.mubr.msk.bf16.vlgmr.msra.gmra.mxu1 %vm442_vm2, %v1213_v32  ;;  %v1263_v7 = vpop.permute.xlu1 %1262  ;;  %v4425_v61 = vpop.permute.xlu0 %4424 }
 0x962   :  { %4187 = vmatpush3.bf16.msra.mxu0 %v1263_v7  ;;  %4193 = vmatpush3.bf16.msra.mxu1 %v4505_v41  ;;  %v4427_v63 = vunpack.i.h.bf16 %v4425_v61  ;;  %v4426_v3 = vunpack.i.l.bf16 %v4425_v61  ;;  %v4752_v41 = vld [vmem:[%s5822_s0 + $0x18] sm:$0xff] }
 0x963   :  { %4194 = vmatprep.subr.bf16.mxu1 %v4506_v49 }
 0x965   :  { %v4415_v14 = vpop.permute.xlu1 %4414 }
 0x966   :  { %4195 = vmatpush3.bf16.msra.mxu1 %v4506_v49  ;;  %v4417_v47 = vunpack.i.h.bf16 %v4415_v14  ;;  %v4416_v58 = vunpack.i.l.bf16 %v4415_v14  ;;  %v4512_v14 = vld [vmem:[%s5827_s8 + $0x10] sm:$0xff]  }
 0x967   :  { %v4634_v9 = vpop.eup %4633 }
 0x968   :  { %v1211_v36 = vmul.f32 %v4634_v9, %v4626_v20  ;;  %v1358_v18 = vsel %vm347_vm1, %v5035_v27, %v4417_v47  ;;  %v1357_v62 = vsel %vm347_vm1, %v5033_v25, %v4416_v58  ;;  %v4750_v9 = vld [vmem:[%s5822_s0] sm:$0xff]  ;;  %v4513_v47 = vld [vmem:[%s5827_s8 + $0x8] sm:$0xff]  }
 0x969   :  { %v1361_v6 = vsel %vm442_vm2, %v1357_v62, %v4426_v3  ;;  %v1362_v23 = vsel %vm442_vm2, %v1358_v18, %v4427_v63  ;;  %v4420_v8 = vpop.permute.xlu1 %4419  ;;  %v4514_v58 = vld [vmem:[%s5827_s8] sm:$0xff]  }
 0x96a   :  { %v4422_v12 = vunpack.i.h.bf16 %v4420_v8  ;;  %v4421_v28 = vunpack.i.l.bf16 %v4420_v8 }
 0x96b   :  { %v4636_v10 = vpop.eup %4635 }
 0x96c   :  { %v1212_v37 = vmul.f32 %v4636_v10, %v4628_v22  ;;  %v1360_v19 = vsel %vm347_vm1, %v5043_v44, %v4422_v12  ;;  %v1359_v20 = vsel %vm347_vm1, %v5041_v42, %v4421_v28  ;;  %v3774_v44 = vld [vmem:[%s5826_s5] ss:$0 sm:$0xff] }
 0x96d   :  { %v4430_v25 = vpop.permute.xlu1 %4429 }
 0x96e   :  { %v1214_v39 = vpack.c.bf16 %v1212_v37, %v1211_v36  ;;  %v4432_v15 = vunpack.i.h.bf16 %v4430_v25  ;;  %v4431_v16 = vunpack.i.l.bf16 %v4430_v25 }
 0x970   :  { %4189 = vmatmul.mubr.msk.bf16.vlgmr.msra.gmra.mxu0 %vm442_vm2, %v1214_v39  ;;  %v1363_v24 = vsel %vm442_vm2, %v1359_v20, %v4431_v16  ;;  %v1364_v11 = vsel %vm442_vm2, %v1360_v19, %v4432_v15  ;;  %v4751_v39 = vld [vmem:[%s5822_s0 + $0x8] sm:$0xff] }
 0xa21   :  { %v1255_v40 = vpop.f32.mrf.mxu1 }
 0xa23   :  { %v4184_v43 = vpop.f32.mrf.mxu1 }
 0xa25   :  { %v1258_v45 = vpop.f32.mrf.mxu1 }
 0xa26   :  { %v4433_v46 = vpack.i.bf16 %v1258_v45, %v1255_v40 }
 0xa27   :  { %v4185_v48 = vpop.f32.mrf.mxu1 }
 0xa28   :  { %4434 = vrot.lane.b32.xlu0 %v4433_v46, %s4765_s22 }
 0xa30   :  { %v1302_v50 = vpop.f32.mrf.mxu0 }
 0xa32   :  { %v4190_v51 = vpop.f32.mrf.mxu0 }
 0xa33   :  { %v4508_v51 = vld [vmem:[%s5827_s8 + $0x30] sm:$0xff]  }
 0xa34   :  { %v1305_v52 = vpop.f32.mrf.mxu0 }
 0xa35   :  { %v4438_v54 = vpack.i.bf16 %v1305_v52, %v1302_v50  ;;  %v4507_v50 = vld [vmem:[%s5827_s8 + $0x38] sm:$0xff]   ;;  %v4509_v52 = vld [vmem:[%s5827_s8 + $0x28] sm:$0xff]  }
 0xa36   :  { %v4191_v57 = vpop.f32.mrf.mxu0  ;;  %4200 = vmatprep.subr.bf16.mxu0 %v4507_v50 }
 0xa37   :  { %4439 = vrot.lane.b32.xlu1 %v4438_v54, %s4765_s22  ;;  %4201 = vmatpush3.bf16.msra.mxu0 %v4507_v50  ;;  %v4510_v54 = vld [vmem:[%s5827_s8 + $0x20] sm:$0xff]   ;;  %v4511_v57 = vld [vmem:[%s5827_s8 + $0x18] sm:$0xff]  }
 0xa38   :  { %4202 = vmatprep.subr.bf16.mxu0 %v4508_v51 }
 0xa3b   :  { %4203 = vmatpush3.bf16.msra.mxu0 %v4508_v51 }
 0xa3c   :  { %4204 = vmatprep.subr.bf16.mxu0 %v4509_v52 }
 0xa3f   :  { %4205 = vmatpush3.bf16.msra.mxu0 %v4509_v52  ;;  %v4515_v52 = vld [vmem:[%s5830_s10 + $0x38] sm:$0xff]  }
 0xa40   :  { %4206 = vmatprep.subr.bf16.mxu0 %v4510_v54  ;;  %4220 = vmatprep.subr.bf16.mxu1 %v4515_v52 }
 0xa43   :  { %4207 = vmatpush3.bf16.msra.mxu0 %v4510_v54  ;;  %v4516_v54 = vld [vmem:[%s5830_s10 + $0x30] sm:$0xff]  }
 0xa44   :  { %4208 = vmatprep.subr.bf16.mxu0 %v4511_v57 }
 0xa47   :  { %4209 = vmatpush3.bf16.msra.mxu0 %v4511_v57  ;;  %v4517_v57 = vld [vmem:[%s5830_s10 + $0x28] sm:$0xff]  }
 0xa48   :  { %4210 = vmatprep.subr.bf16.mxu0 %v4512_v14 }
 0xa4b   :  { %4211 = vmatpush3.bf16.msra.mxu0 %v4512_v14  ;;  %v4518_v14 = vld [vmem:[%s5830_s10 + $0x20] sm:$0xff]  }
 0xa4c   :  { %4212 = vmatprep.subr.bf16.mxu0 %v4513_v47 }
 0xa4f   :  { %4213 = vmatpush3.bf16.msra.mxu0 %v4513_v47  ;;  %v4519_v47 = vld [vmem:[%s5830_s10 + $0x18] sm:$0xff]  }
 0xa50   :  { %4214 = vmatprep.subr.bf16.mxu0 %v4514_v58 }
 0xa53   :  { %4215 = vmatpush3.bf16.msra.mxu0 %v4514_v58  ;;  %v4520_v58 = vld [vmem:[%s5830_s10 + $0x10] sm:$0xff]  }
 0xa9a   :  { %v4435_v4 = vpop.permute.xlu0 %4434 }
 0xa9b   :  { %v4437_v5 = vunpack.i.h.bf16 %v4435_v4  ;;  %v4436_v59 = vunpack.i.l.bf16 %v4435_v4 }
 0xa9d   :  { %v1367_v60 = vsel %vm1365_vm3, %v1362_v23, %v4437_v5  ;;  %v1366_v0 = vsel %vm1365_vm3, %v1361_v6, %v4436_v59 }
 0xa9e   :  { %v1370_v27 = vpack.c.bf16 %v1367_v60, %v1366_v0 }
 0xaa0   :  { %4196 = vmatprep.mubr.msk.bf16.mxu1 %vm1395_vm4, %v1370_v27 }
 0xaa9   :  { %v4440_v17 = vpop.permute.xlu1 %4439 }
 0xaaa   :  { %v4442_v21 = vunpack.i.h.bf16 %v4440_v17  ;;  %v4441_v22 = vunpack.i.l.bf16 %v4440_v17 }
 0xaac   :  { %v1368_v26 = vsel %vm1365_vm3, %v1363_v24, %v4441_v22  ;;  %v1369_v13 = vsel %vm1365_vm3, %v1364_v11, %v4442_v21 }
 0xaad   :  { %v1371_v29 = vpack.c.bf16 %v1369_v13, %v1368_v26 }
 0xaaf   :  { %4197 = vmatmul.mubr.msk.bf16.vlgmr.msra.gmra.mxu1 %vm1395_vm4, %v1371_v29 }
 0xab0   :  { %4221 = vmatpush3.bf16.msra.mxu1 %v4515_v52 }
 0xab1   :  { %4222 = vmatprep.subr.bf16.mxu1 %v4516_v54 }
 0xab4   :  { %4223 = vmatpush3.bf16.msra.mxu1 %v4516_v54 }
 0xab5   :  { %4224 = vmatprep.subr.bf16.mxu1 %v4517_v57 }
 0xab8   :  { %4225 = vmatpush3.bf16.msra.mxu1 %v4517_v57  ;;  %v3790_v57 = vld [vmem:[%s5832_s11] ss:$0 sm:$0xff] }
 0xab9   :  { %4226 = vmatprep.subr.bf16.mxu1 %v4518_v14 }
 0xabc   :  { %4227 = vmatpush3.bf16.msra.mxu1 %v4518_v14 }
 0xabd   :  { %4228 = vmatprep.subr.bf16.mxu1 %v4519_v47 }
 0xac0   :  { %4229 = vmatpush3.bf16.msra.mxu1 %v4519_v47 }
 0xac1   :  { %4230 = vmatprep.subr.bf16.mxu1 %v4520_v58 }
 0xac4   :  { %4231 = vmatpush3.bf16.msra.mxu1 %v4520_v58 }
 0xb6f   :  { %v4198_v30 = vpop.f32.mrf.mxu1 }
 0xb70   :  { %v1445_v35 = vadd.f32 %v4198_v30, %v3774_v44  ;;  %v3779_v30 = vld [vmem:[%s5828_s6] ss:$0 sm:$0xff] }
 0xb71   :  { %v1436_v42 = vpop.f32.mrf.mxu1 }
 0xb72   :  { %v5200_v55 = vadd.f32 %v4749_v53, %v1445_v35  ;;  %v1437_v56 = vadd.f32 %v3774_v44, %v1436_v42 }
 0xb73   :  { %v4199_v32 = vpop.f32.mrf.mxu1 }
 0xb74   :  { %1461 = vadd.xlane.f32.xlu0 %v5200_v55  ;;  %v5206_v10 = vadd.f32 %v4750_v9, %v1437_v56  ;;  %v1448_v36 = vadd.f32 %v4199_v32, %v3774_v44  ;;  %v1471_v49 = vmul.f32 %v5200_v55, %v5200_v55 }
 0xb75   :  { %v1439_v7 = vpop.f32.mrf.mxu1 }
 0xb76   :  { %v1440_v37 = vadd.f32 %v3774_v44, %v1439_v7  ;;  %v5217_v43 = vadd.f32 %v4752_v41, %v1448_v36  ;;  %v1469_v46 = vmul.f32 %v5206_v10, %v5206_v10  ;;  %v3780_v36 = vld [vmem:[%s5829_s7] ss:$0 sm:$0xff] }
 0xb78   :  { %v5211_v40 = vadd.f32 %v4751_v39, %v1440_v37  ;;  %1457 = vadd.xlane.f32.xlu0 %v5206_v10  ;;  %v1472_v48 = vmul.f32 %v5217_v43, %v5217_v43 }
 0xb7a   :  { %1459 = vadd.xlane.f32.xlu1 %v5211_v40  ;;  %v1470_v45 = vmul.f32 %v5211_v40, %v5211_v40 }
 0xb7c   :  { %1463 = vadd.xlane.f32.xlu0 %v5217_v43 }
 0xb7e   :  { %1475 = vadd.xlane.f32.xlu1 %v1470_v45 }
 0xb80   :  { %1473 = vadd.xlane.f32.xlu0 %v1469_v46 }
 0xb82   :  { %1479 = vadd.xlane.f32.xlu1 %v1472_v48 }
 0xb84   :  { %1477 = vadd.xlane.f32.xlu0 %v1471_v49 }
 0xbfd   :  { %v1462_v61 = vpop.xlane.xlu0 %1461 }
 0xbfe   :  { %v1467_v60 = vmul.f32 0.03125, %v1462_v61  ;;  %v4521_v61 = vld [vmem:[%s5830_s10 + $0x8] sm:$0xff]  }
 0xbff   :  { %4232 = vmatprep.subr.bf16.mxu1 %v4521_v61 }
 0xc00   :  { %v1487_v19 = vmul.f32 %v1467_v60, %v1467_v60  ;;  %v1495_v37 = vsub.f32 %v5200_v55, %v1467_v60  ;;  %4233 = vmatpush3.bf16.msra.mxu1 %v4521_v61 }
 0xc01   :  { %v1458_v18 = vpop.xlane.xlu0 %1457 }
 0xc02   :  { %v1465_v4 = vmul.f32 0.03125, %v1458_v18  ;;  %v4522_v18 = vld [vmem:[%s5830_s10] sm:$0xff]  }
 0xc03   :  { %v1460_v62 = vpop.xlane.xlu1 %1459  ;;  %4234 = vmatprep.subr.bf16.mxu1 %v4522_v18 }
 0xc04   :  { %v1466_v63 = vmul.f32 0.03125, %v1460_v62  ;;  %v1485_v8 = vmul.f32 %v1465_v4, %v1465_v4  ;;  %v1493_v35 = vsub.f32 %v5206_v10, %v1465_v4  ;;  %4235 = vmatpush3.bf16.msra.mxu1 %v4522_v18  ;;  %v3781_v62 = vld [vmem:[%s5831_s9] ss:$0 sm:$0xff] }
 0xc05   :  { %v1464_v3 = vpop.xlane.xlu0 %1463 }
 0xc06   :  { %v1486_v59 = vmul.f32 %v1466_v63, %v1466_v63  ;;  %v1468_v6 = vmul.f32 0.03125, %v1464_v3  ;;  %v1494_v29 = vsub.f32 %v5211_v40, %v1466_v63 }
 0xc07   :  { %v1476_v5 = vpop.xlane.xlu1 %1475 }
 0xc08   :  { %v1482_v23 = vmul.f32 0.03125, %v1476_v5  ;;  %v1488_v28 = vmul.f32 %v1468_v6, %v1468_v6  ;;  %v1496_v56 = vsub.f32 %v5217_v43, %v1468_v6 }
 0xc09   :  { %v1474_v0 = vpop.xlane.xlu0 %1473 }
 0xc0a   :  { %v1490_v27 = vsub.f32 %v1482_v23, %v1486_v59  ;;  %v1481_v25 = vmul.f32 0.03125, %v1474_v0 }
 0xc0b   :  { %v1480_v12 = vpop.xlane.xlu1 %1479 }
 0xc0c   :  { %v1498_v15 = vadd.f32 1e-12, %v1490_v27  ;;  %v1489_v16 = vsub.f32 %v1481_v25, %v1485_v8  ;;  %v1484_v17 = vmul.f32 0.03125, %v1480_v12 }
 0xc0d   :  { %v1478_v20 = vpop.xlane.xlu0 %1477 }
 0xc0e   :  { %4637 = vrsqrt.f32 %v1498_v15  ;;  %v1497_v21 = vadd.f32 1e-12, %v1489_v16  ;;  %v1492_v22 = vsub.f32 %v1484_v17, %v1488_v28  ;;  %v1483_v24 = vmul.f32 0.03125, %v1478_v20 }
 0xc10   :  { %4639 = vrsqrt.f32 %v1497_v21  ;;  %v1500_v11 = vadd.f32 1e-12, %v1492_v22  ;;  %v1491_v26 = vsub.f32 %v1483_v24, %v1487_v19 }
 0xc12   :  { %4641 = vrsqrt.f32 %v1500_v11  ;;  %v1499_v13 = vadd.f32 1e-12, %v1491_v26 }
 0xc14   :  { %4643 = vrsqrt.f32 %v1499_v13 }
 0xc1b   :  { %v4638_v44 = vpop.eup %4637 }
 0xc1c   :  { %v1506_v42 = vmul.f32 %v4638_v44, %v1494_v29 }
 0xc1d   :  { %v4640_v53 = vpop.eup %4639 }
 0xc1e   :  { %v1505_v32 = vmul.f32 %v4640_v53, %v1493_v35  ;;  %v1516_v7 = vmul.f32 %v3779_v30, %v1506_v42 }
 0xc1f   :  { %v4642_v9 = vpop.eup %4641 }
 0xc20   :  { %v1515_v39 = vmul.f32 %v3779_v30, %v1505_v32  ;;  %v1508_v40 = vmul.f32 %v4642_v9, %v1496_v56  ;;  %v5265_v46 = vadd.f32 %v3780_v36, %v1516_v7 }
 0xc21   :  { %v4644_v41 = vpop.eup %4643 }
 0xc22   :  { %v5263_v45 = vadd.f32 %v3780_v36, %v1515_v39  ;;  %v1507_v10 = vmul.f32 %v4644_v41, %v1495_v37  ;;  %v1518_v48 = vmul.f32 %v3779_v30, %v1508_v40 }
 0xc24   :  { %v1529_v43 = vpack.c.bf16 %v5265_v46, %v5263_v45  ;;  %v1517_v49 = vmul.f32 %v3779_v30, %v1507_v10  ;;  %v5271_v51 = vadd.f32 %v3780_v36, %v1518_v48 }
 0xc26   :  { %4216 = vmatprep.mubr.bf16.mxu0 %v1529_v43  ;;  %v5269_v50 = vadd.f32 %v3780_v36, %v1517_v49 }
 0xc28   :  { %v1530_v55 = vpack.c.bf16 %v5271_v51, %v5269_v50 }
 0xc2a   :  { %4217 = vmatmul.mubr.bf16.vlgmr.msra.gmra.mxu0 %v1530_v55 }
 0xc2b   :  { %2100 = vmatprep.mubr.bf16.mxu0 %v4757_v1 }
 0xcea   :  { %v4218_v63 = vpop.f32.mrf.mxu0 }
 0xceb   :  { %v1645_v3 = vadd.f32 %v4218_v63, %v3781_v62 }
 0xcec   :  { %v1636_v4 = vpop.f32.mrf.mxu0 }
 0xced   :  { %v1653_v5 = vmul.f32 %v1645_v3, %v1645_v3  ;;  %v1637_v59 = vadd.f32 %v3781_v62, %v1636_v4 }
 0xcee   :  { %v4219_v6 = vpop.f32.mrf.mxu0 }
 0xcef   :  { %v1657_v23 = vmul.f32 %v1653_v5, %v1645_v3  ;;  %v1651_v60 = vmul.f32 %v1637_v59, %v1637_v59  ;;  %v1648_v0 = vadd.f32 %v4219_v6, %v3781_v62 }
 0xcf0   :  { %v1639_v8 = vpop.f32.mrf.mxu0 }
 0xcf1   :  { %v1661_v27 = vmul.f32 0.044715, %v1657_v23  ;;  %v1655_v25 = vmul.f32 %v1651_v60, %v1637_v59  ;;  %v1654_v12 = vmul.f32 %v1648_v0, %v1648_v0  ;;  %v1640_v28 = vadd.f32 %v3781_v62, %v1639_v8  ;;  %v4523_v60 = vld [vmem:[%s5821_s2 + $0x168] ss:$12 sps:$4 sm:$0xff]  }
 0xcf2   :  { %v4531_v8 = vld [vmem:[%s5821_s2 + $0x13c] ss:$12 sps:$4 sm:$0xff]  }
 0xcf3   :  { %v1665_v15 = vadd.f32 %v1661_v27, %v1645_v3  ;;  %v1659_v16 = vmul.f32 0.044715, %v1655_v25  ;;  %v1658_v17 = vmul.f32 %v1654_v12, %v1648_v0  ;;  %v1652_v19 = vmul.f32 %v1640_v28, %v1640_v28  ;;  %v4532_v27 = vld [vmem:[%s5821_s2 + $0x170] ss:$12 sps:$4 sm:$0xff]   ;;  %v4529_v25 = vld [vmem:[%s5821_s2 + $0x138] ss:$12 sps:$4 sm:$0xff]  }
 0xcf4   :  { %4240 = vmatprep.subr.bf16.mxu1 %v4532_v27  ;;  %v4535_v12 = vld [vmem:[%s5821_s2 + $0x124] ss:$12 sps:$4 sm:$0xff]  }
 0xcf5   :  { %v1669_v20 = vmul.f32 0.7978846, %v1665_v15  ;;  %v1663_v21 = vadd.f32 %v1659_v16, %v1637_v59  ;;  %v1662_v22 = vmul.f32 0.044715, %v1658_v17  ;;  %v1656_v24 = vmul.f32 %v1652_v19, %v1640_v28  ;;  %v4533_v15 = vld [vmem:[%s5821_s2 + $0x120] ss:$12 sps:$4 sm:$0xff]  }
 0xcf6   :  { %v4539_v16 = vld [vmem:[%s5821_s2 + $0x10c] ss:$12 sps:$4 sm:$0xff]   ;;  %v4537_v19 = vld [vmem:[%s5821_s2 + $0x108] ss:$12 sps:$4 sm:$0xff]  }
 0xcf7   :  { %v1667_v11 = vmul.f32 0.7978846, %v1663_v21  ;;  %v1666_v26 = vadd.f32 %v1662_v22, %v1648_v0  ;;  %v1660_v13 = vmul.f32 0.044715, %v1656_v24  ;;  %4645 = vtanh.f32 %v1669_v20  ;;  %v4540_v17 = vld [vmem:[%s5821_s2 + $0x140] ss:$12 sps:$4 sm:$0xff]  }
 0xcf8   :  { %v4541_v20 = vld [vmem:[%s5821_s2 + $0xf0] ss:$12 sps:$4 sm:$0xff]   ;;  %v4543_v21 = vld [vmem:[%s5821_s2 + $0xf4] ss:$12 sps:$4 sm:$0xff]  }
 0xcf9   :  { %4647 = vtanh.f32 %v1667_v11  ;;  %v1670_v29 = vmul.f32 0.7978846, %v1666_v26  ;;  %v1664_v44 = vadd.f32 %v1660_v13, %v1640_v28  ;;  %v4544_v22 = vld [vmem:[%s5821_s2 + $0x128] ss:$12 sps:$4 sm:$0xff]   ;;  %v4548_v11 = vld [vmem:[%s5821_s2 + $0x110] ss:$12 sps:$4 sm:$0xff]  }
 0xcfa   :  { %v4547_v24 = vld [vmem:[%s5821_s2 + $0xdc] ss:$12 sps:$4 sm:$0xff]   ;;  %v4545_v26 = vld [vmem:[%s5821_s2 + $0xd8] ss:$12 sps:$4 sm:$0xff]  }
 0xcfb   :  { %4649 = vtanh.f32 %v1670_v29  ;;  %v1668_v30 = vmul.f32 0.7978846, %v1664_v44  ;;  %v4551_v13 = vld [vmem:[%s5821_s2 + $0xc4] ss:$12 sps:$4 sm:$0xff]   ;;  %v4549_v44 = vld [vmem:[%s5821_s2 + $0xc0] ss:$12 sps:$4 sm:$0xff]  }
 0xcfc   :  { %v4552_v29 = vld [vmem:[%s5821_s2 + $0xf8] ss:$12 sps:$4 sm:$0xff]  }
 0xcfd   :  { %4651 = vtanh.f32 %v1668_v30  ;;  %v4553_v30 = vld [vmem:[%s5821_s2 + $0xe0] ss:$12 sps:$4 sm:$0xff]  }
 0xd04   :  { %v4646_v35 = vpop.eup %4645 }
 0xd05   :  { %v1677_v32 = vadd.f32 1.0, %v4646_v35  ;;  %v4554_v35 = vld [vmem:[%s5821_s2 + $0xc8] ss:$12 sps:$4 sm:$0xff]  }
 0xd06   :  { %v4648_v42 = vpop.eup %4647 }
 0xd07   :  { %v1675_v53 = vadd.f32 1.0, %v4648_v42  ;;  %v1681_v40 = vmul.f32 0.5, %v1677_v32 }
 0xd08   :  { %v4650_v56 = vpop.eup %4649 }
 0xd09   :  { %v1678_v7 = vadd.f32 1.0, %v4650_v56  ;;  %v1679_v39 = vmul.f32 0.5, %v1675_v53  ;;  %v1685_v49 = vmul.f32 %v1681_v40, %v1645_v3 }
 0xd0a   :  { %v4652_v9 = vpop.eup %4651 }
 0xd0b   :  { %v1682_v36 = vmul.f32 0.5, %v1678_v7  ;;  %v1676_v37 = vadd.f32 1.0, %v4652_v9  ;;  %v1683_v48 = vmul.f32 %v1679_v39, %v1637_v59 }
 0xd0d   :  { %v1680_v41 = vmul.f32 0.5, %v1676_v37  ;;  %v1686_v10 = vmul.f32 %v1682_v36, %v1648_v0  ;;  %v4526_v0 = vld [vmem:[%s5821_s2 + $0x150] ss:$12 sps:$4 sm:$0xff]  }
 0xd0f   :  { %v1684_v43 = vmul.f32 %v1680_v41, %v1640_v28  ;;  %v1688_v52 = vpack.c.bf16 %v1686_v10, %v1685_v49  ;;  %v4536_v28 = vld [vmem:[%s5821_s2 + $0x158] ss:$12 sps:$4 sm:$0xff]  }
 0xd11   :  { %v1687_v55 = vpack.c.bf16 %v1684_v43, %v1683_v48 }
 0xd13   :  { %4236 = vmatprep.mubr.bf16.mxu1 %v1687_v55 }
 0xd14   :  { %4237 = vmatmul.mubr.bf16.vlgmr.msra.gmra.mxu1 %v1688_v52 }
 0xd15   :  { %4241 = vmatpush3.bf16.msra.mxu1 %v4532_v27 }
 0xd16   :  { %4242 = vmatprep.subr.bf16.mxu1 %v4536_v28 }
 0xd19   :  { %4243 = vmatpush3.bf16.msra.mxu1 %v4536_v28 }
 0xd1a   :  { %4244 = vmatprep.subr.bf16.mxu1 %v4540_v17 }
 0xd1d   :  { %4245 = vmatpush3.bf16.msra.mxu1 %v4540_v17 }
 0xd1e   :  { %4246 = vmatprep.subr.bf16.mxu1 %v4544_v22 }
 0xd21   :  { %4247 = vmatpush3.bf16.msra.mxu1 %v4544_v22 }
 0xd22   :  { %4248 = vmatprep.subr.bf16.mxu1 %v4548_v11 }
 0xd25   :  { %4249 = vmatpush3.bf16.msra.mxu1 %v4548_v11 }
 0xd26   :  { %4250 = vmatprep.subr.bf16.mxu1 %v4552_v29 }
 0xd29   :  { %4251 = vmatpush3.bf16.msra.mxu1 %v4552_v29 }
 0xd2a   :  { %4252 = vmatprep.subr.bf16.mxu1 %v4553_v30 }
 0xd2d   :  { %4253 = vmatpush3.bf16.msra.mxu1 %v4553_v30 }
 0xd2e   :  { %4254 = vmatprep.subr.bf16.mxu1 %v4554_v35 }
 0xd31   :  { %4255 = vmatpush3.bf16.msra.mxu1 %v4554_v35 }
 0xd32   :  { %4260 = vmatprep.subr.bf16.mxu1 %v4758_v31 }
 0xdd4   :  { %v4238_v54 = vpop.f32.mrf.mxu1 }
 0xdd5   :  { %v1803_v63 = vadd.f32 %v4238_v54, %v3790_v57 }
 0xdd6   :  { %v1794_v14 = vpop.f32.mrf.mxu1 }
 0xdd7   :  { %v1795_v47 = vadd.f32 %v3790_v57, %v1794_v14  ;;  %v5317_v5 = vadd.f32 %v1803_v63, %v5269_v50  ;;  %v4525_v50 = vld [vmem:[%s5821_s2 + $0x16c] ss:$12 sps:$4 sm:$0xff]  }
 0xdd8   :  { %v4239_v58 = vpop.f32.mrf.mxu1  ;;  %2068 = vmatprep.subr.bf16.mxu0 %v4525_v50 }
 0xdd9   :  { %v5307_v61 = vadd.f32 %v1795_v47, %v5263_v45  ;;  %v1806_v59 = vadd.f32 %v4239_v58, %v3790_v57  ;;  %2069 = vmatpush1.bf16.msra.mxu0 %v4523_v60  ;;  %v3799_v60 = vld [vmem:[%s5833_s12] ss:$0 sm:$0xff] }
 0xdda   :  { %v1797_v18 = vpop.f32.mrf.mxu1 }
 0xddb   :  { %v1798_v62 = vadd.f32 %v3790_v57, %v1797_v18  ;;  %1815 = vadd.xlane.f32.xlu0 %v5307_v61  ;;  %v1827_v4 = vmul.f32 %v5307_v61, %v5307_v61  ;;  %v5323_v6 = vadd.f32 %v1806_v59, %v5271_v51  ;;  %v4528_v51 = vld [vmem:[%s5821_s2 + $0x154] ss:$12 sps:$4 sm:$0xff]  }
 0xddc   :  { %2070 = vmatprep.subr.bf16.mxu0 %v4528_v51 }
 0xddd   :  { %v5311_v3 = vadd.f32 %v1798_v62, %v5265_v46  ;;  %v1829_v46 = vmul.f32 %v5317_v5, %v5317_v5  ;;  %v1830_v23 = vmul.f32 %v5323_v6, %v5323_v6  ;;  %2071 = vmatpush1.bf16.msra.mxu0 %v4526_v0 }
 0xdde   :  { %2072 = vmatprep.subr.bf16.mxu0 %v4531_v8 }
 0xddf   :  { %1817 = vadd.xlane.f32.xlu1 %v5311_v3  ;;  %1831 = vadd.xlane.f32.xlu0 %v1827_v4  ;;  %v1828_v45 = vmul.f32 %v5311_v3, %v5311_v3 }
 0xde1   :  { %2073 = vmatpush1.bf16.msra.mxu0 %v4529_v25  ;;  %v3800_v25 = vld [vmem:[%s5834_s13] ss:$0 sm:$0xff] }
 0xde2   :  { %2074 = vmatprep.subr.bf16.mxu0 %v4535_v12 }
 0xde3   :  { %1833 = vadd.xlane.f32.xlu1 %v1828_v45  ;;  %1819 = vadd.xlane.f32.xlu0 %v5317_v5 }
 0xde5   :  { %2075 = vmatpush1.bf16.msra.mxu0 %v4533_v15 }
 0xde6   :  { %2076 = vmatprep.subr.bf16.mxu0 %v4539_v16 }
 0xde7   :  { %1821 = vadd.xlane.f32.xlu1 %v5323_v6  ;;  %1835 = vadd.xlane.f32.xlu0 %v1829_v46 }
 0xde9   :  { %2077 = vmatpush1.bf16.msra.mxu0 %v4537_v19 }
 0xdea   :  { %2078 = vmatprep.subr.bf16.mxu0 %v4543_v21 }
 0xdeb   :  { %1837 = vadd.xlane.f32.xlu1 %v1830_v23 }
 0xded   :  { %2079 = vmatpush1.bf16.msra.mxu0 %v4541_v20 }
 0xdee   :  { %2080 = vmatprep.subr.bf16.mxu0 %v4547_v24 }
 0xdf1   :  { %2081 = vmatpush1.bf16.msra.mxu0 %v4545_v26 }
 0xdf2   :  { %2082 = vmatprep.subr.bf16.mxu0 %v4551_v13 }
 0xdf5   :  { %2083 = vmatpush1.bf16.msra.mxu0 %v4549_v44 }
 0xdf6   :  { %4266 = vmatprep.subr.bf16.mxu0 %v4758_v31 }
 0xe64   :  { %v1816_v42 = vpop.xlane.xlu0 %1815 }
 0xe65   :  { %v1823_v53 = vmul.f32 0.03125, %v1816_v42 }
 0xe67   :  { %v1843_v7 = vmul.f32 %v1823_v53, %v1823_v53  ;;  %v1851_v46 = vsub.f32 %v5307_v61, %v1823_v53 }
 0xe68   :  { %v1818_v56 = vpop.xlane.xlu1 %1817  ;;  %v1832_v32 = vpop.xlane.xlu0 %1831 }
 0xe69   :  { %v1824_v9 = vmul.f32 0.03125, %v1818_v56  ;;  %v1839_v36 = vmul.f32 0.03125, %v1832_v32 }
 0xe6b   :  { %v1847_v37 = vsub.f32 %v1839_v36, %v1843_v7  ;;  %v1844_v41 = vmul.f32 %v1824_v9, %v1824_v9  ;;  %v1852_v51 = vsub.f32 %v5311_v3, %v1824_v9 }
 0xe6c   :  { %v1834_v39 = vpop.xlane.xlu1 %1833  ;;  %v1820_v40 = vpop.xlane.xlu0 %1819 }
 0xe6d   :  { %v1855_v10 = vadd.f32 1e-12, %v1847_v37  ;;  %v1840_v48 = vmul.f32 0.03125, %v1834_v39  ;;  %v1825_v43 = vmul.f32 0.03125, %v1820_v40 }
 0xe6f   :  { %4653 = vrsqrt.f32 %v1855_v10  ;;  %v1848_v49 = vsub.f32 %v1840_v48, %v1844_v41  ;;  %v1845_v57 = vmul.f32 %v1825_v43, %v1825_v43  ;;  %v1853_v12 = vsub.f32 %v5317_v5, %v1825_v43 }
 0xe70   :  { %v1822_v55 = vpop.xlane.xlu1 %1821  ;;  %v1836_v52 = vpop.xlane.xlu0 %1835 }
 0xe71   :  { %v1856_v54 = vadd.f32 1e-12, %v1848_v49  ;;  %v1826_v14 = vmul.f32 0.03125, %v1822_v55  ;;  %v1841_v47 = vmul.f32 0.03125, %v1836_v52 }
 0xe73   :  { %4655 = vrsqrt.f32 %v1856_v54  ;;  %v1849_v58 = vsub.f32 %v1841_v47, %v1845_v57  ;;  %v1846_v62 = vmul.f32 %v1826_v14, %v1826_v14  ;;  %v1854_v19 = vsub.f32 %v5323_v6, %v1826_v14 }
 0xe74   :  { %v1838_v18 = vpop.xlane.xlu1 %1837 }
 0xe75   :  { %v1857_v63 = vadd.f32 1e-12, %v1849_v58  ;;  %v1842_v4 = vmul.f32 0.03125, %v1838_v18 }
 0xe77   :  { %4657 = vrsqrt.f32 %v1857_v63  ;;  %v1850_v59 = vsub.f32 %v1842_v4, %v1846_v62 }
 0xe79   :  { %v1858_v45 = vadd.f32 1e-12, %v1850_v59 }
 0xe7b   :  { %4659 = vrsqrt.f32 %v1858_v45 }
 0xe7c   :  { %v4654_v50 = vpop.eup %4653 }
 0xe7d   :  { %v1863_v23 = vmul.f32 %v4654_v50, %v1851_v46 }
 0xe7f   :  { %v1873_v27 = vmul.f32 %v3799_v60, %v1863_v23  ;;  %v5473_v23 = vld [vmem:[%s5824_s1] sm:$0xff] }
 0xe80   :  { %v4656_v0 = vpop.eup %4655 }
 0xe81   :  { %v1864_v8 = vmul.f32 %v4656_v0, %v1852_v51  ;;  %v5413_v15 = vadd.f32 %v3800_v25, %v1873_v27  ;;  %v5480_v27 = vld [vmem:[%s5824_s1 + $0x8] sm:$0xff] }
 0xe83   :  { %v1874_v28 = vmul.f32 %v3799_v60, %v1864_v8 }
 0xe84   :  { %v4658_v61 = vpop.eup %4657 }
 0xe85   :  { %v5415_v16 = vadd.f32 %v3800_v25, %v1874_v28  ;;  %v1865_v17 = vmul.f32 %v4658_v61, %v1853_v12 }
 0xe87   :  { %v1887_v3 = vpack.c.bf16 %v5415_v16, %v5413_v15  ;;  %v1875_v22 = vmul.f32 %v3799_v60, %v1865_v17  ;;  %v5487_v17 = vld [vmem:[%s5824_s1 + $0x10] sm:$0xff] }
 0xe88   :  { %v4660_v20 = vpop.eup %4659 }
 0xe89   :  { %2101 = vmatmul.mubr.bf16.vlgmr.msra.gmra.mxu0 %v1887_v3  ;;  %4256 = vmatprep.mubr.bf16.mxu1 %v1887_v3  ;;  %v1866_v21 = vmul.f32 %v4660_v20, %v1854_v19  ;;  %v5421_v24 = vadd.f32 %v3800_v25, %v1875_v22  ;;  %v5494_v22 = vld [vmem:[%s5824_s1 + $0x18] sm:$0xff] }
 0xe8a   :  { %2110 = vmatprep.mubr.bf16.mxu0 %v4757_v1  ;;  %v3833_v1 = vld [vmem:[%s5823_s3 + $0x3] sm:$0x7] }
 0xe8b   :  { %v1876_v5 = vmul.f32 %v3799_v60, %v1866_v21  ;;  %v1932_v29 = vrot.slane %v3833_v1, %v98_v34  ;;  %v1928_v30 = vrot.slane %v3833_v1, %v94_v38  ;;  %v1936_v38 = vrot.slane %v3833_v1, %v102_v2 }
 0xe8d   :  { %v5423_v11 = vadd.f32 %v3800_v25, %v1876_v5 }
 0xe8f   :  { %v1888_v26 = vpack.c.bf16 %v5423_v11, %v5421_v24 }
 0xe91   :  { %2111 = vmatmul.mubr.bf16.gmra.mxu0 %v1888_v26  ;;  %4257 = vmatmul.mubr.bf16.vlgmr.msra.gmra.mxu1 %v1888_v26 }
 0xe92   :  { %4262 = vmatprep.mubr.msk.bf16.mxu1 %vm4759_vm0, %v4758_v31  ;;  %4268 = vmatprep.mubr.msk.bf16.mxu0 %vm4759_vm0, %v4758_v31 }
 0xf49   :  { %v2102_v6 = vpop.f32.mrf.mxu0 }
 0xf4a   :  { %v2103_v36 = vadd.f32 %v2102_v6, %v1928_v30 }
 0xf4b   :  { %v2104_v13 = vpop.f32.mrf.mxu0 }
 0xf4c   :  { %v2105_v42 = vadd.f32 %v2104_v13, %v1932_v29  ;;  %v2170_v48 = vmul.f32 0.35355338, %v2103_v36 }
 0xf4d   :  { %v2106_v44 = vpop.f32.mrf.mxu0 }
 0xf4e   :  { %v2107_v7 = vadd.f32 %v2106_v44, %v1928_v30 }
 0xf4f   :  { %v2108_v35 = vpop.f32.mrf.mxu0 }
 0xf50   :  { %v2109_v53 = vadd.f32 %v2108_v35, %v1932_v29  ;;  %v2171_v10 = vmul.f32 0.35355338, %v2107_v7 }
 0xf51   :  { %v2112_v56 = vpop.f32.mrf.mxu0  ;;  %v4258_v32 = vpop.f32.mrf.mxu1 }
 0xf52   :  { %v5438_v9 = vpack.c.bf16 %v2109_v53, %v2105_v42  ;;  %v5445_v14 = vpack.c.bf16 %v2171_v10, %v2170_v48  ;;  %v2113_v62 = vadd.f32 %v2112_v56, %v1928_v30  ;;  %v2164_v59 = vadd.f32 %v4258_v32, %v1936_v38 }
 0xf53   :  { %v2114_v37 = vpop.f32.mrf.mxu0  ;;  %v2155_v39 = vpop.f32.mrf.mxu1 }
 0xf54   :  { %v2184_v40 = vsel %vm347_vm1, %v5438_v9, 0  ;;  %v2115_v55 = vadd.f32 %v2114_v37, %v1932_v29  ;;  %v2156_v52 = vadd.f32 %v2155_v39, %v1936_v38  ;;  %v2172_v4 = vmul.f32 0.35355338, %v2113_v62 }
 0xf55   :  { %v2116_v41 = vpop.f32.mrf.mxu0  ;;  %v4259_v34 = vpop.f32.mrf.mxu1  ;;  %4261 = vmatpush3.bf16.xpose.msra.mxu1 %v2184_v40 }
 0xf56   :  { %4272 = vmatprep.subr.bf16.mxu1 %v4758_v31  ;;  %v2117_v47 = vadd.f32 %v2116_v41, %v1928_v30  ;;  %v2167_v63 = vadd.f32 %v4259_v34, %v1936_v38 }
 0xf57   :  { %v2118_v43 = vpop.f32.mrf.mxu0  ;;  %v2158_v49 = vpop.f32.mrf.mxu1 }
 0xf58   :  { %v2119_v54 = vadd.f32 %v2118_v43, %v1932_v29  ;;  %v2159_v57 = vadd.f32 %v2158_v49, %v1936_v38  ;;  %v2173_v2 = vmul.f32 0.35355338, %v2117_v47  ;;  %v5462_v46 = vpack.c.bf16 %v2167_v63, %v2164_v59 }
 0xf5a   :  { %v5447_v58 = vpack.c.bf16 %v2119_v54, %v2115_v55  ;;  %v5449_v18 = vpack.c.bf16 %v2159_v57, %v2156_v52  ;;  %v5460_v45 = vpack.c.bf16 %v2173_v2, %v2172_v4 }
 0xf5c   :  { %4263 = vmatmul.mubr.msk.bf16.vlgmr.msra.gmra.mxu1 %vm347_vm1, %v5445_v14  ;;  %v2231_v33 = vsel %vm347_vm1, %v5447_v58, 0 }
 0xf5d   :  { %4267 = vmatpush3.bf16.xpose.msra.mxu0 %v2231_v33  ;;  %4273 = vmatpush3.bf16.msra.mxu1 %v5449_v18 }
 0xf5e   :  { %4278 = vmatprep.subr.bf16.mxu0 %v4758_v31  ;;  %4274 = vmatprep.mubr.msk.bf16.mxu1 %vm4759_vm0, %v4758_v31 }
 0xf5f   :  { %4284 = vmatprep.subr.bf16.mxu1 %v4758_v31 }
 0xf64   :  { %4269 = vmatmul.mubr.msk.bf16.vlgmr.msra.gmra.mxu0 %vm347_vm1, %v5460_v45 }
 0xf65   :  { %4279 = vmatpush3.bf16.msra.mxu0 %v5462_v46  ;;  %4280 = vmatprep.mubr.msk.bf16.mxu0 %vm4759_vm0, %v4758_v31 }
 0xf66   :  { %4290 = vmatprep.subr.bf16.mxu0 %v4758_v31 }
0x101c   :  { %v2220_v50 = vpop.f32.mrf.mxu1 }
0x101d   :  { %v2221_v60 = vadd.f32 %v5473_v23, %v2220_v50 }
0x101e   :  { %v4264_v51 = vpop.f32.mrf.mxu1 }
0x101f   :  { %v2274_v0 = vsel %vm442_vm2, %v2221_v60, -inf }
0x1020   :  { %2275 = vmax.xlane.f32.xlu0 %v2274_v0  ;;  %v2223_v8 = vpop.f32.mrf.mxu1 }
0x1021   :  { %v2224_v25 = vadd.f32 %v5480_v27, %v2223_v8 }
0x1022   :  { %v4265_v12 = vpop.f32.mrf.mxu1 }
0x1023   :  { %v2277_v28 = vsel %vm442_vm2, %v2224_v25, -inf }
0x1024   :  { %2278 = vmax.xlane.f32.xlu1 %v2277_v28  ;;  %v2267_v61 = vpop.f32.mrf.mxu0 }
0x1025   :  { %v2268_v19 = vadd.f32 %v5487_v17, %v2267_v61 }
0x1026   :  { %v4270_v3 = vpop.f32.mrf.mxu0 }
0x1027   :  { %v2280_v20 = vsel %vm442_vm2, %v2268_v19, -inf }
0x1028   :  { %2281 = vmax.xlane.f32.xlu0 %v2280_v20  ;;  %v2270_v21 = vpop.f32.mrf.mxu0 }
0x1029   :  { %v2271_v5 = vadd.f32 %v5494_v22, %v2270_v21 }
0x102a   :  { %v4271_v26 = vpop.f32.mrf.mxu0 }
0x102b   :  { %v2283_v6 = vsel %vm442_vm2, %v2271_v5, -inf }
0x102c   :  { %2284 = vmax.xlane.f32.xlu1 %v2283_v6 }
0x10a9   :  { %v2276_v1 = vpop.xlane.xlu0 %2275 }
0x10aa   :  { %v2286_v13 = vsub.f32 %v2221_v60, %v2276_v1 }
0x10ac   :  { %v2290_v29 = vmul.f32 1.442695, %v2286_v13 }
0x10ad   :  { %v2279_v44 = vpop.xlane.xlu1 %2278 }
0x10ae   :  { %4661 = vpow2.f32 %v2290_v29  ;;  %v2287_v30 = vsub.f32 %v2224_v25, %v2279_v44 }
0x10b0   :  { %v2292_v35 = vmul.f32 1.442695, %v2287_v30 }
0x10b1   :  { %v2282_v42 = vpop.xlane.xlu0 %2281 }
0x10b2   :  { %4663 = vpow2.f32 %v2292_v35  ;;  %v2288_v53 = vsub.f32 %v2268_v19, %v2282_v42 }
0x10b4   :  { %v2294_v56 = vmul.f32 1.442695, %v2288_v53 }
0x10b5   :  { %v2285_v41 = vpop.xlane.xlu1 %2284 }
0x10b6   :  { %4665 = vpow2.f32 %v2294_v56  ;;  %v2289_v34 = vsub.f32 %v2271_v5, %v2285_v41 }
0x10b8   :  { %v2296_v10 = vmul.f32 1.442695, %v2289_v34 }
0x10ba   :  { %4667 = vpow2.f32 %v2296_v10 }
0x10bb   :  { %v4662_v32 = vpop.eup %4661 }
0x10bc   :  { %v2298_v7 = vsel %vm442_vm2, %v4662_v32, 0.0 }
0x10bd   :  { %2299 = vadd.xlane.f32.xlu0 %v2298_v7 }
0x10bf   :  { %v4664_v36 = vpop.eup %4663 }
0x10c0   :  { %v2301_v37 = vsel %vm442_vm2, %v4664_v36, 0.0 }
0x10c1   :  { %2302 = vadd.xlane.f32.xlu1 %v2301_v37 }
0x10c3   :  { %v4666_v39 = vpop.eup %4665 }
0x10c4   :  { %v2304_v40 = vsel %vm442_vm2, %v4666_v39, 0.0 }
0x10c5   :  { %2305 = vadd.xlane.f32.xlu0 %v2304_v40 }
0x10c7   :  { %v4668_v38 = vpop.eup %4667 }
0x10c8   :  { %v2307_v48 = vsel %vm442_vm2, %v4668_v38, 0.0 }
0x10d2   :  { %2465 = vrot.lane.b32.xlu1 %v5447_v58, %s4760_s15 }
0x10db   :  { %2412 = vrot.lane.b32.xlu0 %v5438_v9, %s4760_s15 }
0x10f6   :  { %2308 = vadd.xlane.f32.xlu1 %v2307_v48 }
0x1107   :  { %2409 = vrot.lane.b32.xlu1 %v5445_v14, %s4760_s15 }
0x110b   :  { %2462 = vrot.lane.b32.xlu1 %v5460_v45, %s4760_s15 }
0x1146   :  { %v2300_v43 = vpop.xlane.xlu0 %2299 }
0x1147   :  { %4669 = vrcp.f32 %v2300_v43 }
0x114a   :  { %v2303_v49 = vpop.xlane.xlu1 %2302 }
0x114b   :  { %4671 = vrcp.f32 %v2303_v49 }
0x114e   :  { %v2306_v55 = vpop.xlane.xlu0 %2305  ;;  %v2466_v63 = vpop.permute.xlu1 %2465 }
0x114f   :  { %4673 = vrcp.f32 %v2306_v55  ;;  %v2471_v25 = vsel %vm347_vm1, %v2466_v63, 0 }
0x1152   :  { %v2413_v62 = vpop.permute.xlu0 %2412 }
0x1153   :  { %v2418_v2 = vsel %vm347_vm1, %v2413_v62, 0 }
0x1154   :  { %v4670_v52 = vpop.eup %4669 }
0x1155   :  { %v2314_v57 = vmul.f32 %v4670_v52, %v4662_v32 }
0x1158   :  { %v4672_v54 = vpop.eup %4671 }
0x1159   :  { %v2315_v47 = vmul.f32 %v4672_v54, %v4664_v36 }
0x115b   :  { %v2318_v33 = vpack.c.bf16 %v2315_v47, %v2314_v57 }
0x115c   :  { %v4674_v50 = vpop.eup %4673 }
0x115d   :  { %4275 = vmatmul.mubr.msk.bf16.vlgmr.msra.gmra.mxu1 %vm442_vm2, %v2318_v33  ;;  %v2316_v51 = vmul.f32 %v4674_v50, %v4666_v39 }
0x115e   :  { %4285 = vmatpush3.bf16.xpose.msra.mxu1 %v2418_v2  ;;  %4286 = vmatprep.mubr.msk.bf16.mxu1 %vm4759_vm0, %v4758_v31 }
0x115f   :  { %4296 = vmatprep.subr.bf16.mxu1 %v4758_v31 }
0x117f   :  { %v2309_v4 = vpop.xlane.xlu1 %2308 }
0x1180   :  { %4675 = vrcp.f32 %v2309_v4 }
0x1183   :  { %v2410_v59 = vpop.permute.xlu1 %2409 }
0x1184   :  { %4287 = vmatmul.mubr.msk.bf16.vlgmr.msra.gmra.mxu1 %vm347_vm1, %v2410_v59 }
0x1185   :  { %4298 = vmatprep.mubr.msk.bf16.mxu1 %vm4759_vm0, %v4758_v31 }
0x1187   :  { %v2463_v12 = vpop.permute.xlu1 %2462 }
0x118d   :  { %v4676_v60 = vpop.eup %4675 }
0x118e   :  { %v2317_v0 = vmul.f32 %v4676_v60, %v4668_v38 }
0x1190   :  { %v2319_v8 = vpack.c.bf16 %v2317_v0, %v2316_v51 }
0x1192   :  { %4281 = vmatmul.mubr.msk.bf16.vlgmr.msra.gmra.mxu0 %vm442_vm2, %v2319_v8 }
0x1193   :  { %4291 = vmatpush3.bf16.xpose.msra.mxu0 %v2471_v25  ;;  %4292 = vmatprep.mubr.msk.bf16.mxu0 %vm4759_vm0, %v4758_v31 }
0x1194   :  { %4302 = vmatprep.subr.bf16.mxu0 %v4758_v31 }
0x119a   :  { %4293 = vmatmul.mubr.msk.bf16.vlgmr.msra.gmra.mxu0 %vm347_vm1, %v2463_v12 }
0x119b   :  { %4304 = vmatprep.mubr.msk.bf16.mxu0 %vm4759_vm0, %v4758_v31 }
0x121d   :  { %v5526_v28 = vpop.f32.mrf.mxu1 }
0x121f   :  { %v4276_v61 = vpop.f32.mrf.mxu1 }
0x1221   :  { %v5528_v19 = vpop.f32.mrf.mxu1 }
0x1223   :  { %v4277_v3 = vpop.f32.mrf.mxu1 }
0x1244   :  { %v2454_v20 = vpop.f32.mrf.mxu1 }
0x1245   :  { %v2455_v21 = vadd.f32 %v5473_v23, %v2454_v20 }
0x1246   :  { %v4288_v5 = vpop.f32.mrf.mxu1 }
0x1247   :  { %v2514_v26 = vsel %vm442_vm2, %v2455_v21, -inf }
0x1248   :  { %2515 = vmax.xlane.f32.xlu0 %v2514_v26  ;;  %v2457_v6 = vpop.f32.mrf.mxu1 }
0x1249   :  { %v2458_v1 = vadd.f32 %v5480_v27, %v2457_v6 }
0x124a   :  { %v4289_v13 = vpop.f32.mrf.mxu1 }
0x124b   :  { %v2517_v29 = vsel %vm442_vm2, %v2458_v1, -inf }
0x124c   :  { %2518 = vmax.xlane.f32.xlu1 %v2517_v29 }
0x1252   :  { %v5534_v44 = vpop.f32.mrf.mxu0 }
0x1254   :  { %v4282_v30 = vpop.f32.mrf.mxu0 }
0x1256   :  { %v5536_v35 = vpop.f32.mrf.mxu0 }
0x1258   :  { %v4283_v42 = vpop.f32.mrf.mxu0 }
0x125a   :  { %v2507_v53 = vpop.f32.mrf.mxu0 }
0x125b   :  { %v2508_v56 = vadd.f32 %v5487_v17, %v2507_v53 }
0x125c   :  { %v4294_v32 = vpop.f32.mrf.mxu0 }
0x125d   :  { %v2520_v7 = vsel %vm442_vm2, %v2508_v56, -inf }
0x125e   :  { %2521 = vmax.xlane.f32.xlu0 %v2520_v7  ;;  %v2510_v36 = vpop.f32.mrf.mxu0 }
0x125f   :  { %v2511_v37 = vadd.f32 %v5494_v22, %v2510_v36 }
0x1260   :  { %v4295_v39 = vpop.f32.mrf.mxu0 }
0x1261   :  { %v2523_v40 = vsel %vm442_vm2, %v2511_v37, -inf }
0x1262   :  { %2524 = vmax.xlane.f32.xlu0 %v2523_v40 }
0x12d1   :  { %v2516_v41 = vpop.xlane.xlu0 %2515 }
0x12d2   :  { %v2526_v34 = vsub.f32 %v2455_v21, %v2516_v41 }
0x12d4   :  { %v2530_v10 = vmul.f32 1.442695, %v2526_v34 }
0x12d5   :  { %v2519_v38 = vpop.xlane.xlu1 %2518 }
0x12d6   :  { %4677 = vpow2.f32 %v2530_v10  ;;  %v2527_v48 = vsub.f32 %v2458_v1, %v2519_v38 }
0x12d8   :  { %v2532_v43 = vmul.f32 1.442695, %v2527_v48 }
0x12da   :  { %4679 = vpow2.f32 %v2532_v43 }
0x12e3   :  { %v4678_v49 = vpop.eup %4677 }
0x12e4   :  { %v2538_v55 = vsel %vm442_vm2, %v4678_v49, 0.0 }
0x12e5   :  { %2539 = vadd.xlane.f32.xlu0 %v2538_v55 }
0x12e7   :  { %v4680_v52 = vpop.eup %4679  ;;  %v2522_v54 = vpop.xlane.xlu0 %2521 }
0x12e8   :  { %v2528_v57 = vsub.f32 %v2508_v56, %v2522_v54  ;;  %v2541_v47 = vsel %vm442_vm2, %v4680_v52, 0.0 }
0x12e9   :  { %2542 = vadd.xlane.f32.xlu1 %v2541_v47 }
0x12ea   :  { %v2534_v62 = vmul.f32 1.442695, %v2528_v57 }
0x12eb   :  { %v2525_v63 = vpop.xlane.xlu0 %2524 }
0x12ec   :  { %4681 = vpow2.f32 %v2534_v62  ;;  %v2529_v4 = vsub.f32 %v2511_v37, %v2525_v63 }
0x12ee   :  { %v2536_v59 = vmul.f32 1.442695, %v2529_v4 }
0x12f0   :  { %4683 = vpow2.f32 %v2536_v59 }
0x12f9   :  { %v4682_v33 = vpop.eup %4681 }
0x12fa   :  { %2609 = vrot.lane.b32.xlu1 %v5462_v46, %s4760_s15  ;;  %v2544_v2 = vsel %vm442_vm2, %v4682_v33, 0.0 }
0x12fb   :  { %2545 = vadd.xlane.f32.xlu0 %v2544_v2 }
0x12fd   :  { %v4684_v50 = vpop.eup %4683 }
0x12fe   :  { %2658 = vrot.lane.b32.xlu1 %v5438_v9, %s4761_s16  ;;  %v2547_v60 = vsel %vm442_vm2, %v4684_v50, 0.0 }
0x1311   :  { %2561 = vrot.lane.b32.xlu0 %v5449_v18, %s4760_s15 }
0x1315   :  { %2656 = vrot.lane.b32.xlu0 %v5445_v14, %s4761_s16 }
0x1322   :  { %2548 = vadd.xlane.f32.xlu1 %v2547_v60 }
0x1333   :  { %2709 = vrot.lane.b32.xlu1 %v5447_v58, %s4761_s16 }
0x1337   :  { %2707 = vrot.lane.b32.xlu1 %v5460_v45, %s4761_s16 }
0x136e   :  { %v2540_v0 = vpop.xlane.xlu0 %2539 }
0x1372   :  { %v2543_v51 = vpop.xlane.xlu1 %2542 }
0x1373   :  { %4685 = vrcp.f32 %v2543_v51 }
0x1374   :  { %4687 = vrcp.f32 %v2540_v0 }
0x1376   :  { %v2610_v8 = vpop.permute.xlu1 %2609 }
0x1377   :  { %4303 = vmatpush3.bf16.msra.mxu0 %v2610_v8 }
0x1378   :  { %4314 = vmatprep.subr.bf16.mxu0 %v4758_v31 }
0x137a   :  { %v2659_v5 = vpop.permute.xlu1 %2658 }
0x137b   :  { %v2664_v6 = vsel %vm347_vm1, %v2659_v5, 0 }
0x1380   :  { %v4686_v25 = vpop.eup %4685 }
0x1381   :  { %v4688_v61 = vpop.eup %4687  ;;  %v2555_v3 = vmul.f32 %v4686_v25, %v4680_v52 }
0x1382   :  { %v2554_v21 = vmul.f32 %v4688_v61, %v4678_v49 }
0x1384   :  { %v2546_v12 = vpop.xlane.xlu0 %2545  ;;  %v2558_v26 = vpack.c.bf16 %v2555_v3, %v2554_v21 }
0x1385   :  { %4689 = vrcp.f32 %v2546_v12 }
0x1388   :  { %v2562_v20 = vpop.permute.xlu0 %2561 }
0x1389   :  { %4297 = vmatpush3.bf16.msra.mxu1 %v2562_v20 }
0x138a   :  { %4308 = vmatprep.subr.bf16.mxu1 %v4758_v31 }
0x138c   :  { %4299 = vmatmul.mubr.msk.bf16.vlgmr.msra.gmra.mxu1 %vm442_vm2, %v2558_v26  ;;  %v2657_v1 = vpop.permute.xlu0 %2656 }
0x138d   :  { %4309 = vmatpush3.bf16.xpose.msra.mxu1 %v2664_v6  ;;  %4310 = vmatprep.mubr.msk.bf16.mxu1 %vm4759_vm0, %v4758_v31 }
0x138e   :  { %4320 = vmatprep.subr.bf16.mxu1 %v4758_v31 }
0x1392   :  { %v4690_v29 = vpop.eup %4689 }
0x1393   :  { %v2556_v42 = vmul.f32 %v4690_v29, %v4682_v33 }
0x1394   :  { %4311 = vmatmul.mubr.msk.bf16.vlgmr.msra.gmra.mxu1 %vm347_vm1, %v2657_v1 }
0x1395   :  { %4322 = vmatprep.mubr.msk.bf16.mxu1 %vm4759_vm0, %v4758_v31 }
0x13ab   :  { %v2549_v13 = vpop.xlane.xlu1 %2548 }
0x13ac   :  { %4691 = vrcp.f32 %v2549_v13 }
0x13af   :  { %v2710_v56 = vpop.permute.xlu1 %2709 }
0x13b0   :  { %v2715_v7 = vsel %vm347_vm1, %v2710_v56, 0 }
0x13b3   :  { %v2708_v36 = vpop.permute.xlu1 %2707 }
0x13b9   :  { %v4692_v30 = vpop.eup %4691 }
0x13ba   :  { %v2557_v53 = vmul.f32 %v4692_v30, %v4684_v50 }
0x13bc   :  { %v2559_v32 = vpack.c.bf16 %v2557_v53, %v2556_v42 }
0x13be   :  { %4305 = vmatmul.mubr.msk.bf16.vlgmr.msra.gmra.mxu0 %vm442_vm2, %v2559_v32 }
0x13bf   :  { %4315 = vmatpush3.bf16.xpose.msra.mxu0 %v2715_v7  ;;  %4316 = vmatprep.mubr.msk.bf16.mxu0 %vm4759_vm0, %v4758_v31 }
0x13c0   :  { %4326 = vmatprep.subr.bf16.mxu0 %v4758_v31 }
0x13c6   :  { %4317 = vmatmul.mubr.msk.bf16.vlgmr.msra.gmra.mxu0 %vm347_vm1, %v2708_v36 }
0x13c7   :  { %4328 = vmatprep.mubr.msk.bf16.mxu0 %vm4759_vm0, %v4758_v31 }
0x144c   :  { %v5576_v37 = vpop.f32.mrf.mxu1 }
0x144e   :  { %v4300_v39 = vpop.f32.mrf.mxu1 }
0x1450   :  { %v5578_v40 = vpop.f32.mrf.mxu1 }
0x1451   :  { %v4443_v41 = vpack.i.bf16 %v5578_v40, %v5576_v37 }
0x1452   :  { %v4301_v34 = vpop.f32.mrf.mxu1 }
0x1454   :  { %v2700_v10 = vpop.f32.mrf.mxu1 }
0x1455   :  { %v2701_v38 = vadd.f32 %v5473_v23, %v2700_v10 }
0x1456   :  { %v4312_v48 = vpop.f32.mrf.mxu1 }
0x1457   :  { %v2758_v43 = vsel %vm442_vm2, %v2701_v38, -inf }
0x1458   :  { %2759 = vmax.xlane.f32.xlu0 %v2758_v43  ;;  %v2703_v49 = vpop.f32.mrf.mxu1 }
0x1459   :  { %v2704_v55 = vadd.f32 %v5480_v27, %v2703_v49 }
0x145a   :  { %v4313_v52 = vpop.f32.mrf.mxu1 }
0x145b   :  { %v2761_v54 = vsel %vm442_vm2, %v2704_v55, -inf }
0x145c   :  { %2762 = vmax.xlane.f32.xlu1 %v2761_v54 }
0x147e   :  { %v5586_v57 = vpop.f32.mrf.mxu0 }
0x1480   :  { %v4306_v47 = vpop.f32.mrf.mxu0 }
0x1482   :  { %v5588_v62 = vpop.f32.mrf.mxu0 }
0x1483   :  { %v4448_v33 = vpack.i.bf16 %v5588_v62, %v5586_v57 }
0x1484   :  { %v4307_v2 = vpop.f32.mrf.mxu0 }
0x1486   :  { %v2751_v63 = vpop.f32.mrf.mxu0 }
0x1487   :  { %v2752_v4 = vadd.f32 %v5487_v17, %v2751_v63 }
0x1488   :  { %v4318_v59 = vpop.f32.mrf.mxu0 }
0x1489   :  { %v2764_v50 = vsel %vm442_vm2, %v2752_v4, -inf }
0x148a   :  { %2765 = vmax.xlane.f32.xlu0 %v2764_v50  ;;  %v2754_v60 = vpop.f32.mrf.mxu0 }
0x148b   :  { %v2755_v51 = vadd.f32 %v5494_v22, %v2754_v60 }
0x148c   :  { %v4319_v0 = vpop.f32.mrf.mxu0 }
0x148d   :  { %v2767_v8 = vsel %vm442_vm2, %v2755_v51, -inf }
0x148e   :  { %2768 = vmax.xlane.f32.xlu0 %v2767_v8 }
0x14e1   :  { %v2760_v25 = vpop.xlane.xlu0 %2759 }
0x14e2   :  { %v2770_v12 = vsub.f32 %v2701_v38, %v2760_v25 }
0x14e4   :  { %v2774_v61 = vmul.f32 1.442695, %v2770_v12 }
0x14e5   :  { %v2763_v3 = vpop.xlane.xlu1 %2762 }
0x14e6   :  { %4693 = vpow2.f32 %v2774_v61  ;;  %v2771_v20 = vsub.f32 %v2704_v55, %v2763_v3 }
0x14e8   :  { %v2776_v21 = vmul.f32 1.442695, %v2771_v20 }
0x14ea   :  { %4695 = vpow2.f32 %v2776_v21 }
0x14f3   :  { %v4694_v5 = vpop.eup %4693 }
0x14f4   :  { %v2782_v26 = vsel %vm442_vm2, %v4694_v5, 0.0 }
0x14f5   :  { %2783 = vadd.xlane.f32.xlu0 %v2782_v26 }
0x14f7   :  { %v4696_v6 = vpop.eup %4695 }
0x14f8   :  { %v2785_v1 = vsel %vm442_vm2, %v4696_v6, 0.0 }
0x14f9   :  { %2786 = vadd.xlane.f32.xlu1 %v2785_v1 }
0x150a   :  { %2851 = vrot.lane.b32.xlu1 %v5462_v46, %s4761_s16 }
0x150e   :  { %2900 = vrot.lane.b32.xlu1 %v5438_v9, %s4762_s17 }
0x1513   :  { %v2766_v13 = vpop.xlane.xlu0 %2765 }
0x1514   :  { %v2772_v29 = vsub.f32 %v2752_v4, %v2766_v13 }
0x1516   :  { %v2778_v30 = vmul.f32 1.442695, %v2772_v29 }
0x1517   :  { %v2769_v42 = vpop.xlane.xlu0 %2768 }
0x1518   :  { %4697 = vpow2.f32 %v2778_v30  ;;  %v2773_v53 = vsub.f32 %v2755_v51, %v2769_v42 }
0x151a   :  { %v2780_v56 = vmul.f32 1.442695, %v2773_v53 }
0x151c   :  { %4699 = vpow2.f32 %v2780_v56 }
0x1525   :  { %v4698_v32 = vpop.eup %4697 }
0x1526   :  { %v2788_v7 = vsel %vm442_vm2, %v4698_v32, 0.0 }
0x1527   :  { %2789 = vadd.xlane.f32.xlu0 %v2788_v7 }
0x1529   :  { %v4700_v36 = vpop.eup %4699 }
0x152a   :  { %v2791_v39 = vsel %vm442_vm2, %v4700_v36, 0.0 }
0x1532   :  { %2792 = vadd.xlane.f32.xlu1 %v2791_v39 }
0x153d   :  { %2804 = vrot.lane.b32.xlu0 %v5449_v18, %s4761_s16 }
0x1541   :  { %2898 = vrot.lane.b32.xlu0 %v5445_v14, %s4762_s17 }
0x1543   :  { %2951 = vrot.lane.b32.xlu1 %v5447_v58, %s4762_s17 }
0x1547   :  { %2949 = vrot.lane.b32.xlu1 %v5460_v45, %s4762_s17 }
0x157e   :  { %v2784_v10 = vpop.xlane.xlu0 %2783 }
0x1582   :  { %v2787_v9 = vpop.xlane.xlu1 %2786 }
0x1583   :  { %4701 = vrcp.f32 %v2787_v9 }
0x1584   :  { %4703 = vrcp.f32 %v2784_v10 }
0x1586   :  { %v2852_v34 = vpop.permute.xlu1 %2851 }
0x1587   :  { %4327 = vmatpush3.bf16.msra.mxu0 %v2852_v34 }
0x1588   :  { %4338 = vmatprep.subr.bf16.mxu0 %v4758_v31 }
0x158a   :  { %v2901_v52 = vpop.permute.xlu1 %2900 }
0x158b   :  { %v2906_v45 = vsel %vm347_vm1, %v2901_v52, 0 }
0x1590   :  { %v4702_v38 = vpop.eup %4701 }
0x1591   :  { %v4704_v43 = vpop.eup %4703  ;;  %v2799_v49 = vmul.f32 %v4702_v38, %v4696_v6 }
0x1592   :  { %v2798_v14 = vmul.f32 %v4704_v43, %v4694_v5 }
0x1594   :  { %v2802_v58 = vpack.c.bf16 %v2799_v49, %v2798_v14 }
0x15b0   :  { %v2790_v48 = vpop.xlane.xlu0 %2789 }
0x15b1   :  { %4705 = vrcp.f32 %v2790_v48 }
0x15b4   :  { %v2805_v55 = vpop.permute.xlu0 %2804 }
0x15b5   :  { %4321 = vmatpush3.bf16.msra.mxu1 %v2805_v55 }
0x15b6   :  { %4332 = vmatprep.subr.bf16.mxu1 %v4758_v31 }
0x15b8   :  { %4323 = vmatmul.mubr.msk.bf16.vlgmr.msra.gmra.mxu1 %vm442_vm2, %v2802_v58  ;;  %v2899_v47 = vpop.permute.xlu0 %2898 }
0x15b9   :  { %4333 = vmatpush3.bf16.xpose.msra.mxu1 %v2906_v45  ;;  %4334 = vmatprep.mubr.msk.bf16.mxu1 %vm4759_vm0, %v4758_v31 }
0x15ba   :  { %4344 = vmatprep.subr.bf16.mxu1 %v4758_v31 }
0x15bb   :  { %v2793_v54 = vpop.xlane.xlu1 %2792 }
0x15bc   :  { %4707 = vrcp.f32 %v2793_v54 }
0x15be   :  { %v4706_v2 = vpop.eup %4705 }
0x15bf   :  { %v2800_v4 = vmul.f32 %v4706_v2, %v4698_v32  ;;  %v2952_v50 = vpop.permute.xlu1 %2951 }
0x15c0   :  { %4335 = vmatmul.mubr.msk.bf16.vlgmr.msra.gmra.mxu1 %vm347_vm1, %v2899_v47  ;;  %v2957_v51 = vsel %vm347_vm1, %v2952_v50, 0 }
0x15c1   :  { %4346 = vmatprep.mubr.msk.bf16.mxu1 %vm4759_vm0, %v4758_v31 }
0x15c3   :  { %v2950_v0 = vpop.permute.xlu1 %2949 }
0x15c9   :  { %v4708_v63 = vpop.eup %4707 }
0x15ca   :  { %v2801_v59 = vmul.f32 %v4708_v63, %v4700_v36 }
0x15cc   :  { %v2803_v60 = vpack.c.bf16 %v2801_v59, %v2800_v4 }
0x15ce   :  { %4329 = vmatmul.mubr.msk.bf16.vlgmr.msra.gmra.mxu0 %vm442_vm2, %v2803_v60 }
0x15cf   :  { %4339 = vmatpush3.bf16.xpose.msra.mxu0 %v2957_v51  ;;  %4340 = vmatprep.mubr.msk.bf16.mxu0 %vm4759_vm0, %v4758_v31 }
0x15d0   :  { %4350 = vmatprep.subr.bf16.mxu0 %v4758_v31 }
0x15d6   :  { %4341 = vmatmul.mubr.msk.bf16.vlgmr.msra.gmra.mxu0 %vm347_vm1, %v2950_v0 }
0x15d7   :  { %4352 = vmatprep.mubr.msk.bf16.mxu0 %vm4759_vm0, %v4758_v31 }
0x1678   :  { %v2844_v8 = vpop.f32.mrf.mxu1 }
0x167a   :  { %v4324_v25 = vpop.f32.mrf.mxu1 }
0x167c   :  { %v2847_v12 = vpop.f32.mrf.mxu1 }
0x167d   :  { %v4453_v61 = vpack.i.bf16 %v2847_v12, %v2844_v8 }
0x167e   :  { %v4325_v3 = vpop.f32.mrf.mxu1 }
0x1680   :  { %v2942_v20 = vpop.f32.mrf.mxu1 }
0x1681   :  { %v2943_v21 = vadd.f32 %v5473_v23, %v2942_v20 }
0x1682   :  { %v4336_v5 = vpop.f32.mrf.mxu1 }
0x1683   :  { %v3000_v26 = vsel %vm442_vm2, %v2943_v21, -inf }
0x1684   :  { %3001 = vmax.xlane.f32.xlu0 %v3000_v26  ;;  %v2945_v6 = vpop.f32.mrf.mxu1 }
0x1685   :  { %v2946_v1 = vadd.f32 %v5480_v27, %v2945_v6 }
0x1686   :  { %v4337_v13 = vpop.f32.mrf.mxu1 }
0x1687   :  { %v3003_v29 = vsel %vm442_vm2, %v2946_v1, -inf }
0x1688   :  { %3004 = vmax.xlane.f32.xlu1 %v3003_v29  ;;  %v4556_v29 = vld [vmem:[%s5825_s4 + $0x10] sm:$0xff]  }
0x168e   :  { %v2891_v31 = vpop.f32.mrf.mxu0 }
0x1690   :  { %v4330_v30 = vpop.f32.mrf.mxu0 }
0x1692   :  { %v2894_v42 = vpop.f32.mrf.mxu0 }
0x1693   :  { %v4458_v53 = vpack.i.bf16 %v2894_v42, %v2891_v31 }
0x1694   :  { %v4331_v56 = vpop.f32.mrf.mxu0 }
0x1696   :  { %v2993_v32 = vpop.f32.mrf.mxu0 }
0x1697   :  { %v2994_v7 = vadd.f32 %v5487_v17, %v2993_v32 }
0x1698   :  { %v4342_v23 = vpop.f32.mrf.mxu0 }
0x1699   :  { %v3006_v36 = vsel %vm442_vm2, %v2994_v7, -inf }
0x169a   :  { %3007 = vmax.xlane.f32.xlu0 %v3006_v36  ;;  %v2996_v39 = vpop.f32.mrf.mxu0 }
0x169b   :  { %v2997_v9 = vadd.f32 %v5494_v22, %v2996_v39 }
0x169c   :  { %v4343_v27 = vpop.f32.mrf.mxu0 }
0x169d   :  { %v3009_v34 = vsel %vm442_vm2, %v2997_v9, -inf }
0x169e   :  { %3010 = vmax.xlane.f32.xlu0 %v3009_v34 }
0x170d   :  { %v3002_v10 = vpop.xlane.xlu0 %3001 }
0x170e   :  { %v3012_v38 = vsub.f32 %v2943_v21, %v3002_v10  ;;  %v4555_v21 = vld [vmem:[%s5825_s4 + $0x18] sm:$0xff]  }
0x1710   :  { %v3016_v48 = vmul.f32 1.442695, %v3012_v38 }
0x1711   :  { %v3005_v43 = vpop.xlane.xlu1 %3004 }
0x1712   :  { %4709 = vpow2.f32 %v3016_v48  ;;  %v3013_v49 = vsub.f32 %v2946_v1, %v3005_v43 }
0x1714   :  { %v3018_v55 = vmul.f32 1.442695, %v3013_v49 }
0x1716   :  { %4711 = vpow2.f32 %v3018_v55 }
0x171f   :  { %v4710_v17 = vpop.eup %4709 }
0x1720   :  { %v3024_v14 = vsel %vm442_vm2, %v4710_v17, 0.0 }
0x1721   :  { %3025 = vadd.xlane.f32.xlu0 %v3024_v14 }
0x1723   :  { %v4712_v52 = vpop.eup %4711  ;;  %v3008_v58 = vpop.xlane.xlu0 %3007 }
0x1724   :  { %v3014_v45 = vsub.f32 %v2994_v7, %v3008_v58  ;;  %v3027_v22 = vsel %vm442_vm2, %v4712_v52, 0.0 }
0x1725   :  { %3028 = vadd.xlane.f32.xlu1 %v3027_v22 }
0x1726   :  { %v3020_v54 = vmul.f32 1.442695, %v3014_v45 }
0x1727   :  { %v3011_v47 = vpop.xlane.xlu0 %3010 }
0x1728   :  { %4713 = vpow2.f32 %v3020_v54  ;;  %v3015_v2 = vsub.f32 %v2997_v9, %v3011_v47 }
0x172a   :  { %v3022_v63 = vmul.f32 1.442695, %v3015_v2 }
0x172c   :  { %4715 = vpow2.f32 %v3022_v63 }
0x1735   :  { %v4714_v4 = vpop.eup %4713 }
0x1736   :  { %v3030_v59 = vsel %vm442_vm2, %v4714_v4, 0.0 }
0x1737   :  { %3031 = vadd.xlane.f32.xlu0 %v3030_v59 }
0x1739   :  { %v4716_v50 = vpop.eup %4715 }
0x173a   :  { %v3033_v60 = vsel %vm442_vm2, %v4716_v50, 0.0 }
0x173b   :  { %3034 = vadd.xlane.f32.xlu1 %v3033_v60 }
0x174c   :  { %3093 = vrot.lane.b32.xlu1 %v5462_v46, %s4762_s17 }
0x174d   :  { %3046 = vrot.lane.b32.xlu0 %v5449_v18, %s4762_s17 }
0x1750   :  { %4444 = vrot.lane.b32.xlu1 %v4443_v41, %s4763_s18 }
0x1751   :  { %4454 = vrot.lane.b32.xlu0 %v4453_v61, %s4764_s19 }
0x1754   :  { %4449 = vrot.lane.b32.xlu1 %v4448_v33, %s4763_s18 }
0x1758   :  { %4459 = vrot.lane.b32.xlu1 %v4458_v53, %s4764_s19 }
0x17aa   :  { %v3026_v0 = vpop.xlane.xlu0 %3025 }
0x17ae   :  { %v3029_v51 = vpop.xlane.xlu1 %3028 }
0x17af   :  { %4717 = vrcp.f32 %v3029_v51 }
0x17b0   :  { %4719 = vrcp.f32 %v3026_v0 }
0x17bc   :  { %v4718_v46 = vpop.eup %4717 }
0x17bd   :  { %v4720_v8 = vpop.eup %4719  ;;  %v3041_v25 = vmul.f32 %v4718_v46, %v4712_v52 }
0x17be   :  { %v3040_v41 = vmul.f32 %v4720_v8, %v4710_v17 }
0x17c0   :  { %v3032_v18 = vpop.xlane.xlu0 %3031  ;;  %v3044_v12 = vpack.c.bf16 %v3041_v25, %v3040_v41 }
0x17c1   :  { %4721 = vrcp.f32 %v3032_v18 }
0x17c4   :  { %v3035_v37 = vpop.xlane.xlu1 %3034  ;;  %v3047_v40 = vpop.permute.xlu0 %3046 }
0x17c5   :  { %4723 = vrcp.f32 %v3035_v37  ;;  %4345 = vmatpush3.bf16.msra.mxu1 %v3047_v40 }
0x17c6   :  { %4356 = vmatprep.subr.bf16.mxu1 %v4555_v21 }
0x17c8   :  { %v3094_v61 = vpop.permute.xlu1 %3093  ;;  %4347 = vmatmul.mubr.msk.bf16.vlgmr.msra.gmra.mxu1 %vm442_vm2, %v3044_v12  ;;  %v4455_v36 = vpop.permute.xlu0 %4454 }
0x17c9   :  { %4351 = vmatpush3.bf16.msra.mxu0 %v3094_v61  ;;  %4357 = vmatpush3.bf16.msra.mxu1 %v4555_v21  ;;  %v4457_v27 = vunpack.i.h.bf16 %v4455_v36  ;;  %v4456_v34 = vunpack.i.l.bf16 %v4455_v36  ;;  %v4560_v21 = vld [vmem:[%s5827_s8 + $0x60] sm:$0xff]  }
0x17ca   :  { %4358 = vmatprep.subr.bf16.mxu1 %v4556_v29 }
0x17cc   :  { %v4445_v32 = vpop.permute.xlu1 %4444 }
0x17cd   :  { %4359 = vmatpush3.bf16.msra.mxu1 %v4556_v29  ;;  %v4447_v7 = vunpack.i.h.bf16 %v4445_v32  ;;  %v4446_v23 = vunpack.i.l.bf16 %v4445_v32 }
0x17ce   :  { %v4722_v57 = vpop.eup %4721 }
0x17cf   :  { %v3042_v33 = vmul.f32 %v4722_v57, %v4714_v4  ;;  %v3189_v39 = vsel %vm347_vm1, %v5528_v19, %v4447_v7  ;;  %v3188_v9 = vsel %vm347_vm1, %v5526_v28, %v4446_v23 }
0x17d0   :  { %v3192_v43 = vsel %vm442_vm2, %v3188_v9, %v4456_v34  ;;  %v3193_v49 = vsel %vm442_vm2, %v3189_v39, %v4457_v27  ;;  %v4450_v14 = vpop.permute.xlu1 %4449 }
0x17d1   :  { %v4452_v58 = vunpack.i.h.bf16 %v4450_v14  ;;  %v4451_v28 = vunpack.i.l.bf16 %v4450_v14 }
0x17d2   :  { %v4724_v62 = vpop.eup %4723 }
0x17d3   :  { %v3043_v3 = vmul.f32 %v4724_v62, %v4716_v50  ;;  %v3191_v47 = vsel %vm347_vm1, %v5536_v35, %v4452_v58  ;;  %v3190_v2 = vsel %vm347_vm1, %v5534_v44, %v4451_v28  ;;  %v3879_v35 = vld [vmem:[%s5826_s5 + $0x1] ss:$0 sm:$0xff] }
0x17d4   :  { %v4460_v19 = vpop.permute.xlu1 %4459 }
0x17d5   :  { %v3045_v20 = vpack.c.bf16 %v3043_v3, %v3042_v33  ;;  %v4462_v45 = vunpack.i.h.bf16 %v4460_v19  ;;  %v4461_v22 = vunpack.i.l.bf16 %v4460_v19  ;;  %v4557_v33 = vld [vmem:[%s5827_s8 + $0x78] sm:$0xff]   ;;  %v4558_v3 = vld [vmem:[%s5827_s8 + $0x70] sm:$0xff]  }
0x17d6   :  { %4364 = vmatprep.subr.bf16.mxu0 %v4557_v33 }
0x17d7   :  { %4353 = vmatmul.mubr.msk.bf16.vlgmr.msra.gmra.mxu0 %vm442_vm2, %v3045_v20  ;;  %v3194_v59 = vsel %vm442_vm2, %v3190_v2, %v4461_v22  ;;  %v3195_v50 = vsel %vm442_vm2, %v3191_v47, %v4462_v45  ;;  %v4559_v20 = vld [vmem:[%s5827_s8 + $0x68] sm:$0xff]   ;;  %v3886_v47 = vld [vmem:[%s5828_s6 + $0x1] ss:$0 sm:$0xff] }
0x17d8   :  { %4365 = vmatpush3.bf16.msra.mxu0 %v4557_v33  ;;  %v4569_v33 = vld [vmem:[%s5830_s10 + $0x58] sm:$0xff]  }
0x17d9   :  { %4366 = vmatprep.subr.bf16.mxu0 %v4558_v3 }
0x17dc   :  { %4367 = vmatpush3.bf16.msra.mxu0 %v4558_v3  ;;  %v4570_v3 = vld [vmem:[%s5830_s10 + $0x50] sm:$0xff]  }
0x17dd   :  { %4368 = vmatprep.subr.bf16.mxu0 %v4559_v20 }
0x17e0   :  { %4369 = vmatpush3.bf16.msra.mxu0 %v4559_v20  ;;  %v4571_v20 = vld [vmem:[%s5830_s10 + $0x48] sm:$0xff]  }
0x17e1   :  { %4370 = vmatprep.subr.bf16.mxu0 %v4560_v21 }
0x17e4   :  { %4371 = vmatpush3.bf16.msra.mxu0 %v4560_v21  ;;  %v4572_v21 = vld [vmem:[%s5830_s10 + $0x40] sm:$0xff]  }
0x1888   :  { %v3086_v5 = vpop.f32.mrf.mxu1 }
0x188a   :  { %v4348_v26 = vpop.f32.mrf.mxu1 }
0x188b   :  { %v4562_v26 = vld [vmem:[%s5827_s8 + $0x50] sm:$0xff]  }
0x188c   :  { %v3089_v6 = vpop.f32.mrf.mxu1 }
0x188d   :  { %v4463_v1 = vpack.i.bf16 %v3089_v6, %v3086_v5  ;;  %v4561_v5 = vld [vmem:[%s5827_s8 + $0x58] sm:$0xff]   ;;  %v4563_v6 = vld [vmem:[%s5827_s8 + $0x48] sm:$0xff]  }
0x188e   :  { %v4349_v13 = vpop.f32.mrf.mxu1  ;;  %4372 = vmatprep.subr.bf16.mxu0 %v4561_v5 }
0x188f   :  { %4464 = vrot.lane.b32.xlu0 %v4463_v1, %s4765_s22  ;;  %4373 = vmatpush3.bf16.msra.mxu0 %v4561_v5  ;;  %v4564_v1 = vld [vmem:[%s5827_s8 + $0x40] sm:$0xff]  }
0x1890   :  { %4374 = vmatprep.subr.bf16.mxu0 %v4562_v26  ;;  %v3905_v5 = vld [vmem:[%s5831_s9 + $0x1] ss:$0 sm:$0xff] }
0x1893   :  { %4375 = vmatpush3.bf16.msra.mxu0 %v4562_v26 }
0x1894   :  { %4376 = vmatprep.subr.bf16.mxu0 %v4563_v6 }
0x1897   :  { %v3133_v31 = vpop.f32.mrf.mxu0  ;;  %4377 = vmatpush3.bf16.msra.mxu0 %v4563_v6 }
0x1898   :  { %4378 = vmatprep.subr.bf16.mxu0 %v4564_v1 }
0x1899   :  { %v4354_v30 = vpop.f32.mrf.mxu0 }
0x189b   :  { %v3136_v42 = vpop.f32.mrf.mxu0  ;;  %4379 = vmatpush3.bf16.msra.mxu0 %v4564_v1 }
0x189c   :  { %v4468_v53 = vpack.i.bf16 %v3136_v42, %v3133_v31 }
0x189d   :  { %v4355_v56 = vpop.f32.mrf.mxu0 }
0x189e   :  { %4469 = vrot.lane.b32.xlu1 %v4468_v53, %s4765_s22 }
0x1901   :  { %v4465_v10 = vpop.permute.xlu0 %4464 }
0x1902   :  { %v4467_v38 = vunpack.i.h.bf16 %v4465_v10  ;;  %v4466_v48 = vunpack.i.l.bf16 %v4465_v10 }
0x1904   :  { %v3196_v55 = vsel %vm1365_vm3, %v3192_v43, %v4466_v48  ;;  %v3197_v17 = vsel %vm1365_vm3, %v3193_v49, %v4467_v38 }
0x1905   :  { %v3200_v52 = vpack.c.bf16 %v3197_v17, %v3196_v55 }
0x1907   :  { %4360 = vmatprep.mubr.msk.bf16.mxu1 %vm1395_vm4, %v3200_v52 }
0x1910   :  { %v4470_v54 = vpop.permute.xlu1 %4469 }
0x1911   :  { %v4472_v63 = vunpack.i.h.bf16 %v4470_v54  ;;  %v4471_v4 = vunpack.i.l.bf16 %v4470_v54 }
0x1913   :  { %v3199_v60 = vsel %vm1365_vm3, %v3195_v50, %v4472_v63  ;;  %v3198_v51 = vsel %vm1365_vm3, %v3194_v59, %v4471_v4 }
0x1914   :  { %v3201_v0 = vpack.c.bf16 %v3199_v60, %v3198_v51 }
0x1916   :  { %4361 = vmatmul.mubr.msk.bf16.vlgmr.msra.gmra.mxu1 %vm1395_vm4, %v3201_v0  ;;  %v3887_v0 = vld [vmem:[%s5829_s7 + $0x1] ss:$0 sm:$0xff] }
0x19d6   :  { %v4362_v46 = vpop.f32.mrf.mxu1 }
0x19d7   :  { %v3276_v18 = vadd.f32 %v4362_v46, %v3879_v35 }
0x19d8   :  { %v3267_v44 = vpop.f32.mrf.mxu1 }
0x19d9   :  { %v5688_v8 = vadd.f32 %v3276_v18, %v5421_v24  ;;  %v3268_v25 = vadd.f32 %v3879_v35, %v3267_v44 }
0x19da   :  { %v4363_v37 = vpop.f32.mrf.mxu1 }
0x19db   :  { %3294 = vadd.xlane.f32.xlu0 %v5688_v8  ;;  %v5692_v41 = vadd.f32 %v3268_v25, %v5413_v15  ;;  %v3279_v12 = vadd.f32 %v4363_v37, %v3879_v35 }
0x19dc   :  { %v3270_v40 = vpop.f32.mrf.mxu1 }
0x19dd   :  { %v3271_v61 = vadd.f32 %v3879_v35, %v3270_v40  ;;  %v5699_v62 = vadd.f32 %v3279_v12, %v5423_v11  ;;  %v3302_v15 = vmul.f32 %v5692_v41, %v5692_v41  ;;  %v3304_v11 = vmul.f32 %v5688_v8, %v5688_v8 }
0x19df   :  { %v5695_v57 = vadd.f32 %v3271_v61, %v5415_v16  ;;  %3290 = vadd.xlane.f32.xlu0 %v5692_v41  ;;  %v3305_v16 = vmul.f32 %v5699_v62, %v5699_v62 }
0x19e1   :  { %3292 = vadd.xlane.f32.xlu1 %v5695_v57  ;;  %v3303_v24 = vmul.f32 %v5695_v57, %v5695_v57 }
0x19e3   :  { %3296 = vadd.xlane.f32.xlu0 %v5699_v62 }
0x19e5   :  { %3308 = vadd.xlane.f32.xlu1 %v3303_v24  ;;  %v4565_v24 = vld [vmem:[%s5830_s10 + $0x78] sm:$0xff]  }
0x19e6   :  { %4384 = vmatprep.subr.bf16.mxu1 %v4565_v24 }
0x19e7   :  { %3306 = vadd.xlane.f32.xlu0 %v3302_v15  ;;  %4385 = vmatpush3.bf16.msra.mxu1 %v4565_v24  ;;  %v4566_v15 = vld [vmem:[%s5830_s10 + $0x70] sm:$0xff]  }
0x19e8   :  { %4386 = vmatprep.subr.bf16.mxu1 %v4566_v15 }
0x19e9   :  { %3312 = vadd.xlane.f32.xlu1 %v3305_v16  ;;  %v4567_v16 = vld [vmem:[%s5830_s10 + $0x68] sm:$0xff]  }
0x19eb   :  { %3310 = vadd.xlane.f32.xlu0 %v3304_v11  ;;  %4387 = vmatpush3.bf16.msra.mxu1 %v4566_v15  ;;  %v4568_v11 = vld [vmem:[%s5830_s10 + $0x60] sm:$0xff]  }
0x19ec   :  { %4388 = vmatprep.subr.bf16.mxu1 %v4567_v16 }
0x19ef   :  { %4389 = vmatpush3.bf16.msra.mxu1 %v4567_v16 }
0x19f0   :  { %4390 = vmatprep.subr.bf16.mxu1 %v4568_v11 }
0x19f3   :  { %4391 = vmatpush3.bf16.msra.mxu1 %v4568_v11 }
0x19f4   :  { %4392 = vmatprep.subr.bf16.mxu1 %v4569_v33 }
0x19f7   :  { %4393 = vmatpush3.bf16.msra.mxu1 %v4569_v33 }
0x19f8   :  { %4394 = vmatprep.subr.bf16.mxu1 %v4570_v3 }
0x19fb   :  { %4395 = vmatpush3.bf16.msra.mxu1 %v4570_v3 }
0x19fc   :  { %4396 = vmatprep.subr.bf16.mxu1 %v4571_v20 }
0x19ff   :  { %4397 = vmatpush3.bf16.msra.mxu1 %v4571_v20 }
0x1a00   :  { %4398 = vmatprep.subr.bf16.mxu1 %v4572_v21 }
0x1a03   :  { %4399 = vmatpush3.bf16.msra.mxu1 %v4572_v21 }
0x1a64   :  { %v3295_v13 = vpop.xlane.xlu0 %3294 }
0x1a65   :  { %v3300_v36 = vmul.f32 0.03125, %v3295_v13 }
0x1a67   :  { %v3320_v55 = vmul.f32 %v3300_v36, %v3300_v36  ;;  %v3328_v35 = vsub.f32 %v5688_v8, %v3300_v36 }
0x1a68   :  { %v3291_v29 = vpop.xlane.xlu0 %3290 }
0x1a69   :  { %v3298_v53 = vmul.f32 0.03125, %v3291_v29 }
0x1a6a   :  { %v3293_v31 = vpop.xlane.xlu1 %3292 }
0x1a6b   :  { %v3299_v30 = vmul.f32 0.03125, %v3293_v31  ;;  %v3318_v9 = vmul.f32 %v3298_v53, %v3298_v53  ;;  %v3326_v2 = vsub.f32 %v5692_v41, %v3298_v53 }
0x1a6c   :  { %v3297_v42 = vpop.xlane.xlu0 %3296 }
0x1a6d   :  { %v3319_v32 = vmul.f32 %v3299_v30, %v3299_v30  ;;  %v3301_v7 = vmul.f32 0.03125, %v3297_v42  ;;  %v3327_v22 = vsub.f32 %v5695_v57, %v3299_v30 }
0x1a6e   :  { %v3309_v56 = vpop.xlane.xlu1 %3308 }
0x1a6f   :  { %v3315_v23 = vmul.f32 0.03125, %v3309_v56  ;;  %v3321_v38 = vmul.f32 %v3301_v7, %v3301_v7  ;;  %v3329_v59 = vsub.f32 %v5699_v62, %v3301_v7 }
0x1a70   :  { %v3307_v39 = vpop.xlane.xlu0 %3306 }
0x1a71   :  { %v3323_v27 = vsub.f32 %v3315_v23, %v3319_v32  ;;  %v3314_v34 = vmul.f32 0.03125, %v3307_v39 }
0x1a72   :  { %v3313_v10 = vpop.xlane.xlu1 %3312 }
0x1a73   :  { %v3331_v48 = vadd.f32 1e-12, %v3323_v27  ;;  %v3322_v43 = vsub.f32 %v3314_v34, %v3318_v9  ;;  %v3317_v49 = vmul.f32 0.03125, %v3313_v10 }
0x1a74   :  { %v3311_v17 = vpop.xlane.xlu0 %3310 }
0x1a75   :  { %4725 = vrsqrt.f32 %v3331_v48  ;;  %v3330_v14 = vadd.f32 1e-12, %v3322_v43  ;;  %v3325_v52 = vsub.f32 %v3317_v49, %v3321_v38  ;;  %v3316_v19 = vmul.f32 0.03125, %v3311_v17 }
0x1a77   :  { %4727 = vrsqrt.f32 %v3330_v14  ;;  %v3333_v58 = vadd.f32 1e-12, %v3325_v52  ;;  %v3324_v28 = vsub.f32 %v3316_v19, %v3320_v55 }
0x1a79   :  { %4729 = vrsqrt.f32 %v3333_v58  ;;  %v3332_v45 = vadd.f32 1e-12, %v3324_v28 }
0x1a7b   :  { %4731 = vrsqrt.f32 %v3332_v45 }
0x1a82   :  { %v4726_v54 = vpop.eup %4725 }
0x1a83   :  { %v3339_v63 = vmul.f32 %v4726_v54, %v3327_v22 }
0x1a84   :  { %v4728_v4 = vpop.eup %4727 }
0x1a85   :  { %v3338_v50 = vmul.f32 %v4728_v4, %v3326_v2  ;;  %v3349_v60 = vmul.f32 %v3886_v47, %v3339_v63 }
0x1a86   :  { %v4730_v51 = vpop.eup %4729 }
0x1a87   :  { %v3348_v46 = vmul.f32 %v3886_v47, %v3338_v50  ;;  %v3341_v18 = vmul.f32 %v4730_v51, %v3329_v59  ;;  %v5747_v37 = vadd.f32 %v3887_v0, %v3349_v60 }
0x1a88   :  { %v4732_v44 = vpop.eup %4731 }
0x1a89   :  { %v5745_v25 = vadd.f32 %v3887_v0, %v3348_v46  ;;  %v3340_v40 = vmul.f32 %v4732_v44, %v3328_v35  ;;  %v3351_v41 = vmul.f32 %v3886_v47, %v3341_v18 }
0x1a8b   :  { %v3362_v12 = vpack.c.bf16 %v5747_v37, %v5745_v25  ;;  %v3350_v61 = vmul.f32 %v3886_v47, %v3340_v40  ;;  %v5753_v62 = vadd.f32 %v3887_v0, %v3351_v41  ;;  %v3931_v40 = vld [vmem:[%s5832_s11 + $0x1] ss:$0 sm:$0xff] }
0x1a8d   :  { %4380 = vmatprep.mubr.bf16.mxu0 %v3362_v12  ;;  %v5751_v57 = vadd.f32 %v3887_v0, %v3350_v61 }
0x1a8f   :  { %v3363_v8 = vpack.c.bf16 %v5753_v62, %v5751_v57 }
0x1a91   :  { %4381 = vmatmul.mubr.bf16.vlgmr.msra.gmra.mxu0 %v3363_v8 }
0x1b51   :  { %v4382_v26 = vpop.f32.mrf.mxu0 }
0x1b52   :  { %v3480_v6 = vadd.f32 %v4382_v26, %v3905_v5 }
0x1b53   :  { %v3471_v1 = vpop.f32.mrf.mxu0 }
0x1b54   :  { %v3488_v13 = vmul.f32 %v3480_v6, %v3480_v6  ;;  %v3472_v29 = vadd.f32 %v3905_v5, %v3471_v1 }
0x1b55   :  { %v4383_v31 = vpop.f32.mrf.mxu0 }
0x1b56   :  { %v3492_v30 = vmul.f32 %v3488_v13, %v3480_v6  ;;  %v3486_v42 = vmul.f32 %v3472_v29, %v3472_v29  ;;  %v3483_v53 = vadd.f32 %v4383_v31, %v3905_v5 }
0x1b57   :  { %v3474_v56 = vpop.f32.mrf.mxu0 }
0x1b58   :  { %v3496_v32 = vmul.f32 0.044715, %v3492_v30  ;;  %v3490_v7 = vmul.f32 %v3486_v42, %v3472_v29  ;;  %v3489_v23 = vmul.f32 %v3483_v53, %v3483_v53  ;;  %v3475_v36 = vadd.f32 %v3905_v5, %v3474_v56 }
0x1b5a   :  { %v3500_v39 = vadd.f32 %v3496_v32, %v3480_v6  ;;  %v3494_v9 = vmul.f32 0.044715, %v3490_v7  ;;  %v3493_v27 = vmul.f32 %v3489_v23, %v3483_v53  ;;  %v3487_v34 = vmul.f32 %v3475_v36, %v3475_v36 }
0x1b5c   :  { %v3504_v10 = vmul.f32 0.7978846, %v3500_v39  ;;  %v3498_v38 = vadd.f32 %v3494_v9, %v3472_v29  ;;  %v3497_v48 = vmul.f32 0.044715, %v3493_v27  ;;  %v3491_v43 = vmul.f32 %v3487_v34, %v3475_v36 }
0x1b5e   :  { %v3502_v49 = vmul.f32 0.7978846, %v3498_v38  ;;  %v3501_v55 = vadd.f32 %v3497_v48, %v3483_v53  ;;  %v3495_v17 = vmul.f32 0.044715, %v3491_v43  ;;  %4733 = vtanh.f32 %v3504_v10 }
0x1b60   :  { %4735 = vtanh.f32 %v3502_v49  ;;  %v3505_v14 = vmul.f32 0.7978846, %v3501_v55  ;;  %v3499_v52 = vadd.f32 %v3495_v17, %v3475_v36 }
0x1b62   :  { %4737 = vtanh.f32 %v3505_v14  ;;  %v3503_v19 = vmul.f32 0.7978846, %v3499_v52 }
0x1b64   :  { %4739 = vtanh.f32 %v3503_v19 }
0x1b6b   :  { %v4734_v58 = vpop.eup %4733 }
0x1b6c   :  { %v3512_v54 = vadd.f32 1.0, %v4734_v58 }
0x1b6d   :  { %v4736_v28 = vpop.eup %4735 }
0x1b6e   :  { %v3510_v45 = vadd.f32 1.0, %v4736_v28  ;;  %v3516_v50 = vmul.f32 0.5, %v3512_v54  ;;  %v3942_v28 = vld [vmem:[%s5833_s12 + $0x1] ss:$0 sm:$0xff] }
0x1b6f   :  { %v4738_v22 = vpop.eup %4737 }
0x1b70   :  { %v3513_v47 = vadd.f32 1.0, %v4738_v22  ;;  %v3514_v59 = vmul.f32 0.5, %v3510_v45  ;;  %v3520_v46 = vmul.f32 %v3516_v50, %v3480_v6  ;;  %v3943_v22 = vld [vmem:[%s5834_s13 + $0x1] ss:$0 sm:$0xff] }
0x1b71   :  { %v4740_v2 = vpop.eup %4739 }
0x1b72   :  { %v3517_v63 = vmul.f32 0.5, %v3513_v47  ;;  %v3511_v4 = vadd.f32 1.0, %v4740_v2  ;;  %v3518_v0 = vmul.f32 %v3514_v59, %v3472_v29 }
0x1b74   :  { %v3515_v60 = vmul.f32 0.5, %v3511_v4  ;;  %v3521_v51 = vmul.f32 %v3517_v63, %v3483_v53 }
0x1b76   :  { %v3519_v35 = vmul.f32 %v3515_v60, %v3475_v36  ;;  %v3523_v44 = vpack.c.bf16 %v3521_v51, %v3520_v46 }
0x1b78   :  { %v3522_v18 = vpack.c.bf16 %v3519_v35, %v3518_v0 }
0x1b7a   :  { %4400 = vmatprep.mubr.bf16.mxu1 %v3522_v18 }
0x1b7b   :  { %4401 = vmatmul.mubr.bf16.vlgmr.msra.gmra.mxu1 %v3523_v44 }
0x1c3b   :  { %v4402_v41 = vpop.f32.mrf.mxu1 }
0x1c3c   :  { %v3640_v12 = vadd.f32 %v4402_v41, %v3931_v40 }
0x1c3d   :  { %v3631_v61 = vpop.f32.mrf.mxu1 }
0x1c3e   :  { %v5788_v8 = vadd.f32 %v3640_v12, %v5751_v57  ;;  %v3632_v24 = vadd.f32 %v3931_v40, %v3631_v61 }
0x1c3f   :  { %v4403_v15 = vpop.f32.mrf.mxu1 }
0x1c40   :  { %v3643_v16 = vadd.f32 %v4403_v15, %v3931_v40  ;;  %3658 = vadd.xlane.f32.xlu0 %v5788_v8  ;;  %v3646_v33 = vadd.f32 %v3632_v24, %v5745_v25  ;;  %v3668_v26 = vmul.f32 %v5788_v8, %v5788_v8 }
0x1c41   :  { %v3634_v11 = vpop.f32.mrf.mxu1 }
0x1c42   :  { %v5793_v3 = vadd.f32 %v3643_v16, %v5753_v62  ;;  %v3635_v20 = vadd.f32 %v3931_v40, %v3634_v11  ;;  %v3666_v5 = vmul.f32 %v3646_v33, %v3646_v33 }
0x1c44   :  { %3660 = vadd.xlane.f32.xlu1 %v5793_v3  ;;  %3654 = vadd.xlane.f32.xlu0 %v3646_v33  ;;  %v3647_v21 = vadd.f32 %v3635_v20, %v5747_v37  ;;  %v3669_v25 = vmul.f32 %v5793_v3, %v5793_v3 }
0x1c46   :  { %v3667_v57 = vmul.f32 %v3647_v21, %v3647_v21 }
0x1c48   :  { %3656 = vadd.xlane.f32.xlu1 %v3647_v21  ;;  %3670 = vadd.xlane.f32.xlu0 %v3666_v5 }
0x1c4c   :  { %3672 = vadd.xlane.f32.xlu1 %v3667_v57  ;;  %3674 = vadd.xlane.f32.xlu0 %v3668_v26 }
0x1c50   :  { %3676 = vadd.xlane.f32.xlu1 %v3669_v25 }
0x1cc9   :  { %v3659_v62 = vpop.xlane.xlu0 %3658 }
0x1cca   :  { %v3664_v29 = vmul.f32 0.03125, %v3659_v62 }
0x1ccc   :  { %v3684_v32 = vmul.f32 %v3664_v29, %v3664_v29  ;;  %v3692_v63 = vsub.f32 %v5788_v8, %v3664_v29 }
0x1ccd   :  { %v3661_v6 = vpop.xlane.xlu1 %3660  ;;  %v3655_v1 = vpop.xlane.xlu0 %3654 }
0x1cce   :  { %v3662_v13 = vmul.f32 0.03125, %v3655_v1  ;;  %v3665_v7 = vmul.f32 0.03125, %v3661_v6 }
0x1cd0   :  { %v3682_v30 = vmul.f32 %v3662_v13, %v3662_v13  ;;  %v3685_v43 = vmul.f32 %v3665_v7, %v3665_v7  ;;  %v3690_v19 = vsub.f32 %v3646_v33, %v3662_v13  ;;  %v3693_v51 = vsub.f32 %v5793_v3, %v3665_v7 }
0x1cd1   :  { %v3657_v31 = vpop.xlane.xlu1 %3656  ;;  %v3671_v37 = vpop.xlane.xlu0 %3670 }
0x1cd2   :  { %v3663_v42 = vmul.f32 0.03125, %v3657_v31  ;;  %v3678_v53 = vmul.f32 0.03125, %v3671_v37 }
0x1cd4   :  { %v3686_v56 = vsub.f32 %v3678_v53, %v3682_v30  ;;  %v3683_v39 = vmul.f32 %v3663_v42, %v3663_v42  ;;  %v3691_v54 = vsub.f32 %v3647_v21, %v3663_v42 }
0x1cd5   :  { %v3673_v23 = vpop.xlane.xlu1 %3672  ;;  %v3675_v36 = vpop.xlane.xlu0 %3674 }
0x1cd6   :  { %v3694_v9 = vadd.f32 1e-12, %v3686_v56  ;;  %v3679_v27 = vmul.f32 0.03125, %v3673_v23  ;;  %v3680_v34 = vmul.f32 0.03125, %v3675_v36 }
0x1cd8   :  { %4741 = vrsqrt.f32 %v3694_v9  ;;  %v3687_v10 = vsub.f32 %v3679_v27, %v3683_v39  ;;  %v3688_v38 = vsub.f32 %v3680_v34, %v3684_v32 }
0x1cd9   :  { %v3677_v48 = vpop.xlane.xlu1 %3676 }
0x1cda   :  { %v3695_v49 = vadd.f32 1e-12, %v3687_v10  ;;  %v3696_v55 = vadd.f32 1e-12, %v3688_v38  ;;  %v3681_v17 = vmul.f32 0.03125, %v3677_v48 }
0x1cdc   :  { %4743 = vrsqrt.f32 %v3695_v49  ;;  %v3689_v14 = vsub.f32 %v3681_v17, %v3685_v43 }
0x1cdd   :  { %4745 = vrsqrt.f32 %v3696_v55 }
0x1cde   :  { %v3697_v52 = vadd.f32 1e-12, %v3689_v14 }
0x1ce0   :  { %4747 = vrsqrt.f32 %v3697_v52 }
0x1ce5   :  { %v4742_v58 = vpop.eup %4741 }
0x1ce6   :  { %v3702_v45 = vmul.f32 %v4742_v58, %v3690_v19 }
0x1ce8   :  { %v3712_v47 = vmul.f32 %v3942_v28, %v3702_v45 }
0x1ce9   :  { %v4744_v2 = vpop.eup %4743 }
0x1cea   :  { %v4746_v4 = vpop.eup %4745  ;;  %v3722_v59 = vadd.f32 %v3943_v22, %v3712_v47  ;;  %v3703_v50 = vmul.f32 %v4744_v2, %v3691_v54 }
0x1ceb   :  { %v3704_v60 = vmul.f32 %v4746_v4, %v3692_v63 }
0x1cec   :  { %3726 = vst [vmem:[%s5835_s14] sm:$0xff] %v3722_v59  ;;  %v3713_v0 = vmul.f32 %v3942_v28, %v3703_v50 }
0x1ced   :  { %v4748_v35 = vpop.eup %4747  ;;  %v3714_v46 = vmul.f32 %v3942_v28, %v3704_v60 }
0x1cee   :  { %v3723_v18 = vadd.f32 %v3943_v22, %v3713_v0  ;;  %v3705_v44 = vmul.f32 %v4748_v35, %v3693_v51 }
0x1cef   :  { %v3724_v40 = vadd.f32 %v3943_v22, %v3714_v46 }
0x1cf0   :  { %3727 = vst [vmem:[%s5835_s14 + $0x8] sm:$0xff] %v3723_v18  ;;  %v3715_v41 = vmul.f32 %v3942_v28, %v3705_v44 }
0x1cf1   :  { %3728 = vst [vmem:[%s5835_s14 + $0x10] sm:$0xff] %v3724_v40 }
0x1cf2   :  { %v3725_v12 = vadd.f32 %v3943_v22, %v3715_v41 }
0x1cf4   :  { %3729 = vst [vmem:[%s5835_s14 + $0x18] sm:$0xff] %v3725_v12 }

</bundles_post_ra>
